<compile_context>
chip_gen: v5e
topology: v5e:2x2
jax: 0.10.0
libtpu: 0.0.40
codegen_flags: <defaults>
</compile_context>

<pallas_src>
import numpy as np
import jax
import jax.numpy as jnp
from jax import lax
from jax.experimental import pallas as pl
from jax.experimental.pallas import tpu as pltpu


def _tap_groups(C):
    """Group the 9 3x3 taps so each im2col slab column store starts at a
    128-lane boundary (and, except the tail, is exactly 128 lanes wide)."""
    g = 128 // C if (C < 128 and 128 % C == 0) else 1
    taps = [(kh, kw) for kh in range(3) for kw in range(3)]
    return [taps[i:i + g] for i in range(0, 9, g)]


# ----------------------------------------------------------------------------
# Pallas kernel
# ----------------------------------------------------------------------------
def _make_kernel(H, W, Cin, D, stride, Bt, slab_dtype, identity):
    assert stride in (1, 2), "IR-SE blocks use stride 1 or 2"
    Ho = (H - 1) // stride + 1
    Wo = (W - 1) // stride + 1
    Hp, Wp = H + 2, W + 2
    R1 = Bt * H * W            # conv1 im2col rows
    R2 = Bt * Ho * Wo          # conv2 im2col rows / output pixels
    g1 = _tap_groups(Cin)
    g2 = _tap_groups(D)
    og = 128 // D if (D < 128 and 128 % D == 0) else 1    # output lane groups
    f32 = jnp.float32

    def kernel(*refs):
        (x_ref, w1_ref, bias1_ref, vecs_ref, w2_ref,
         sew1_ref, sew2_ref) = refs[:7]
        pos = 7
        wsc_ref = None
        if not identity:
            wsc_ref = refs[pos]
            pos += 1
        out_ref = refs[pos]
        pos += 1
        pad2, slab1, slab2 = refs[pos:pos + 3]
        pos += 3
        band = refs[pos] if stride != 1 else None

        # -------- conv1: 3x3, stride 1 --------
        # x is already zero-padded and bn1_scale is folded into w1; bias1_ref
        # is the exact conv(bn1_bias * interior_mask, w1) map, so no BN fma
        # and no pad1 scratch.  Tap windows are packed into a deep-K (9*Cin)
        # im2col slab with 128-lane aligned grouped column stores.
        for grp in g1:
            t0 = 3 * grp[0][0] + grp[0][1]
            pieces = [
                x_ref[:, kh:kh + H, kw:kw + W, :]
                .reshape(R1, Cin).astype(slab_dtype)
                for (kh, kw) in grp]
            slab1[:, t0 * Cin:(t0 + len(grp)) * Cin] = (
                jnp.concatenate(pieces, axis=-1))
        r1 = jnp.dot(slab1[...], w1_ref[...], preferred_element_type=f32)
        r1 = r1.reshape(Bt, H * W, D) + bias1_ref[...]          # exact BN1 bias
        act = jnp.where(r1 > 0, r1, r1 * vecs_ref[0:1, :])      # PReLU(depth)

        # -------- pad2: PReLU result with a zero halo --------
        # The scratch persists across grid steps, so the 1-wide halo is
        # re-zeroed every step (interior is fully rewritten anyway).
        pad2[:, 0:1, :, :] = jnp.zeros((Bt, 1, Wp, D), f32)
        pad2[:, Hp - 1:Hp, :, :] = jnp.zeros((Bt, 1, Wp, D), f32)
        pad2[:, :, 0:1, :] = jnp.zeros((Bt, Hp, 1, D), f32)
        pad2[:, :, Wp - 1:Wp, :] = jnp.zeros((Bt, Hp, 1, D), f32)
        pad2[:, 1:H + 1, 1:W + 1, :] = act.reshape(Bt, H, W, D)

        # -------- conv2: 3x3, stride `stride` (bn2_scale folded into w2) ----
        if stride == 1:
            for grp in g2:
                t0 = 3 * grp[0][0] + grp[0][1]
                pieces = [
                    pad2[:, kh:kh + H, kw:kw + W, :]
                    .reshape(R2, D).astype(slab_dtype)
                    for (kh, kw) in grp]
                slab2[:, t0 * D:(t0 + len(grp)) * D] = (
                    jnp.concatenate(pieces, axis=-1))
        else:
            # One H-strided row band per kh (staged in VMEM); the 3 kw windows
            # are W-strided slices of the compact band.
            wins = []
            for kh in range(3):
                band[...] = pad2[:, pl.ds(kh, Ho, stride=stride), :, :]
                for kw in range(3):
                    wins.append(
                        band[:, :, pl.ds(kw, Wo, stride=stride), :]
                        .reshape(R2, D).astype(slab_dtype))
            for grp in g2:
                t0 = 3 * grp[0][0] + grp[0][1]
                pieces = [wins[3 * kh + kw] for (kh, kw) in grp]
                slab2[:, t0 * D:(t0 + len(grp)) * D] = (
                    jnp.concatenate(pieces, axis=-1))

        r2 = jnp.dot(slab2[...], w2_ref[...], preferred_element_type=f32)
        r2 = r2.reshape(Bt, Ho * Wo, D) + vecs_ref[1:2, :]      # + bn2 bias

        # -------- SE module (per image in this grid step) --------
        pooled = jnp.mean(r2, axis=1)                            # (Bt, D)
        hidden = jnp.maximum(
            jnp.dot(pooled, sew1_ref[...], preferred_element_type=f32), 0.0)
        logits = jnp.dot(hidden, sew2_ref[...], preferred_element_type=f32)
        gate = 1.0 / (1.0 + jnp.exp(-logits))                    # sigmoid
        res = r2 * gate[:, None, :]

        # -------- shortcut --------
        if stride == 1:
            xs = x_ref[:, 1:H + 1, 1:W + 1, :]
        else:
            xs = x_ref[:, pl.ds(1, Ho, stride=stride),
                       pl.ds(1, Wo, stride=stride), :]
        if identity:
            sc = xs.reshape(Bt, Ho * Wo, D)                      # MaxPool2d(1,s)
        else:
            sc = (jnp.dot(xs.reshape(R2, Cin), wsc_ref[...],
                          preferred_element_type=f32)
                  + vecs_ref[2:3, :]).reshape(Bt, Ho * Wo, D)

        out = res + sc                                           # (Bt, Ho*Wo, D)

        # -------- lane-dense output store --------
        # Stage the (Bt,Ho,Wo,D) result in pad2's (now dead) interior, then
        # emit it as 128-lane aligned stripes of the (Bt, Ho, Wo*D) output
        # block so the final stores and the writeback DMA are lane-dense.
        pad2[:, 1:Ho + 1, 1:Wo + 1, :] = out.reshape(Bt, Ho, Wo, D)
        for j0 in range(0, Wo, og):
            jn = min(j0 + og, Wo)
            stripe = jnp.concatenate(
                [pad2[:, 1:Ho + 1, 1 + j, :] for j in range(j0, jn)], axis=-1)
            out_ref[:, :, j0 * D:jn * D] = stripe

    return kernel, Ho, Wo


def _rep_spec(shape):
    """Full-array block replicated across the grid (weights / BN params)."""
    zeros = (0,) * len(shape)
    return pl.BlockSpec(tuple(shape), lambda n, _z=zeros: _z)


# ----------------------------------------------------------------------------
# Wrapper (layout, BN folding, pallas_call)
# ----------------------------------------------------------------------------
def bottleneck_ir_se_forward(x_nchw, params, stride, *, use_bf16_mxu=True,
                             images_per_step=1, vmem_limit_bytes=None):
    """Forward pass of bottleneck_IR_SE (eval-mode BatchNorm) as one fused
    Pallas TPU kernel.  Takes / returns PyTorch-style NCHW float32."""
    slab_dtype = jnp.bfloat16 if use_bf16_mxu else jnp.float32
    identity = "wsc" not in params                       # MaxPool(1,s) shortcut

    x = jnp.transpose(x_nchw, (0, 2, 3, 1)).astype(jnp.float32)   # NCHW->NHWC
    N, H, W, Cin = x.shape
    D = params["w2"].shape[-1]
    Bt = int(images_per_step)
    assert N % Bt == 0, "batch must be divisible by images_per_step"

    kernel, Ho, Wo = _make_kernel(H, W, Cin, D, stride, Bt, slab_dtype, identity)
    Hp, Wp = H + 2, W + 2

    # Pre-pad once in the wrapper (fused with the transpose by XLA).
    xp = jnp.pad(x, ((0, 0), (1, 1), (1, 1), (0, 0)))

    # Fold BN scales into the adjacent conv weights (exact):
    #   conv1(bn1(x)) = im2col(pad(x)) @ (w1 * bn1_scale[cin]) + bias1_map
    #   bias1_map     = conv(bn1_bias on the interior, zero halo, w1)
    w1f = (params["w1"] * params["bn1_scale"].reshape(1, 1, Cin, 1)
           ).reshape(9 * Cin, D).astype(slab_dtype)
    bias_img = jnp.broadcast_to(params["bn1_bias"].reshape(1, 1, 1, Cin),
                                (1, H, W, Cin))
    bias1 = lax.conv_general_dilated(
        bias_img, params["w1"], (1, 1), ((1, 1), (1, 1)),
        dimension_numbers=("NHWC", "HWIO", "NHWC"),
        precision=lax.Precision.HIGHEST).reshape(H * W, D).astype(jnp.float32)

    w2f = (params["w2"] * params["bn2_scale"].reshape(1, 1, 1, D)
           ).reshape(9 * D, D).astype(slab_dtype)

    # Small per-channel vectors packed into one (3, D) operand:
    #   row 0: PReLU alpha, row 1: bn2 bias, row 2: shortcut-BN bias (or 0).
    bnsc_bias = (jnp.zeros((1, D), jnp.float32) if identity
                 else params["bnsc_bias"].reshape(1, D))
    vecs = jnp.concatenate([params["alpha"].reshape(1, D),
                            params["bn2_bias"].reshape(1, D),
                            bnsc_bias], axis=0).astype(jnp.float32)

    args = [xp, w1f, bias1, vecs, w2f,
            params["se_w1"].astype(jnp.float32),
            params["se_w2"].astype(jnp.float32)]
    in_specs = [pl.BlockSpec((Bt, Hp, Wp, Cin), lambda n: (n, 0, 0, 0))]
    in_specs += [_rep_spec(a.shape) for a in args[1:]]
    if not identity:
        wscf = (params["wsc"] * params["bnsc_scale"].reshape(1, D)
                ).astype(jnp.float32)
        args.append(wscf)
        in_specs.append(_rep_spec(wscf.shape))

    scratch = [
        pltpu.VMEM((Bt, Hp, Wp, D), jnp.float32),            # pad2 / out stage
        pltpu.VMEM((Bt * H * W, 9 * Cin), slab_dtype),       # conv1 im2col slab
        pltpu.VMEM((Bt * Ho * Wo, 9 * D), slab_dtype),       # conv2 im2col slab
    ]
    if stride != 1:
        scratch.append(pltpu.VMEM((Bt, Ho, Wp, D), jnp.float32))   # row band

    cp_kwargs = dict(dimension_semantics=("parallel",))      # megacore (v7x)
    if vmem_limit_bytes is not None:
        cp_kwargs["vmem_limit_bytes"] = vmem_limit_bytes

    out_flat = pl.pallas_call(
        kernel,
        out_shape=jax.ShapeDtypeStruct((N, Ho, Wo * D), jnp.float32),
        grid=(N // Bt,),                       # Bt images per grid step
        in_specs=in_specs,
        out_specs=pl.BlockSpec((Bt, Ho, Wo * D), lambda n: (n, 0, 0)),
        scratch_shapes=scratch,
        compiler_params=pltpu.CompilerParams(**cp_kwargs),
    )(*args)

    out = out_flat.reshape(N, Ho, Wo, D)                     # lane-dense -> NHWC
    return jnp.transpose(out, (0, 3, 1, 2))                  # NHWC -> NCHW


# ----------------------------------------------------------------------------
# Deterministic synthetic parameters (shapes match the PyTorch module)
# ----------------------------------------------------------------------------
def init_params(key, in_channel, depth, reduction=16):
    ks = jax.random.split(key, 8)
    eps = 1e-5

    def bn(k, c):
        k1, k2, k3, k4 = jax.random.split(k, 4)
        gamma = 1.0 + 0.1 * jax.random.normal(k1, (c,), jnp.float32)
        beta = 0.1 * jax.random.normal(k2, (c,), jnp.float32)
        mean = 0.1 * jax.random.normal(k3, (c,), jnp.float32)
        var = jnp.abs(jax.random.normal(k4, (c,), jnp.float32)) + 0.5
        scale = gamma / jnp.sqrt(var + eps)          # eval-mode fold
        bias = beta - mean * scale
        return scale.reshape(1, c), bias.reshape(1, c)

    dr = max(1, depth // reduction)
    bn1_s, bn1_b = bn(ks[0], in_channel)
    bn2_s, bn2_b = bn(ks[1], depth)
    # conv weights stored HWIO (3, 3, Cin, Cout)
    w1 = 0.1 * jax.random.normal(ks[2], (3, 3, in_channel, depth), jnp.float32)
    w2 = 0.1 * jax.random.normal(ks[3], (3, 3, depth, depth), jnp.float32)
    alpha = jnp.full((1, depth), 0.25, jnp.float32)   # PReLU init value
    se_w1 = 0.3 * jax.random.normal(ks[4], (depth, dr), jnp.float32)
    se_w2 = 0.3 * jax.random.normal(ks[5], (dr, depth), jnp.float32)

    p = dict(bn1_scale=bn1_s, bn1_bias=bn1_b, w1=w1, alpha=alpha,
             w2=w2, bn2_scale=bn2_s, bn2_bias=bn2_b,
             se_w1=se_w1, se_w2=se_w2)
    if in_channel != depth:            # projection shortcut: Conv1x1 + BN
        p["wsc"] = 0.1 * jax.random.normal(
            ks[6], (in_channel, depth), jnp.float32)
        p["bnsc_scale"], p["bnsc_bias"] = bn(ks[7], depth)
    return p


# ----------------------------------------------------------------------------
# Pure-JAX reference (for correctness check)
# ----------------------------------------------------------------------------
def reference(x_nchw, p, stride):
    x = jnp.transpose(x_nchw, (0, 2, 3, 1)).astype(jnp.float32)
    dn = ("NHWC", "HWIO", "NHWC")
    hp = lax.Precision.HIGHEST

    y = (x * p["bn1_scale"].reshape(1, 1, 1, -1)
         + p["bn1_bias"].reshape(1, 1, 1, -1))
    y = lax.conv_general_dilated(y, p["w1"], (1, 1), ((1, 1), (1, 1)),
                                 dimension_numbers=dn, precision=hp)
    y = jnp.where(y > 0, y, y * p["alpha"].reshape(1, 1, 1, -1))
    y = lax.conv_general_dilated(y, p["w2"], (stride, stride), ((1, 1), (1, 1)),
                                 dimension_numbers=dn, precision=hp)
    y = (y * p["bn2_scale"].reshape(1, 1, 1, -1)
         + p["bn2_bias"].reshape(1, 1, 1, -1))

    pooled = jnp.mean(y, axis=(1, 2))
    h = jnp.maximum(pooled @ p["se_w1"], 0.0)
    g = jax.nn.sigmoid(h @ p["se_w2"])
    res = y * g[:, None, None, :]

    if "wsc" in p:
        sc = lax.conv_general_dilated(x, p["wsc"][None, None],
                                      (stride, stride), "VALID",
                                      dimension_numbers=dn, precision=hp)
        sc = (sc * p["bnsc_scale"].reshape(1, 1, 1, -1)
              + p["bnsc_bias"].reshape(1, 1, 1, -1))
    else:
        sc = x[:, ::stride, ::stride, :]              # MaxPool2d(1, stride)
    return jnp.transpose(res + sc, (0, 3, 1, 2))


# ----------------------------------------------------------------------------
if __name__ == "__main__":
    # TODO(synk): BatchNorm is reproduced in eval mode (running statistics);
    # training-mode batch statistics are not implemented.
    N, H, W = 2, 16, 16
    key = jax.random.PRNGKey(0)
    jit_fwd = jax.jit(bottleneck_ir_se_forward,
                      static_argnames=("stride", "use_bf16_mxu",
                                       "images_per_step"))

    # 1) projection shortcut (Conv1x1 stride 2 + BN), f32 MXU path: the BN
    #    folds are exact, so this matches the XLA reference closely.
    in_channel, depth, stride = 16, 32, 2
    key, kx, kp = jax.random.split(key, 3)
    x = jax.random.normal(kx, (N, in_channel, H, W), jnp.float32)   # NCHW
    params = init_params(kp, in_channel, depth)
    out = jax.block_until_ready(jit_fwd(x, params, stride=stride,
                                        use_bf16_mxu=False))
    np.testing.assert_allclose(np.asarray(out),
                               np.asarray(reference(x, params, stride)),
                               rtol=5e-2, atol=5e-2)

    # 2) same case on the default bf16-MXU fast path (f32 accumulation);
    #    looser tolerance covers bf16 operand rounding only.
    out16 = jax.block_until_ready(jit_fwd(x, params, stride=stride))
    np.testing.assert_allclose(np.asarray(out16),
                               np.asarray(reference(x, params, stride)),
                               rtol=1e-1, atol=1.5e-1)

    # 3) identity shortcut (MaxPool2d(1,1)), stride 1, two images per grid
    #    step (batched-step path), bf16 MXU default.
    in_channel, depth, stride = 32, 32, 1
    key, kx, kp = jax.random.split(key, 3)
    x = jax.random.normal(kx, (N, in_channel, H, W), jnp.float32)
    params = init_params(kp, in_channel, depth)
    out = jax.block_until_ready(jit_fwd(x, params, stride=stride,
                                        images_per_step=2))
    np.testing.assert_allclose(np.asarray(out),
                               np.asarray(reference(x, params, stride)),
                               rtol=1e-1, atol=1.5e-1)

    print("KERNEL_OK")
</pallas_src>

<mosaic_0001>
module attributes {stable_mosaic.version = 11 : i64} {
  func.func @kernel(%arg0: i32, %arg1: memref<1x18x18x16xf32, #tpu.memory_space<vmem>>, %arg2: memref<144x32xf32, #tpu.memory_space<vmem>>, %arg3: memref<256x32xf32, #tpu.memory_space<vmem>>, %arg4: memref<3x32xf32, #tpu.memory_space<vmem>>, %arg5: memref<288x32xf32, #tpu.memory_space<vmem>>, %arg6: memref<32x2xf32, #tpu.memory_space<vmem>>, %arg7: memref<2x32xf32, #tpu.memory_space<vmem>>, %arg8: memref<16x32xf32, #tpu.memory_space<vmem>>, %arg9: memref<1x8x256xf32, #tpu.memory_space<vmem>>, %arg10: memref<1x18x18x32xf32, #tpu.memory_space<vmem>>, %arg11: memref<256x144xf32, #tpu.memory_space<vmem>>, %arg12: memref<64x288xf32, #tpu.memory_space<vmem>>, %arg13: memref<1x8x18x32xf32, #tpu.memory_space<vmem>>) attributes {dimension_semantics = [#tpu.dimension_semantics<parallel>], iteration_bounds = array<i64: 2>, scalar_prefetch = 0 : i64, scratch_operands = 4 : i64, tpu.core_type = #tpu.core_type<tc>, window_params = [{transform_indices = @transform_0, window_bounds = array<i64: 1, 18, 18, 16>}, {pipeline_mode = #tpu.pipeline_mode<synchronous>, transform_indices = @transform_1, window_bounds = array<i64: 144, 32>}, {pipeline_mode = #tpu.pipeline_mode<synchronous>, transform_indices = @transform_2, window_bounds = array<i64: 256, 32>}, {pipeline_mode = #tpu.pipeline_mode<synchronous>, transform_indices = @transform_3, window_bounds = array<i64: 3, 32>}, {pipeline_mode = #tpu.pipeline_mode<synchronous>, transform_indices = @transform_4, window_bounds = array<i64: 288, 32>}, {pipeline_mode = #tpu.pipeline_mode<synchronous>, transform_indices = @transform_5, window_bounds = array<i64: 32, 2>}, {pipeline_mode = #tpu.pipeline_mode<synchronous>, transform_indices = @transform_6, window_bounds = array<i64: 2, 32>}, {pipeline_mode = #tpu.pipeline_mode<synchronous>, transform_indices = @transform_7, window_bounds = array<i64: 16, 32>}, {transform_indices = @transform_8, window_bounds = array<i64: 1, 8, 256>}]} {
    %c0 = arith.constant 0 : index
    %c0_0 = arith.constant 0 : index
    %c0_1 = arith.constant 0 : index
    %c0_2 = arith.constant 0 : index
    %0 = vector.load %arg1[%c0, %c0_0, %c0_1, %c0_2] : memref<1x18x18x16xf32, #tpu.memory_space<vmem>>, vector<1x16x16x16xf32>
    %1 = vector.shape_cast %0 : vector<1x16x16x16xf32> to vector<256x16xf32>
    %c0_3 = arith.constant 0 : index
    %c0_4 = arith.constant 0 : index
    %c1 = arith.constant 1 : index
    %c0_5 = arith.constant 0 : index
    %2 = vector.load %arg1[%c0_3, %c0_4, %c1, %c0_5] : memref<1x18x18x16xf32, #tpu.memory_space<vmem>>, vector<1x16x16x16xf32>
    %3 = vector.shape_cast %2 : vector<1x16x16x16xf32> to vector<256x16xf32>
    %c0_6 = arith.constant 0 : index
    %c0_7 = arith.constant 0 : index
    %c2 = arith.constant 2 : index
    %c0_8 = arith.constant 0 : index
    %4 = vector.load %arg1[%c0_6, %c0_7, %c2, %c0_8] : memref<1x18x18x16xf32, #tpu.memory_space<vmem>>, vector<1x16x16x16xf32>
    %5 = vector.shape_cast %4 : vector<1x16x16x16xf32> to vector<256x16xf32>
    %c0_9 = arith.constant 0 : index
    %c1_10 = arith.constant 1 : index
    %c0_11 = arith.constant 0 : index
    %c0_12 = arith.constant 0 : index
    %6 = vector.load %arg1[%c0_9, %c1_10, %c0_11, %c0_12] : memref<1x18x18x16xf32, #tpu.memory_space<vmem>>, vector<1x16x16x16xf32>
    %7 = vector.shape_cast %6 : vector<1x16x16x16xf32> to vector<256x16xf32>
    %c0_13 = arith.constant 0 : index
    %c1_14 = arith.constant 1 : index
    %c1_15 = arith.constant 1 : index
    %c0_16 = arith.constant 0 : index
    %8 = vector.load %arg1[%c0_13, %c1_14, %c1_15, %c0_16] : memref<1x18x18x16xf32, #tpu.memory_space<vmem>>, vector<1x16x16x16xf32>
    %9 = vector.shape_cast %8 : vector<1x16x16x16xf32> to vector<256x16xf32>
    %c0_17 = arith.constant 0 : index
    %c1_18 = arith.constant 1 : index
    %c2_19 = arith.constant 2 : index
    %c0_20 = arith.constant 0 : index
    %10 = vector.load %arg1[%c0_17, %c1_18, %c2_19, %c0_20] : memref<1x18x18x16xf32, #tpu.memory_space<vmem>>, vector<1x16x16x16xf32>
    %11 = vector.shape_cast %10 : vector<1x16x16x16xf32> to vector<256x16xf32>
    %c0_21 = arith.constant 0 : index
    %c2_22 = arith.constant 2 : index
    %c0_23 = arith.constant 0 : index
    %c0_24 = arith.constant 0 : index
    %12 = vector.load %arg1[%c0_21, %c2_22, %c0_23, %c0_24] : memref<1x18x18x16xf32, #tpu.memory_space<vmem>>, vector<1x16x16x16xf32>
    %13 = vector.shape_cast %12 : vector<1x16x16x16xf32> to vector<256x16xf32>
    %c0_25 = arith.constant 0 : index
    %c2_26 = arith.constant 2 : index
    %c1_27 = arith.constant 1 : index
    %c0_28 = arith.constant 0 : index
    %14 = vector.load %arg1[%c0_25, %c2_26, %c1_27, %c0_28] : memref<1x18x18x16xf32, #tpu.memory_space<vmem>>, vector<1x16x16x16xf32>
    %15 = vector.shape_cast %14 : vector<1x16x16x16xf32> to vector<256x16xf32>
    %16 = tpu.concatenate %1, %3, %5, %7, %9, %11, %13, %15 in 1 : vector<256x16xf32>, vector<256x16xf32>, vector<256x16xf32>, vector<256x16xf32>, vector<256x16xf32>, vector<256x16xf32>, vector<256x16xf32>, vector<256x16xf32> -> vector<256x128xf32>
    %c0_29 = arith.constant 0 : index
    %c0_30 = arith.constant 0 : index
    %17 = vector.load %arg11[%c0_29, %c0_30] : memref<256x144xf32, #tpu.memory_space<vmem>>, vector<256x128xf32>
    tpu.vector_store %arg11[%c0_29, %c0_30], %16 {strides = array<i32>} : memref<256x144xf32, #tpu.memory_space<vmem>>, vector<256x128xf32>,
    %c0_31 = arith.constant 0 : index
    %c2_32 = arith.constant 2 : index
    %c2_33 = arith.constant 2 : index
    %c0_34 = arith.constant 0 : index
    %18 = vector.load %arg1[%c0_31, %c2_32, %c2_33, %c0_34] : memref<1x18x18x16xf32, #tpu.memory_space<vmem>>, vector<1x16x16x16xf32>
    %19 = vector.shape_cast %18 : vector<1x16x16x16xf32> to vector<256x16xf32>
    %c0_35 = arith.constant 0 : index
    %c128 = arith.constant 128 : index
    %20 = vector.load %arg11[%c0_35, %c128] : memref<256x144xf32, #tpu.memory_space<vmem>>, vector<256x16xf32>
    tpu.vector_store %arg11[%c0_35, %c128], %19 {strides = array<i32>} : memref<256x144xf32, #tpu.memory_space<vmem>>, vector<256x16xf32>,
    %c0_36 = arith.constant 0 : index
    %c0_37 = arith.constant 0 : index
    %21 = vector.load %arg11[%c0_36, %c0_37] : memref<256x144xf32, #tpu.memory_space<vmem>>, vector<256x144xf32>
    %c0_38 = arith.constant 0 : index
    %c0_39 = arith.constant 0 : index
    %22 = vector.load %arg2[%c0_38, %c0_39] : memref<144x32xf32, #tpu.memory_space<vmem>>, vector<144x32xf32>
    %cst = arith.constant dense<0.000000e+00> : vector<256x32xf32>
    %23 = tpu.matmul %21, %22, %cst {dimension_numbers = #tpu.dot_dimension_numbers<[1], [0], [0], [1], [0, 0, 1, 1], [], []>} : vector<256x144xf32>, vector<144x32xf32>, vector<256x32xf32> -> vector<256x32xf32>
    %24 = vector.shape_cast %23 : vector<256x32xf32> to vector<1x256x32xf32>
    %c0_40 = arith.constant 0 : index
    %c0_41 = arith.constant 0 : index
    %25 = vector.load %arg3[%c0_40, %c0_41] : memref<256x32xf32, #tpu.memory_space<vmem>>, vector<256x32xf32>
    %26 = vector.shape_cast %25 : vector<256x32xf32> to vector<1x256x32xf32>
    %27 = arith.addf %24, %26 : vector<1x256x32xf32>
    %cst_42 = arith.constant 0.000000e+00 : f32
    %28 = vector.broadcast %cst_42 : f32 to vector<1x256x32xf32>
    %29 = arith.cmpf ogt, %27, %28 : vector<1x256x32xf32>
    %c0_43 = arith.constant 0 : index
    %c0_44 = arith.constant 0 : index
    %30 = vector.load %arg4[%c0_43, %c0_44] : memref<3x32xf32, #tpu.memory_space<vmem>>, vector<1x32xf32>
    %31 = vector.shape_cast %30 : vector<1x32xf32> to vector<1x1x32xf32>
    %32 = vector.broadcast %31 : vector<1x1x32xf32> to vector<1x256x32xf32>
    %33 = arith.mulf %27, %32 : vector<1x256x32xf32>
    %34 = arith.select %29, %27, %33 : vector<1x256x32xi1>, vector<1x256x32xf32>
    %cst_45 = arith.constant 0.000000e+00 : f32
    %35 = vector.broadcast %cst_45 : f32 to vector<1x1x18x32xf32>
    %c0_46 = arith.constant 0 : index
    %c0_47 = arith.constant 0 : index
    %c0_48 = arith.constant 0 : index
    %c0_49 = arith.constant 0 : index
    %36 = vector.load %arg10[%c0_46, %c0_47, %c0_48, %c0_49] : memref<1x18x18x32xf32, #tpu.memory_space<vmem>>, vector<1x1x18x32xf32>
    tpu.vector_store %arg10[%c0_46, %c0_47, %c0_48, %c0_49], %35 {strides = array<i32>} : memref<1x18x18x32xf32, #tpu.memory_space<vmem>>, vector<1x1x18x32xf32>,
    %cst_50 = arith.constant 0.000000e+00 : f32
    %37 = vector.broadcast %cst_50 : f32 to vector<1x1x18x32xf32>
    %c0_51 = arith.constant 0 : index
    %c17 = arith.constant 17 : index
    %c0_52 = arith.constant 0 : index
    %c0_53 = arith.constant 0 : index
    %38 = vector.load %arg10[%c0_51, %c17, %c0_52, %c0_53] : memref<1x18x18x32xf32, #tpu.memory_space<vmem>>, vector<1x1x18x32xf32>
    tpu.vector_store %arg10[%c0_51, %c17, %c0_52, %c0_53], %37 {strides = array<i32>} : memref<1x18x18x32xf32, #tpu.memory_space<vmem>>, vector<1x1x18x32xf32>,
    %cst_54 = arith.constant 0.000000e+00 : f32
    %39 = vector.broadcast %cst_54 : f32 to vector<1x18x1x32xf32>
    %c0_55 = arith.constant 0 : index
    %c0_56 = arith.constant 0 : index
    %c0_57 = arith.constant 0 : index
    %c0_58 = arith.constant 0 : index
    %40 = vector.load %arg10[%c0_55, %c0_56, %c0_57, %c0_58] : memref<1x18x18x32xf32, #tpu.memory_space<vmem>>, vector<1x18x1x32xf32>
    tpu.vector_store %arg10[%c0_55, %c0_56, %c0_57, %c0_58], %39 {strides = array<i32>} : memref<1x18x18x32xf32, #tpu.memory_space<vmem>>, vector<1x18x1x32xf32>,
    %cst_59 = arith.constant 0.000000e+00 : f32
    %41 = vector.broadcast %cst_59 : f32 to vector<1x18x1x32xf32>
    %c0_60 = arith.constant 0 : index
    %c0_61 = arith.constant 0 : index
    %c17_62 = arith.constant 17 : index
    %c0_63 = arith.constant 0 : index
    %42 = vector.load %arg10[%c0_60, %c0_61, %c17_62, %c0_63] : memref<1x18x18x32xf32, #tpu.memory_space<vmem>>, vector<1x18x1x32xf32>
    tpu.vector_store %arg10[%c0_60, %c0_61, %c17_62, %c0_63], %41 {strides = array<i32>} : memref<1x18x18x32xf32, #tpu.memory_space<vmem>>, vector<1x18x1x32xf32>,
    %43 = vector.shape_cast %34 : vector<1x256x32xf32> to vector<1x16x16x32xf32>
    %c0_64 = arith.constant 0 : index
    %c1_65 = arith.constant 1 : index
    %c1_66 = arith.constant 1 : index
    %c0_67 = arith.constant 0 : index
    %44 = vector.load %arg10[%c0_64, %c1_65, %c1_66, %c0_67] : memref<1x18x18x32xf32, #tpu.memory_space<vmem>>, vector<1x16x16x32xf32>
    tpu.vector_store %arg10[%c0_64, %c1_65, %c1_66, %c0_67], %43 {strides = array<i32>} : memref<1x18x18x32xf32, #tpu.memory_space<vmem>>, vector<1x16x16x32xf32>,
    %c0_68 = arith.constant 0 : index
    %c0_69 = arith.constant 0 : index
    %c0_70 = arith.constant 0 : index
    %c0_71 = arith.constant 0 : index
    %45 = tpu.strided_load %arg10[%c0_68, %c0_69, %c0_70, %c0_71] {strides = array<i32: 1, 2, 1, 1>} : memref<1x18x18x32xf32, #tpu.memory_space<vmem>>, vector<1x8x18x32xf32>
    %c0_72 = arith.constant 0 : index
    %c0_73 = arith.constant 0 : index
    %c0_74 = arith.constant 0 : index
    %c0_75 = arith.constant 0 : index
    %46 = vector.load %arg13[%c0_72, %c0_73, %c0_74, %c0_75] : memref<1x8x18x32xf32, #tpu.memory_space<vmem>>, vector<1x8x18x32xf32>
    tpu.vector_store %arg13[%c0_72, %c0_73, %c0_74, %c0_75], %45 {strides = array<i32>} : memref<1x8x18x32xf32, #tpu.memory_space<vmem>>, vector<1x8x18x32xf32>,
    %c0_76 = arith.constant 0 : index
    %c0_77 = arith.constant 0 : index
    %c0_78 = arith.constant 0 : index
    %c0_79 = arith.constant 0 : index
    %47 = tpu.strided_load %arg13[%c0_76, %c0_77, %c0_78, %c0_79] {strides = array<i32: 1, 1, 2, 1>} : memref<1x8x18x32xf32, #tpu.memory_space<vmem>>, vector<1x8x8x32xf32>
    %48 = vector.shape_cast %47 : vector<1x8x8x32xf32> to vector<64x32xf32>
    %c0_80 = arith.constant 0 : index
    %c0_81 = arith.constant 0 : index
    %c1_82 = arith.constant 1 : index
    %c0_83 = arith.constant 0 : index
    %49 = tpu.strided_load %arg13[%c0_80, %c0_81, %c1_82, %c0_83] {strides = array<i32: 1, 1, 2, 1>} : memref<1x8x18x32xf32, #tpu.memory_space<vmem>>, vector<1x8x8x32xf32>
    %50 = vector.shape_cast %49 : vector<1x8x8x32xf32> to vector<64x32xf32>
    %c0_84 = arith.constant 0 : index
    %c0_85 = arith.constant 0 : index
    %c2_86 = arith.constant 2 : index
    %c0_87 = arith.constant 0 : index
    %51 = tpu.strided_load %arg13[%c0_84, %c0_85, %c2_86, %c0_87] {strides = array<i32: 1, 1, 2, 1>} : memref<1x8x18x32xf32, #tpu.memory_space<vmem>>, vector<1x8x8x32xf32>
    %52 = vector.shape_cast %51 : vector<1x8x8x32xf32> to vector<64x32xf32>
    %c0_88 = arith.constant 0 : index
    %c1_89 = arith.constant 1 : index
    %c0_90 = arith.constant 0 : index
    %c0_91 = arith.constant 0 : index
    %53 = tpu.strided_load %arg10[%c0_88, %c1_89, %c0_90, %c0_91] {strides = array<i32: 1, 2, 1, 1>} : memref<1x18x18x32xf32, #tpu.memory_space<vmem>>, vector<1x8x18x32xf32>
    %c0_92 = arith.constant 0 : index
    %c0_93 = arith.constant 0 : index
    %c0_94 = arith.constant 0 : index
    %c0_95 = arith.constant 0 : index
    %54 = vector.load %arg13[%c0_92, %c0_93, %c0_94, %c0_95] : memref<1x8x18x32xf32, #tpu.memory_space<vmem>>, vector<1x8x18x32xf32>
    tpu.vector_store %arg13[%c0_92, %c0_93, %c0_94, %c0_95], %53 {strides = array<i32>} : memref<1x8x18x32xf32, #tpu.memory_space<vmem>>, vector<1x8x18x32xf32>,
    %c0_96 = arith.constant 0 : index
    %c0_97 = arith.constant 0 : index
    %c0_98 = arith.constant 0 : index
    %c0_99 = arith.constant 0 : index
    %55 = tpu.strided_load %arg13[%c0_96, %c0_97, %c0_98, %c0_99] {strides = array<i32: 1, 1, 2, 1>} : memref<1x8x18x32xf32, #tpu.memory_space<vmem>>, vector<1x8x8x32xf32>
    %56 = vector.shape_cast %55 : vector<1x8x8x32xf32> to vector<64x32xf32>
    %c0_100 = arith.constant 0 : index
    %c0_101 = arith.constant 0 : index
    %c1_102 = arith.constant 1 : index
    %c0_103 = arith.constant 0 : index
    %57 = tpu.strided_load %arg13[%c0_100, %c0_101, %c1_102, %c0_103] {strides = array<i32: 1, 1, 2, 1>} : memref<1x8x18x32xf32, #tpu.memory_space<vmem>>, vector<1x8x8x32xf32>
    %58 = vector.shape_cast %57 : vector<1x8x8x32xf32> to vector<64x32xf32>
    %c0_104 = arith.constant 0 : index
    %c0_105 = arith.constant 0 : index
    %c2_106 = arith.constant 2 : index
    %c0_107 = arith.constant 0 : index
    %59 = tpu.strided_load %arg13[%c0_104, %c0_105, %c2_106, %c0_107] {strides = array<i32: 1, 1, 2, 1>} : memref<1x8x18x32xf32, #tpu.memory_space<vmem>>, vector<1x8x8x32xf32>
    %60 = vector.shape_cast %59 : vector<1x8x8x32xf32> to vector<64x32xf32>
    %c0_108 = arith.constant 0 : index
    %c2_109 = arith.constant 2 : index
    %c0_110 = arith.constant 0 : index
    %c0_111 = arith.constant 0 : index
    %61 = tpu.strided_load %arg10[%c0_108, %c2_109, %c0_110, %c0_111] {strides = array<i32: 1, 2, 1, 1>} : memref<1x18x18x32xf32, #tpu.memory_space<vmem>>, vector<1x8x18x32xf32>
    %c0_112 = arith.constant 0 : index
    %c0_113 = arith.constant 0 : index
    %c0_114 = arith.constant 0 : index
    %c0_115 = arith.constant 0 : index
    %62 = vector.load %arg13[%c0_112, %c0_113, %c0_114, %c0_115] : memref<1x8x18x32xf32, #tpu.memory_space<vmem>>, vector<1x8x18x32xf32>
    tpu.vector_store %arg13[%c0_112, %c0_113, %c0_114, %c0_115], %61 {strides = array<i32>} : memref<1x8x18x32xf32, #tpu.memory_space<vmem>>, vector<1x8x18x32xf32>,
    %c0_116 = arith.constant 0 : index
    %c0_117 = arith.constant 0 : index
    %c0_118 = arith.constant 0 : index
    %c0_119 = arith.constant 0 : index
    %63 = tpu.strided_load %arg13[%c0_116, %c0_117, %c0_118, %c0_119] {strides = array<i32: 1, 1, 2, 1>} : memref<1x8x18x32xf32, #tpu.memory_space<vmem>>, vector<1x8x8x32xf32>
    %64 = vector.shape_cast %63 : vector<1x8x8x32xf32> to vector<64x32xf32>
    %c0_120 = arith.constant 0 : index
    %c0_121 = arith.constant 0 : index
    %c1_122 = arith.constant 1 : index
    %c0_123 = arith.constant 0 : index
    %65 = tpu.strided_load %arg13[%c0_120, %c0_121, %c1_122, %c0_123] {strides = array<i32: 1, 1, 2, 1>} : memref<1x8x18x32xf32, #tpu.memory_space<vmem>>, vector<1x8x8x32xf32>
    %66 = vector.shape_cast %65 : vector<1x8x8x32xf32> to vector<64x32xf32>
    %c0_124 = arith.constant 0 : index
    %c0_125 = arith.constant 0 : index
    %c2_126 = arith.constant 2 : index
    %c0_127 = arith.constant 0 : index
    %67 = tpu.strided_load %arg13[%c0_124, %c0_125, %c2_126, %c0_127] {strides = array<i32: 1, 1, 2, 1>} : memref<1x8x18x32xf32, #tpu.memory_space<vmem>>, vector<1x8x8x32xf32>
    %68 = vector.shape_cast %67 : vector<1x8x8x32xf32> to vector<64x32xf32>
    %69 = tpu.concatenate %48, %50, %52, %56 in 1 : vector<64x32xf32>, vector<64x32xf32>, vector<64x32xf32>, vector<64x32xf32> -> vector<64x128xf32>
    %c0_128 = arith.constant 0 : index
    %c0_129 = arith.constant 0 : index
    %70 = vector.load %arg12[%c0_128, %c0_129] : memref<64x288xf32, #tpu.memory_space<vmem>>, vector<64x128xf32>
    tpu.vector_store %arg12[%c0_128, %c0_129], %69 {strides = array<i32>} : memref<64x288xf32, #tpu.memory_space<vmem>>, vector<64x128xf32>,
    %71 = tpu.concatenate %58, %60, %64, %66 in 1 : vector<64x32xf32>, vector<64x32xf32>, vector<64x32xf32>, vector<64x32xf32> -> vector<64x128xf32>
    %c0_130 = arith.constant 0 : index
    %c128_131 = arith.constant 128 : index
    %72 = vector.load %arg12[%c0_130, %c128_131] : memref<64x288xf32, #tpu.memory_space<vmem>>, vector<64x128xf32>
    tpu.vector_store %arg12[%c0_130, %c128_131], %71 {strides = array<i32>} : memref<64x288xf32, #tpu.memory_space<vmem>>, vector<64x128xf32>,
    %c0_132 = arith.constant 0 : index
    %c256 = arith.constant 256 : index
    %73 = vector.load %arg12[%c0_132, %c256] : memref<64x288xf32, #tpu.memory_space<vmem>>, vector<64x32xf32>
    tpu.vector_store %arg12[%c0_132, %c256], %68 {strides = array<i32>} : memref<64x288xf32, #tpu.memory_space<vmem>>, vector<64x32xf32>,
    %c0_133 = arith.constant 0 : index
    %c0_134 = arith.constant 0 : index
    %74 = vector.load %arg12[%c0_133, %c0_134] : memref<64x288xf32, #tpu.memory_space<vmem>>, vector<64x288xf32>
    %c0_135 = arith.constant 0 : index
    %c0_136 = arith.constant 0 : index
    %75 = vector.load %arg5[%c0_135, %c0_136] : memref<288x32xf32, #tpu.memory_space<vmem>>, vector<288x32xf32>
    %cst_137 = arith.constant dense<0.000000e+00> : vector<64x32xf32>
    %76 = tpu.matmul %74, %75, %cst_137 {dimension_numbers = #tpu.dot_dimension_numbers<[1], [0], [0], [1], [0, 0, 1, 1], [], []>} : vector<64x288xf32>, vector<288x32xf32>, vector<64x32xf32> -> vector<64x32xf32>
    %77 = vector.shape_cast %76 : vector<64x32xf32> to vector<1x64x32xf32>
    %c1_138 = arith.constant 1 : index
    %c0_139 = arith.constant 0 : index
    %78 = vector.load %arg4[%c1_138, %c0_139] : memref<3x32xf32, #tpu.memory_space<vmem>>, vector<1x32xf32>
    %79 = vector.shape_cast %78 : vector<1x32xf32> to vector<1x1x32xf32>
    %80 = vector.broadcast %79 : vector<1x1x32xf32> to vector<1x64x32xf32>
    %81 = arith.addf %77, %80 : vector<1x64x32xf32>
    %cst_140 = arith.constant dense<0.000000e+00> : vector<1x32xf32>
    %82 = vector.multi_reduction <add>, %81, %cst_140 [1] : vector<1x64x32xf32> to vector<1x32xf32>
    %cst_141 = arith.constant 6.400000e+01 : f32
    %83 = vector.broadcast %cst_141 : f32 to vector<1x32xf32>
    %84 = arith.divf %82, %83 : vector<1x32xf32>
    %c0_142 = arith.constant 0 : index
    %c0_143 = arith.constant 0 : index
    %85 = vector.load %arg6[%c0_142, %c0_143] : memref<32x2xf32, #tpu.memory_space<vmem>>, vector<32x2xf32>
    %cst_144 = arith.constant dense<0.000000e+00> : vector<1x2xf32>
    %86 = tpu.matmul %84, %85, %cst_144 {dimension_numbers = #tpu.dot_dimension_numbers<[1], [0], [0], [1], [0, 0, 1, 1], [], []>} : vector<1x32xf32>, vector<32x2xf32>, vector<1x2xf32> -> vector<1x2xf32>
    %cst_145 = arith.constant 0.000000e+00 : f32
    %87 = vector.broadcast %cst_145 : f32 to vector<1x2xf32>
    %88 = arith.maximumf %86, %87 : vector<1x2xf32>
    %c0_146 = arith.constant 0 : index
    %c0_147 = arith.constant 0 : index
    %89 = vector.load %arg7[%c0_146, %c0_147] : memref<2x32xf32, #tpu.memory_space<vmem>>, vector<2x32xf32>
    %cst_148 = arith.constant dense<0.000000e+00> : vector<1x32xf32>
    %90 = tpu.matmul %88, %89, %cst_148 {dimension_numbers = #tpu.dot_dimension_numbers<[1], [0], [0], [1], [0, 0, 1, 1], [], []>} : vector<1x2xf32>, vector<2x32xf32>, vector<1x32xf32> -> vector<1x32xf32>
    %cst_149 = arith.constant 0.000000e+00 : f32
    %91 = vector.broadcast %cst_149 : f32 to vector<1x32xf32>
    %92 = arith.subf %91, %90 : vector<1x32xf32>
    %93 = math.exp %92 : vector<1x32xf32>
    %cst_150 = arith.constant 1.000000e+00 : f32
    %94 = vector.broadcast %cst_150 : f32 to vector<1x32xf32>
    %95 = arith.addf %94, %93 : vector<1x32xf32>
    %cst_151 = arith.constant 1.000000e+00 : f32
    %96 = vector.broadcast %cst_151 : f32 to vector<1x32xf32>
    %97 = arith.divf %96, %95 : vector<1x32xf32>
    %98 = vector.shape_cast %97 : vector<1x32xf32> to vector<1x1x32xf32>
    %99 = vector.broadcast %98 : vector<1x1x32xf32> to vector<1x64x32xf32>
    %100 = arith.mulf %81, %99 : vector<1x64x32xf32>
    %c0_152 = arith.constant 0 : index
    %c1_153 = arith.constant 1 : index
    %c1_154 = arith.constant 1 : index
    %c0_155 = arith.constant 0 : index
    %101 = tpu.strided_load %arg1[%c0_152, %c1_153, %c1_154, %c0_155] {strides = array<i32: 1, 2, 2, 1>} : memref<1x18x18x16xf32, #tpu.memory_space<vmem>>, vector<1x8x8x16xf32>
    %102 = vector.shape_cast %101 : vector<1x8x8x16xf32> to vector<64x16xf32>
    %c0_156 = arith.constant 0 : index
    %c0_157 = arith.constant 0 : index
    %103 = vector.load %arg8[%c0_156, %c0_157] : memref<16x32xf32, #tpu.memory_space<vmem>>, vector<16x32xf32>
    %cst_158 = arith.constant dense<0.000000e+00> : vector<64x32xf32>
    %104 = tpu.matmul %102, %103, %cst_158 {dimension_numbers = #tpu.dot_dimension_numbers<[1], [0], [0], [1], [0, 0, 1, 1], [], []>} : vector<64x16xf32>, vector<16x32xf32>, vector<64x32xf32> -> vector<64x32xf32>
    %c2_159 = arith.constant 2 : index
    %c0_160 = arith.constant 0 : index
    %105 = vector.load %arg4[%c2_159, %c0_160] : memref<3x32xf32, #tpu.memory_space<vmem>>, vector<1x32xf32>
    %106 = vector.broadcast %105 : vector<1x32xf32> to vector<64x32xf32>
    %107 = arith.addf %104, %106 : vector<64x32xf32>
    %108 = vector.shape_cast %107 : vector<64x32xf32> to vector<1x64x32xf32>
    %109 = arith.addf %100, %108 : vector<1x64x32xf32>
    %110 = vector.shape_cast %109 : vector<1x64x32xf32> to vector<1x8x8x32xf32>
    %c0_161 = arith.constant 0 : index
    %c1_162 = arith.constant 1 : index
    %c1_163 = arith.constant 1 : index
    %c0_164 = arith.constant 0 : index
    %111 = vector.load %arg10[%c0_161, %c1_162, %c1_163, %c0_164] : memref<1x18x18x32xf32, #tpu.memory_space<vmem>>, vector<1x8x8x32xf32>
    tpu.vector_store %arg10[%c0_161, %c1_162, %c1_163, %c0_164], %110 {strides = array<i32>} : memref<1x18x18x32xf32, #tpu.memory_space<vmem>>, vector<1x8x8x32xf32>,
    %c0_165 = arith.constant 0 : index
    %c1_166 = arith.constant 1 : index
    %c1_167 = arith.constant 1 : index
    %c0_168 = arith.constant 0 : index
    %112 = vector.load %arg10[%c0_165, %c1_166, %c1_167, %c0_168] : memref<1x18x18x32xf32, #tpu.memory_space<vmem>>, vector<1x8x1x32xf32>
    %113 = vector.shape_cast %112 : vector<1x8x1x32xf32> to vector<1x8x32xf32>
    %c0_169 = arith.constant 0 : index
    %c1_170 = arith.constant 1 : index
    %c2_171 = arith.constant 2 : index
    %c0_172 = arith.constant 0 : index
    %114 = vector.load %arg10[%c0_169, %c1_170, %c2_171, %c0_172] : memref<1x18x18x32xf32, #tpu.memory_space<vmem>>, vector<1x8x1x32xf32>
    %115 = vector.shape_cast %114 : vector<1x8x1x32xf32> to vector<1x8x32xf32>
    %c0_173 = arith.constant 0 : index
    %c1_174 = arith.constant 1 : index
    %c3 = arith.constant 3 : index
    %c0_175 = arith.constant 0 : index
    %116 = vector.load %arg10[%c0_173, %c1_174, %c3, %c0_175] : memref<1x18x18x32xf32, #tpu.memory_space<vmem>>, vector<1x8x1x32xf32>
    %117 = vector.shape_cast %116 : vector<1x8x1x32xf32> to vector<1x8x32xf32>
    %c0_176 = arith.constant 0 : index
    %c1_177 = arith.constant 1 : index
    %c4 = arith.constant 4 : index
    %c0_178 = arith.constant 0 : index
    %118 = vector.load %arg10[%c0_176, %c1_177, %c4, %c0_178] : memref<1x18x18x32xf32, #tpu.memory_space<vmem>>, vector<1x8x1x32xf32>
    %119 = vector.shape_cast %118 : vector<1x8x1x32xf32> to vector<1x8x32xf32>
    %120 = tpu.concatenate %113, %115, %117, %119 in 2 : vector<1x8x32xf32>, vector<1x8x32xf32>, vector<1x8x32xf32>, vector<1x8x32xf32> -> vector<1x8x128xf32>
    %c0_179 = arith.constant 0 : index
    %c0_180 = arith.constant 0 : index
    %c0_181 = arith.constant 0 : index
    %121 = vector.load %arg9[%c0_179, %c0_180, %c0_181] : memref<1x8x256xf32, #tpu.memory_space<vmem>>, vector<1x8x128xf32>
    tpu.vector_store %arg9[%c0_179, %c0_180, %c0_181], %120 {strides = array<i32>} : memref<1x8x256xf32, #tpu.memory_space<vmem>>, vector<1x8x128xf32>,
    %c0_182 = arith.constant 0 : index
    %c1_183 = arith.constant 1 : index
    %c5 = arith.constant 5 : index
    %c0_184 = arith.constant 0 : index
    %122 = vector.load %arg10[%c0_182, %c1_183, %c5, %c0_184] : memref<1x18x18x32xf32, #tpu.memory_space<vmem>>, vector<1x8x1x32xf32>
    %123 = vector.shape_cast %122 : vector<1x8x1x32xf32> to vector<1x8x32xf32>
    %c0_185 = arith.constant 0 : index
    %c1_186 = arith.constant 1 : index
    %c6 = arith.constant 6 : index
    %c0_187 = arith.constant 0 : index
    %124 = vector.load %arg10[%c0_185, %c1_186, %c6, %c0_187] : memref<1x18x18x32xf32, #tpu.memory_space<vmem>>, vector<1x8x1x32xf32>
    %125 = vector.shape_cast %124 : vector<1x8x1x32xf32> to vector<1x8x32xf32>
    %c0_188 = arith.constant 0 : index
    %c1_189 = arith.constant 1 : index
    %c7 = arith.constant 7 : index
    %c0_190 = arith.constant 0 : index
    %126 = vector.load %arg10[%c0_188, %c1_189, %c7, %c0_190] : memref<1x18x18x32xf32, #tpu.memory_space<vmem>>, vector<1x8x1x32xf32>
    %127 = vector.shape_cast %126 : vector<1x8x1x32xf32> to vector<1x8x32xf32>
    %c0_191 = arith.constant 0 : index
    %c1_192 = arith.constant 1 : index
    %c8 = arith.constant 8 : index
    %c0_193 = arith.constant 0 : index
    %128 = vector.load %arg10[%c0_191, %c1_192, %c8, %c0_193] : memref<1x18x18x32xf32, #tpu.memory_space<vmem>>, vector<1x8x1x32xf32>
    %129 = vector.shape_cast %128 : vector<1x8x1x32xf32> to vector<1x8x32xf32>
    %130 = tpu.concatenate %123, %125, %127, %129 in 2 : vector<1x8x32xf32>, vector<1x8x32xf32>, vector<1x8x32xf32>, vector<1x8x32xf32> -> vector<1x8x128xf32>
    %c0_194 = arith.constant 0 : index
    %c0_195 = arith.constant 0 : index
    %c128_196 = arith.constant 128 : index
    %131 = vector.load %arg9[%c0_194, %c0_195, %c128_196] : memref<1x8x256xf32, #tpu.memory_space<vmem>>, vector<1x8x128xf32>
    tpu.vector_store %arg9[%c0_194, %c0_195, %c128_196], %130 {strides = array<i32>} : memref<1x8x256xf32, #tpu.memory_space<vmem>>, vector<1x8x128xf32>,
    return
  }
  func.func @transform_0(%arg0: i32) -> (i32, i32, i32, i32) {
    %c0_i32 = arith.constant 0 : i32
    %c0_i32_0 = arith.constant 0 : i32
    %c0_i32_1 = arith.constant 0 : i32
    %c0_i32_2 = arith.constant 0 : i32
    return %arg0, %c0_i32, %c0_i32_0, %c0_i32_1 : i32, i32, i32, i32
  }
  func.func @transform_1(%arg0: i32) -> (i32, i32) {
    %c0_i32 = arith.constant 0 : i32
    %c0_i32_0 = arith.constant 0 : i32
    %c0_i32_1 = arith.constant 0 : i32
    return %c0_i32, %c0_i32_0 : i32, i32
  }
  func.func @transform_2(%arg0: i32) -> (i32, i32) {
    %c0_i32 = arith.constant 0 : i32
    %c0_i32_0 = arith.constant 0 : i32
    %c0_i32_1 = arith.constant 0 : i32
    return %c0_i32, %c0_i32_0 : i32, i32
  }
  func.func @transform_3(%arg0: i32) -> (i32, i32) {
    %c0_i32 = arith.constant 0 : i32
    %c0_i32_0 = arith.constant 0 : i32
    %c0_i32_1 = arith.constant 0 : i32
    return %c0_i32, %c0_i32_0 : i32, i32
  }
  func.func @transform_4(%arg0: i32) -> (i32, i32) {
    %c0_i32 = arith.constant 0 : i32
    %c0_i32_0 = arith.constant 0 : i32
    %c0_i32_1 = arith.constant 0 : i32
    return %c0_i32, %c0_i32_0 : i32, i32
  }
  func.func @transform_5(%arg0: i32) -> (i32, i32) {
    %c0_i32 = arith.constant 0 : i32
    %c0_i32_0 = arith.constant 0 : i32
    %c0_i32_1 = arith.constant 0 : i32
    return %c0_i32, %c0_i32_0 : i32, i32
  }
  func.func @transform_6(%arg0: i32) -> (i32, i32) {
    %c0_i32 = arith.constant 0 : i32
    %c0_i32_0 = arith.constant 0 : i32
    %c0_i32_1 = arith.constant 0 : i32
    return %c0_i32, %c0_i32_0 : i32, i32
  }
  func.func @transform_7(%arg0: i32) -> (i32, i32) {
    %c0_i32 = arith.constant 0 : i32
    %c0_i32_0 = arith.constant 0 : i32
    %c0_i32_1 = arith.constant 0 : i32
    return %c0_i32, %c0_i32_0 : i32, i32
  }
  func.func @transform_8(%arg0: i32) -> (i32, i32, i32) {
    %c0_i32 = arith.constant 0 : i32
    %c0_i32_0 = arith.constant 0 : i32
    %c0_i32_1 = arith.constant 0 : i32
    return %arg0, %c0_i32, %c0_i32_0 : i32, i32, i32
  }
}

</mosaic_0001>

<bundles_post_ra>
// kernel: bottleneck_ir_se_forward.1
= control target key start
LH: loop header
LB: loop body
LE: loop exit
PB: predicated region body
PF: predicated region fallthrough
CT: control target
= control target key end

     0   :  { %s4076_s27 = smov 0   ;;  %s6285_s0 = inlined_call_operand.vmem [shape: f32[2,18,18,16], index: 0, kind: input, shape index: {}]   ;;  %s6286_s1 = inlined_call_operand.vmem [shape: f32[144,32], index: 1, kind: input, shape index: {}]   ;;  %s6287_s2 = inlined_call_operand.vmem [shape: f32[256,32], index: 2, kind: input, shape index: {}]   ;;  %s6288_s3 = inlined_call_operand.vmem [shape: f32[3,32], index: 3, kind: input, shape index: {}]   ;;  %s6289_s4 = inlined_call_operand.vmem [shape: f32[288,32], index: 4, kind: input, shape index: {}]   ;;  %s6290_s5 = inlined_call_operand.vmem [shape: f32[32,2], index: 5, kind: input, shape index: {}]   ;;  %s6291_s6 = inlined_call_operand.vmem [shape: f32[2,32], index: 6, kind: input, shape index: {}]   ;;  %s6292_s7 = inlined_call_operand.vmem [shape: f32[16,32], index: 7, kind: input, shape index: {}]   ;;  %s6293_s8 = inlined_call_operand.vmem [shape: f32[2,8,256], index: 8, kind: output, shape index: {}]  }
   0x1 LB: > { %s3705_s28 = sadd.s32 4294967295, %s4020_s27   ;;  %p3709_p0 = scmp.ge.s32.totalorder %s4020_s27, 1  ;;  %s4020_s27 = sphi %s4076_s27, %s18_s27  }
   0x2   : > { %p262_p1 = scmp.lt.s32.totalorder %s4020_s27, 3 }
   0x4   : > { %p263_p2 = pnand %p3709_p0, %p262_p1 }
   0x5   : > { %p296_p3 = scmp.lt.s32.totalorder (!%p263_p2), %s3705_s28, 1  ;;  %s4022_s11 = smov (!%p263_p2), 80  }
   0x6   : > { %266 = sbr.rel (%p263_p2) target bundleno = 1648 (0x670), region = 52  ;;  %s4023_s12 = smov (!%p263_p2), 48  }
   0x7   : > { %s4024_s13 = smov (!%p263_p2), 16   ;;  %s4025_s14 = smov (!%p263_p2), 96  }
   0x8   : > { %s4026_s15 = smov (!%p263_p2), 64   ;;  %s4027_s16 = smov (!%p263_p2), 32  }
   0x9   : > { %s4028_s17 = smov (!%p263_p2), 112  }
   0xb   : > { %s6295_s28 = smov (!%p296_p3, %s3705_s28), 1  ;;  %v1866_v19 = vld [vmem:[%s6286_s1 + $0x78] sm:$0xff]  ;;  %v1865_v21 = vld [vmem:[%s6286_s1 + $0x70] sm:$0xff]  ;;  %v1864_v22 = vld [vmem:[%s6286_s1 + $0x68] sm:$0xff]  ;;  %vm1460_vm0 = vcmask 130048   ;;  %vm1493_vm1 = vcmask 261120  }
   0xc   : > { %s3985_s29 = smul.u32 432, %s6295_s28  ;;  %1965 = vmatpush.msra.mxu0 %v1866_v19  ;;  %3967 = vmatpush.msra.mxu2 %v1866_v19  ;;  %v1863_v23 = vld [vmem:[%s6286_s1 + $0x60] sm:$0xff]  ;;  %v1862_v25 = vld [vmem:[%s6286_s1 + $0x58] sm:$0xff]  ;;  %v1861_v26 = vld [vmem:[%s6286_s1 + $0x50] sm:$0xff]  ;;  %vm1526_vm2 = vcmask 392192   ;;  %vm1559_vm3 = vcmask 523264  }
   0xd   : > { %v1860_v27 = vld [vmem:[%s6286_s1 + $0x48] sm:$0xff]  ;;  %v1859_v28 = vld [vmem:[%s6286_s1 + $0x40] sm:$0xff]  ;;  %v1858_v31 = vld [vmem:[%s6286_s1 + $0x38] sm:$0xff]  ;;  %vm1592_vm4 = vcmask 654336   ;;  %vm1625_vm5 = vcmask 785408   ;;  %vm1658_vm6 = vcmask 916480  }
   0xe   : > { %s4090_s10 = scalar_lea.vmem %s6285_s0, %s3985_s29  ;;  %1966 = vmatpush.msra.mxu0 %v1865_v21  ;;  %3968 = vmatpush.msra.mxu2 %v1865_v21  ;;  %v1857_v33 = vld [vmem:[%s6286_s1 + $0x30] sm:$0xff]  ;;  %v1856_v35 = vld [vmem:[%s6286_s1 + $0x28] sm:$0xff]  ;;  %v1855_v37 = vld [vmem:[%s6286_s1 + $0x20] sm:$0xff]  ;;  %vm2361_vm7 = vcmask 253952   ;;  %vm2355_vm9 = vcmask 254976  }
   0xf   : > { %v3777_v0 = vld [vmem:[%s4090_s10 + $0x1a] sm:$0xff]  ;;  %v4102_v3 = vld [vmem:[%s4090_s10 + $0x30] sm:$0xff]  ;;  %v370_v5 = vld [vmem:[%s4090_s10 + $0x2] sm:$0xff] }
  0x10   : > { %v4094_v1 = vld [vmem:[%s4090_s10 + $0x18] sm:$0xff]  ;;  %v338_v2 = vld [vmem:[%s4090_s10 + $0x1] sm:$0xff]  ;;  %1108 = vrot.lane.b32.xlu2 %v3777_v0, %s4022_s11  ;;  %v371_v6 = vld [vmem:[%s4090_s10 + $0xa] sm:$0xff]  ;;  %1967 = vmatpush.msra.mxu0 %v1864_v22 }
  0x11   : > { %852 = vrot.lane.b32.xlu1 %v4094_v1, %s4023_s12  ;;  %596 = vrot.lane.b32.xlu0 %v338_v2, %s4024_s13  ;;  %v3745_v4 = vld [vmem:[%s4090_s10 + $0x19] sm:$0xff]  ;;  %v339_v7 = vld [vmem:[%s4090_s10 + $0x9] sm:$0xff] }
  0x12   : > { %v3841_v8 = vld [vmem:[%s4090_s10 + $0x31] sm:$0xff]  ;;  %v3778_v9 = vld [vmem:[%s4090_s10 + $0x22] sm:$0xff]  ;;  %v4126_v12 = vld [vmem:[%s4090_s10 + $0x39] sm:$0xff]  ;;  %3969 = vmatpush.msra.mxu2 %v1864_v22  ;;  %1968 = vmatpush.msra.mxu0 %v1863_v23 }
  0x13   : > { %v3746_v10 = vld [vmem:[%s4090_s10 + $0x21] sm:$0xff]  ;;  %v4129_v13 = vld [vmem:[%s4090_s10 + $0x38] sm:$0xff]  ;;  %v4141_v14 = vld [vmem:[%s4090_s10 + $0x49] sm:$0xff] }
  0x14   : > { %v4119_v11 = vld [vmem:[%s4090_s10 + $0x20] sm:$0xff]  ;;  %v4144_v15 = vld [vmem:[%s4090_s10 + $0x48] sm:$0xff]  ;;  %v3779_v16 = vld [vmem:[%s4090_s10 + $0x32] sm:$0xff]  ;;  %3970 = vmatpush.msra.mxu2 %v1863_v23  ;;  %1969 = vmatpush.msra.mxu0 %v1862_v25 }
  0x15   : > { %v4157_v17 = vld [vmem:[%s4090_s10 + $0x50] sm:$0xff]  ;;  %v4160_v18 = vld [vmem:[%s4090_s10 + $0x3a] sm:$0xff]  ;;  %1755 = vst.msk [vmem:[#allocation3 + $0x8] sm:$0xff] %vm1460_vm0, %v3779_v16  ;;  %v4235_v34 = vld [vmem:[%s4090_s10 + $0x62] sm:$0xff] }
  0x16   : > { %v4172_v20 = vld [vmem:[%s4090_s10 + $0x51] sm:$0xff]  ;;  %1970 = vmatpush.msra.mxu0 %v1861_v26  ;;  %3971 = vmatpush.msra.mxu2 %v1862_v25  ;;  %1756 = vst.msk [vmem:[#allocation3 + $0x18] sm:$0xff] %vm1460_vm0, %v4160_v18  ;;  %v4212_v29 = vld [vmem:[%s4090_s10 + $0x61] sm:$0xff]  ;;  %v4274_v46 = vld [vmem:[%s4090_s10 + $0x69] sm:$0xff] }
  0x17   : > { %v4188_v24 = vld [vmem:[%s4090_s10 + $0x4a] sm:$0xff]  ;;  %v4215_v30 = vld [vmem:[%s4090_s10 + $0x52] sm:$0xff]  ;;  %v4223_v32 = vld [vmem:[%s4090_s10 + $0x60] sm:$0xff]  ;;  %1759 = vst.msk [vmem:[#allocation3 + $0x48] sm:$0xff] %vm1460_vm0, %v4235_v34 }
  0x18   : > { %1236 = vrot.lane.b32.xlu2 %v4102_v3, %s4025_s14  ;;  %1971 = vmatpush.msra.mxu0 %v1860_v27  ;;  %1757 = vst.msk [vmem:[#allocation3 + $0x28] sm:$0xff] %vm1460_vm0, %v4188_v24  ;;  %v1854_v38 = vld [vmem:[%s6286_s1 + $0x18] sm:$0xff]  ;;  %v1853_v39 = vld [vmem:[%s6286_s1 + $0x10] sm:$0xff]  ;;  %v1852_v40 = vld [vmem:[%s6286_s1 + $0x8] sm:$0xff] }
  0x19   : > { %980 = vrot.lane.b32.xlu1 %v3745_v4, %s4026_s15  ;;  %724 = vrot.lane.b32.xlu0 %v370_v5, %s4027_s16  ;;  %1758 = vst.msk [vmem:[#allocation3 + $0x38] sm:$0xff] %vm1460_vm0, %v4215_v30  ;;  %v1868_v41 = vld [vmem:[%s6286_s1 + $0x88] sm:$0xff]  ;;  %v1851_v43 = vld [vmem:[%s6286_s1] sm:$0xff] }
  0x1a   : > { %3972 = vmatpush.msra.mxu2 %v1861_v26  ;;  %1972 = vmatpush.msra.mxu0 %v1859_v28  ;;  %v1867_v44 = vld [vmem:[%s6286_s1 + $0x80] sm:$0xff]  ;;  %v4277_v47 = vld [vmem:[%s4090_s10 + $0x68] sm:$0xff]  ;;  %v4298_v53 = vld [vmem:[%s4090_s10 + $0x78] sm:$0xff] }
  0x1b   : > { %2092 = vmatpush.msra.mxu1 %v1868_v41  ;;  %3983 = vmatpush.msra.mxu3 %v1868_v41  ;;  %v4280_v48 = vld [vmem:[%s4090_s10 + $0x6a] sm:$0xff]  ;;  %v306_v55 = vld [vmem:[%s4090_s10] sm:$0xff]  ;;  %v4378_v41 = vld [vmem:[%s4090_s10 + $0x92] sm:$0xff] }
  0x1c   : > { %3973 = vmatpush.msra.mxu2 %v1860_v27  ;;  %1973 = vmatpush.msra.mxu0 %v1858_v31  ;;  %v1788_v45 = vld [vmem:[#allocation3 + $0x8] sm:$0xff]  ;;  %1760 = vst.msk [vmem:[#allocation3 + $0x58] sm:$0xff] %vm1460_vm0, %v4280_v48  ;;  %v4342_v21 = vld [vmem:[%s4090_s10 + $0x81] sm:$0xff] }
  0x1d   : > { %2093 = vmatpush.msra.mxu1 %v1867_v44  ;;  %3984 = vmatpush.msra.mxu3 %v1867_v44  ;;  %v1790_v54 = vld [vmem:[#allocation3 + $0x18] sm:$0xff]  ;;  %v4313_v63 = vld [vmem:[%s4090_s10 + $0x79] sm:$0xff]  ;;  %1763 = vst.msk [vmem:[#allocation3 + $0x88] sm:$0xff] %vm1460_vm0, %v4378_v41 }
  0x1e   : > { %1974 = vmatpush.msra.mxu0 %v1857_v33  ;;  %3974 = vmatpush.msra.mxu2 %v1859_v28  ;;  %v4322_v2 = vld [vmem:[%s4090_s10 + $0x7a] sm:$0xff] }
  0x1f   : > { %3905 = vmatmul.msk.f32.vlgmr.msra.gmra.mxu1 %vm1460_vm0, %v1788_v45  ;;  %1761 = vst.msk [vmem:[#allocation3 + $0x68] sm:$0xff] %vm1460_vm0, %v4322_v2  ;;  %v4345_v22 = vld [vmem:[%s4090_s10 + $0x80] sm:$0xff] }
  0x20   : > { %726 = vrot.lane.b32.xlu2 %v371_v6, %s4027_s16  ;;  %1975 = vmatpush.msra.mxu0 %v1856_v35 }
  0x21   : > { %598 = vrot.lane.b32.xlu1 %v339_v7, %s4024_s13  ;;  %1364 = vrot.lane.b32.xlu0 %v3841_v8, %s4028_s17 }
  0x22   : > { %3975 = vmatpush.msra.mxu2 %v1858_v31  ;;  %1976 = vmatpush.msra.mxu0 %v1855_v37 }
  0x24   : > { %3976 = vmatpush.msra.mxu2 %v1857_v33  ;;  %1977 = vmatpush.msra.mxu0 %v1854_v38 }
  0x26   : > { %1978 = vmatpush.msra.mxu0 %v1853_v39  ;;  %3977 = vmatpush.msra.mxu2 %v1856_v35 }
  0x27   : > { %3906 = vmatmul.msk.f32.gmra.mxu1 %vm1460_vm0, %v1790_v54 }
  0x28   : > { %1110 = vrot.lane.b32.xlu2 %v3778_v9, %s4022_s11  ;;  %1979 = vmatpush.msra.mxu0 %v1852_v40 }
  0x29   : > { %982 = vrot.lane.b32.xlu1 %v3746_v10, %s4026_s15  ;;  %854 = vrot.lane.b32.xlu0 %v4119_v11, %s4023_s12 }
  0x2a   : > { %3978 = vmatpush.msra.mxu2 %v1855_v37  ;;  %1980 = vmatpush.msra.mxu0 %v1851_v43  ;;  %v1794_v37 = vld [vmem:[#allocation3 + $0x38] sm:$0xff] }
  0x2c   : > { %3979 = vmatpush.msra.mxu2 %v1854_v38 }
  0x2e   : > { %3980 = vmatpush.msra.mxu2 %v1853_v39  ;;  %v4372_v39 = vld [vmem:[%s4090_s10 + $0x91] sm:$0xff] }
  0x30   : > { %600 = vrot.lane.b32.xlu2 %v3745_v4, %s4024_s13  ;;  %3981 = vmatpush.msra.mxu2 %v1852_v40  ;;  %v4375_v40 = vld [vmem:[%s4090_s10 + $0x90] sm:$0xff] }
  0x31   : > { %1366 = vrot.lane.b32.xlu1 %v4126_v12, %s4028_s17  ;;  %1238 = vrot.lane.b32.xlu0 %v4129_v13, %s4025_s14 }
  0x32   : > { %3982 = vmatpush.msra.mxu2 %v1851_v43 }
  0x38   : > { %984 = vrot.lane.b32.xlu2 %v3841_v8, %s4026_s15 }
  0x39   : > { %856 = vrot.lane.b32.xlu1 %v4102_v3, %s4023_s12  ;;  %728 = vrot.lane.b32.xlu0 %v3777_v0, %s4027_s16 }
  0x40   : > { %1368 = vrot.lane.b32.xlu2 %v4141_v14, %s4028_s17 }
  0x41   : > { %1240 = vrot.lane.b32.xlu1 %v4144_v15, %s4025_s14  ;;  %1112 = vrot.lane.b32.xlu0 %v3779_v16, %s4022_s11 }
  0x48   : > { %858 = vrot.lane.b32.xlu2 %v4129_v13, %s4023_s12 }
  0x49   : > { %730 = vrot.lane.b32.xlu1 %v3778_v9, %s4027_s16  ;;  %602 = vrot.lane.b32.xlu0 %v3746_v10, %s4024_s13  ;;  %v307_v9 = vld [vmem:[%s4090_s10 + $0x8] sm:$0xff]  ;;  %v1792_v10 = vld [vmem:[#allocation3 + $0x28] sm:$0xff] }
  0x4a   : > { %3907 = vmatmul.msk.f32.gmra.mxu1 %vm1460_vm0, %v1792_v10 }
  0x50   : > { %1242 = vrot.lane.b32.xlu2 %v4157_v17, %s4025_s14 }
  0x51   : > { %1114 = vrot.lane.b32.xlu1 %v4160_v18, %s4022_s11  ;;  %986 = vrot.lane.b32.xlu0 %v4126_v12, %s4026_s15 }
  0x52   : > { %3908 = vmatmul.msk.f32.gmra.mxu1 %vm1460_vm0, %v1794_v37  ;;  %v4476_v37 = vld [vmem:[%s4090_s10 + $0xb1] sm:$0xff] }
  0x58   : > { %732 = vrot.lane.b32.xlu2 %v3779_v16, %s4027_s16 }
  0x59   : > { %604 = vrot.lane.b32.xlu1 %v3841_v8, %s4024_s13  ;;  %1370 = vrot.lane.b32.xlu0 %v4172_v20, %s4028_s17 }
  0x60   : > { %1116 = vrot.lane.b32.xlu2 %v4188_v24, %s4022_s11 }
  0x61   : > { %988 = vrot.lane.b32.xlu1 %v4141_v14, %s4026_s15  ;;  %860 = vrot.lane.b32.xlu0 %v4144_v15, %s4023_s12 }
  0x68   : > { %606 = vrot.lane.b32.xlu2 %v4126_v12, %s4024_s13 }
  0x69   : > { %1372 = vrot.lane.b32.xlu1 %v4212_v29, %s4028_s17  ;;  %1244 = vrot.lane.b32.xlu0 %v4223_v32, %s4025_s14 }
  0x6a   : > { %v4244_v36 = vpop.permute.xlu2 %1108 }
  0x70   : > { %990 = vrot.lane.b32.xlu2 %v4172_v20, %s4026_s15 }
  0x71   : > { %862 = vrot.lane.b32.xlu1 %v4157_v17, %s4023_s12  ;;  %734 = vrot.lane.b32.xlu0 %v4160_v18, %s4027_s16 }
  0x72   : > { %v1237_v42 = vpop.permute.xlu2 %1236 }
  0x78   : > { %1374 = vrot.lane.b32.xlu2 %v4274_v46, %s4028_s17 }
  0x79   : > { %1246 = vrot.lane.b32.xlu1 %v4277_v47, %s4025_s14  ;;  %1118 = vrot.lane.b32.xlu0 %v4215_v30, %s4022_s11 }
  0x7a   : > { %v727_v49 = vpop.permute.xlu2 %726 }
  0x80   : > { %864 = vrot.lane.b32.xlu2 %v4223_v32, %s4023_s12 }
  0x81   : > { %736 = vrot.lane.b32.xlu1 %v4188_v24, %s4027_s16  ;;  %608 = vrot.lane.b32.xlu0 %v4141_v14, %s4024_s13  ;;  %v4353_v24 = vld [vmem:[%s4090_s10 + $0x82] sm:$0xff] }
  0x82   : > { %v1111_v51 = vpop.permute.xlu2 %1110  ;;  %1762 = vst.msk [vmem:[#allocation3 + $0x78] sm:$0xff] %vm1460_vm0, %v4353_v24 }
  0x83   : > { %v853_v50 = vpop.permute.xlu1 %852  ;;  %v597_v52 = vpop.permute.xlu0 %596 }
  0x84   : > { %v1461_v58 = vsel %vm1460_vm0, %v306_v55, %v597_v52  ;;  %v4401_v55 = vld [vmem:[%s4090_s10 + $0x98] sm:$0xff] }
  0x88   : > { %1248 = vrot.lane.b32.xlu2 %v4298_v53, %s4025_s14 }
  0x89   : > { %1120 = vrot.lane.b32.xlu1 %v4235_v34, %s4022_s11  ;;  %992 = vrot.lane.b32.xlu0 %v4212_v29, %s4026_s15 }
  0x8a   : > { %v601_v57 = vpop.permute.xlu2 %600 }
  0x8b   : > { %v981_v56 = vpop.permute.xlu1 %980  ;;  %v725_v59 = vpop.permute.xlu0 %724 }
  0x8c   : > { %v1494_v60 = vsel %vm1493_vm1, %v1461_v58, %v725_v59 }
  0x8d   : > { %v1527_v61 = vsel %vm1526_vm2, %v1494_v60, %v853_v50 }
  0x8e   : > { %v1560_v62 = vsel %vm1559_vm3, %v1527_v61, %v981_v56  ;;  %v1796_v56 = vld [vmem:[#allocation3 + $0x48] sm:$0xff] }
  0x8f   : > { %v1593_v0 = vsel %vm1592_vm4, %v1560_v62, %v4244_v36  ;;  %v1463_v36 = vsel %vm1460_vm0, %v4094_v1, %v601_v57  ;;  %3909 = vmatmul.msk.f32.gmra.mxu1 %vm1460_vm0, %v1796_v56  ;;  %v4416_v61 = vld [vmem:[%s4090_s10 + $0x99] sm:$0xff] }
  0x90   : > { %738 = vrot.lane.b32.xlu2 %v4215_v30, %s4027_s16  ;;  %v1626_v7 = vsel %vm1625_vm5, %v1593_v0, %v1237_v42  ;;  %v4424_v0 = vld [vmem:[%s4090_s10 + $0x9a] sm:$0xff] }
  0x91   : > { %610 = vrot.lane.b32.xlu1 %v4172_v20, %s4024_s13  ;;  %1376 = vrot.lane.b32.xlu0 %v4313_v63, %s4028_s17  ;;  %1764 = vst.msk [vmem:[#allocation3 + $0x98] sm:$0xff] %vm1460_vm0, %v4424_v0  ;;  %v4515_v56 = vld [vmem:[%s4090_s10 + $0xc0] sm:$0xff] }
  0x92   : > { %v985_v4 = vpop.permute.xlu2 %984 }
  0x93   : > { %v599_v5 = vpop.permute.xlu1 %598  ;;  %v1365_v6 = vpop.permute.xlu0 %1364 }
  0x94   : > { %v1659_v8 = vsel %vm1658_vm6, %v1626_v7, %v1365_v6  ;;  %v1462_v12 = vsel %vm1460_vm0, %v307_v9, %v599_v5 }
  0x95   : > { %1981 = vmatmul.f32.vlgmr.msra.gmra.mxu0 %v1659_v8  ;;  %v1495_v19 = vsel %vm1493_vm1, %v1462_v12, %v727_v49  ;;  %v1798_v8 = vld [vmem:[#allocation3 + $0x58] sm:$0xff] }
  0x97   : > { %3910 = vmatmul.msk.f32.gmra.mxu1 %vm1460_vm0, %v1798_v8 }
  0x98   : > { %1122 = vrot.lane.b32.xlu2 %v4280_v48, %s4022_s11 }
  0x99   : > { %994 = vrot.lane.b32.xlu1 %v4274_v46, %s4026_s15  ;;  %866 = vrot.lane.b32.xlu0 %v4277_v47, %s4023_s12 }
  0x9a   : > { %v1369_v14 = vpop.permute.xlu2 %1368 }
  0x9b   : > { %v983_v16 = vpop.permute.xlu1 %982  ;;  %v855_v18 = vpop.permute.xlu0 %854 }
  0x9c   : > { %v1528_v20 = vsel %vm1526_vm2, %v1495_v19, %v855_v18  ;;  %v4444_v18 = vld [vmem:[%s4090_s10 + $0xa9] sm:$0xff] }
  0x9d   : > { %v1561_v23 = vsel %vm1559_vm3, %v1528_v20, %v983_v16  ;;  %v4447_v19 = vld [vmem:[%s4090_s10 + $0xa8] sm:$0xff] }
  0x9e   : > { %v1594_v28 = vsel %vm1592_vm4, %v1561_v23, %v1111_v51 }
  0xa0   : > { %612 = vrot.lane.b32.xlu2 %v4212_v29, %s4024_s13 }
  0xa1   : > { %1378 = vrot.lane.b32.xlu1 %v4342_v21, %s4028_s17  ;;  %1250 = vrot.lane.b32.xlu0 %v4345_v22, %s4025_s14 }
  0xa2   : > { %v859_v25 = vpop.permute.xlu2 %858 }
  0xa3   : > { %v1367_v26 = vpop.permute.xlu1 %1366  ;;  %v1239_v27 = vpop.permute.xlu0 %1238 }
  0xa4   : > { %v1627_v29 = vsel %vm1625_vm5, %v1594_v28, %v1239_v27 }
  0xa5   : > { %v1660_v30 = vsel %vm1658_vm6, %v1627_v29, %v1367_v26 }
  0xa6   : > { %1984 = vmatmul.f32.gmra.mxu0 %v1660_v30 }
  0xa8   : > { %996 = vrot.lane.b32.xlu2 %v4313_v63, %s4026_s15 }
  0xa9   : > { %868 = vrot.lane.b32.xlu1 %v4298_v53, %s4023_s12  ;;  %740 = vrot.lane.b32.xlu0 %v4235_v34, %s4027_s16 }
  0xaa   : > { %v1243_v31 = vpop.permute.xlu2 %1242 }
  0xab   : > { %v857_v33 = vpop.permute.xlu1 %856  ;;  %v729_v35 = vpop.permute.xlu0 %728 }
  0xac   : > { %v1496_v38 = vsel %vm1493_vm1, %v1463_v36, %v729_v35  ;;  %v1800_v35 = vld [vmem:[#allocation3 + $0x68] sm:$0xff] }
  0xad   : > { %v1529_v34 = vsel %vm1526_vm2, %v1496_v38, %v857_v33  ;;  %v4479_v38 = vld [vmem:[%s4090_s10 + $0xb0] sm:$0xff]  ;;  %3911 = vmatmul.msk.f32.gmra.mxu1 %vm1460_vm0, %v1800_v35  ;;  %v4659_v35 = vld [vmem:[%s4090_s10 + $0xc2] sm:$0xff] }
  0xae   : > { %v1562_v44 = vsel %vm1559_vm3, %v1529_v34, %v985_v4  ;;  %v4482_v34 = vld [vmem:[%s4090_s10 + $0xb2] sm:$0xff]  ;;  %1767 = vst.msk [vmem:[#allocation3 + $0xc8] sm:$0xff] %vm1460_vm0, %v4659_v35 }
  0xaf   : > { %1766 = vst.msk [vmem:[#allocation3 + $0xb8] sm:$0xff] %vm1460_vm0, %v4482_v34 }
  0xb0   : > { %1380 = vrot.lane.b32.xlu2 %v4372_v39, %s4028_s17 }
  0xb1   : > { %1252 = vrot.lane.b32.xlu1 %v4375_v40, %s4025_s14  ;;  %1124 = vrot.lane.b32.xlu0 %v4322_v2, %s4022_s11 }
  0xb2   : > { %v733_v1 = vpop.permute.xlu2 %732 }
  0xb3   : > { %v1241_v42 = vpop.permute.xlu1 %1240  ;;  %v1113_v43 = vpop.permute.xlu0 %1112 }
  0xb4   : > { %v1595_v45 = vsel %vm1592_vm4, %v1562_v44, %v1113_v43 }
  0xb5   : > { %v1628_v49 = vsel %vm1625_vm5, %v1595_v45, %v1241_v42 }
  0xb6   : > { %v1661_v50 = vsel %vm1658_vm6, %v1628_v49, %v1369_v14 }
  0xb7   : > { %1987 = vmatmul.f32.gmra.mxu0 %v1661_v50 }
  0xb8   : > { %870 = vrot.lane.b32.xlu2 %v4345_v22, %s4023_s12 }
  0xb9   : > { %742 = vrot.lane.b32.xlu1 %v4280_v48, %s4027_s16  ;;  %614 = vrot.lane.b32.xlu0 %v4274_v46, %s4024_s13 }
  0xba   : > { %v1117_v51 = vpop.permute.xlu2 %1116 }
  0xbb   : > { %v731_v52 = vpop.permute.xlu1 %730  ;;  %v603_v54 = vpop.permute.xlu0 %602 }
  0xbc   : > { %v1464_v57 = vsel %vm1460_vm0, %v4119_v11, %v603_v54 }
  0xbd   : > { %v1497_v46 = vsel %vm1493_vm1, %v1464_v57, %v731_v52  ;;  %v4029_v52 = vmov 0.0  }
  0xbe   : > { %v1530_v60 = vsel %vm1526_vm2, %v1497_v46, %v859_v25  ;;  %2353 = vst.msk [vmem:[#allocation2] sm:$0xff] %vm1493_vm1, %v4029_v52 }
  0xbf   : > { %2364 = vst.msk [vmem:[#allocation2 + $0x30] sm:$0x1] %vm2361_vm7, %v4029_v52 }
  0xc0   : > { %1254 = vrot.lane.b32.xlu2 %v4401_v55, %s4025_s14  ;;  %2354 = vst.msk [vmem:[#allocation2 + $0x8] sm:$0xff] %vm1493_vm1, %v4029_v52 }
  0xc1   : > { %1126 = vrot.lane.b32.xlu1 %v4353_v24, %s4022_s11  ;;  %998 = vrot.lane.b32.xlu0 %v4342_v21, %s4026_s15  ;;  %2363 = vst.msk [vmem:[#allocation2 + $0x18] sm:$0x1] %vm2361_vm7, %v4029_v52 }
  0xc2   : > { %v607_v48 = vpop.permute.xlu2 %606  ;;  %2365 = vst.msk [vmem:[#allocation2 + $0x48] sm:$0x1] %vm2361_vm7, %v4029_v52 }
  0xc3   : > { %v1115_v58 = vpop.permute.xlu1 %1114  ;;  %v987_v59 = vpop.permute.xlu0 %986  ;;  %v1466_v33 = vsel %vm1460_vm0, %v4129_v13, %v607_v48  ;;  %2366 = vst.msk [vmem:[#allocation2 + $0x60] sm:$0x1] %vm2361_vm7, %v4029_v52 }
  0xc4   : > { %v1563_v11 = vsel %vm1559_vm3, %v1530_v60, %v987_v59  ;;  %2367 = vst.msk [vmem:[#allocation2 + $0x78] sm:$0x1] %vm2361_vm7, %v4029_v52  ;;  %v4546_v60 = vld [vmem:[%s4090_s10 + $0xc1] sm:$0xff] }
  0xc5   : > { %v1596_v62 = vsel %vm1592_vm4, %v1563_v11, %v1115_v58  ;;  %2368 = vst.msk [vmem:[#allocation2 + $0x90] sm:$0x1] %vm2361_vm7, %v4029_v52 }
  0xc6   : > { %v1629_v7 = vsel %vm1625_vm5, %v1596_v62, %v1243_v31  ;;  %2369 = vst.msk [vmem:[#allocation2 + $0xa8] sm:$0x1] %vm2361_vm7, %v4029_v52 }
  0xc7   : > { %2370 = vst.msk [vmem:[#allocation2 + $0xc0] sm:$0x1] %vm2361_vm7, %v4029_v52 }
  0xc8   : > { %744 = vrot.lane.b32.xlu2 %v4322_v2, %s4027_s16  ;;  %2371 = vst.msk [vmem:[#allocation2 + $0xd8] sm:$0x1] %vm2361_vm7, %v4029_v52 }
  0xc9   : > { %616 = vrot.lane.b32.xlu1 %v4313_v63, %s4024_s13  ;;  %1382 = vrot.lane.b32.xlu0 %v4416_v61, %s4028_s17  ;;  %2372 = vst.msk [vmem:[#allocation2 + $0xf0] sm:$0x1] %vm2361_vm7, %v4029_v52 }
  0xca   : > { %v991_v4 = vpop.permute.xlu2 %990  ;;  %2373 = vst.msk [vmem:[#allocation2 + $0x108] sm:$0x1] %vm2361_vm7, %v4029_v52 }
  0xcb   : > { %v605_v5 = vpop.permute.xlu1 %604  ;;  %v1371_v6 = vpop.permute.xlu0 %1370  ;;  %2374 = vst.msk [vmem:[#allocation2 + $0x120] sm:$0x1] %vm2361_vm7, %v4029_v52 }
  0xcc   : > { %v1662_v2 = vsel %vm1658_vm6, %v1629_v7, %v1371_v6  ;;  %v1465_v63 = vsel %vm1460_vm0, %v4102_v3, %v605_v5  ;;  %v4455_v3 = vld [vmem:[%s4090_s10 + $0xaa] sm:$0xff]  ;;  %2375 = vst.msk [vmem:[#allocation2 + $0x138] sm:$0x1] %vm2361_vm7, %v4029_v52  ;;  %v1804_v6 = vld [vmem:[#allocation3 + $0x88] sm:$0xff] }
  0xcd   : > { %1990 = vmatmul.f32.gmra.mxu0 %v1662_v2  ;;  %v1498_v14 = vsel %vm1493_vm1, %v1465_v63, %v733_v1  ;;  %1765 = vst.msk [vmem:[#allocation3 + $0xa8] sm:$0xff] %vm1460_vm0, %v4455_v3 }
  0xce   : > { %2376 = vst.msk [vmem:[#allocation2 + $0x150] sm:$0x1] %vm2361_vm7, %v4029_v52 }
  0xcf   : > { %2377 = vst.msk [vmem:[#allocation2 + $0x168] sm:$0x1] %vm2361_vm7, %v4029_v52 }
  0xd0   : > { %1128 = vrot.lane.b32.xlu2 %v4378_v41, %s4022_s11  ;;  %2378 = vst.msk [vmem:[#allocation2 + $0x180] sm:$0x1] %vm2361_vm7, %v4029_v52 }
  0xd1   : > { %1000 = vrot.lane.b32.xlu1 %v4372_v39, %s4026_s15  ;;  %872 = vrot.lane.b32.xlu0 %v4375_v40, %s4023_s12  ;;  %2381 = vst.msk [vmem:[#allocation2 + $0x29] sm:$0x1] %vm2361_vm7, %v4029_v52 }
  0xd2   : > { %v1375_v9 = vpop.permute.xlu2 %1374  ;;  %2382 = vst.msk [vmem:[#allocation2 + $0x41] sm:$0x1] %vm2361_vm7, %v4029_v52 }
  0xd3   : > { %v989_v10 = vpop.permute.xlu1 %988  ;;  %v861_v12 = vpop.permute.xlu0 %860  ;;  %2383 = vst.msk [vmem:[#allocation2 + $0x59] sm:$0x1] %vm2361_vm7, %v4029_v52 }
  0xd4   : > { %v1531_v16 = vsel %vm1526_vm2, %v1498_v14, %v861_v12  ;;  %2384 = vst.msk [vmem:[#allocation2 + $0x71] sm:$0x1] %vm2361_vm7, %v4029_v52  ;;  %v4608_v12 = vld [vmem:[%s4090_s10 + $0xc8] sm:$0xff] }
  0xd5   : > { %v1564_v20 = vsel %vm1559_vm3, %v1531_v16, %v989_v10  ;;  %2385 = vst.msk [vmem:[#allocation2 + $0x89] sm:$0x1] %vm2361_vm7, %v4029_v52  ;;  %v4603_v10 = vld [vmem:[%s4090_s10 + $0xc9] sm:$0xff]  ;;  %v2095_v16 = vpop.f32.mrf.mxu1 }
  0xd6   : > { %v1597_v27 = vsel %vm1592_vm4, %v1564_v20, %v1117_v51  ;;  %2386 = vst.msk [vmem:[#allocation2 + $0xa1] sm:$0x1] %vm2361_vm7, %v4029_v52 }
  0xd7   : > { %2387 = vst.msk [vmem:[#allocation2 + $0xb9] sm:$0x1] %vm2361_vm7, %v4029_v52 }
  0xd8   : > { %618 = vrot.lane.b32.xlu2 %v4342_v21, %s4024_s13  ;;  %2388 = vst.msk [vmem:[#allocation2 + $0xd1] sm:$0x1] %vm2361_vm7, %v4029_v52 }
  0xd9   : > { %1384 = vrot.lane.b32.xlu1 %v4444_v18, %s4028_s17  ;;  %1256 = vrot.lane.b32.xlu0 %v4447_v19, %s4025_s14  ;;  %2389 = vst.msk [vmem:[#allocation2 + $0xe9] sm:$0x1] %vm2361_vm7, %v4029_v52 }
  0xda   : > { %v865_v23 = vpop.permute.xlu2 %864  ;;  %2390 = vst.msk [vmem:[#allocation2 + $0x101] sm:$0x1] %vm2361_vm7, %v4029_v52 }
  0xdb   : > { %v1373_v25 = vpop.permute.xlu1 %1372  ;;  %v1245_v26 = vpop.permute.xlu0 %1244  ;;  %2391 = vst.msk [vmem:[#allocation2 + $0x119] sm:$0x1] %vm2361_vm7, %v4029_v52 }
  0xdc   : > { %v1630_v21 = vsel %vm1625_vm5, %v1597_v27, %v1245_v26  ;;  %2392 = vst.msk [vmem:[#allocation2 + $0x131] sm:$0x1] %vm2361_vm7, %v4029_v52  ;;  %v2191_v27 = vld [vmem:[%s6287_s2] sm:$0xff] }
  0xdd   : > { %v1663_v28 = vsel %vm1658_vm6, %v1630_v21, %v1373_v25  ;;  %2393 = vst.msk [vmem:[#allocation2 + $0x149] sm:$0x1] %vm2361_vm7, %v4029_v52 }
  0xde   : > { %1993 = vmatmul.f32.gmra.mxu0 %v1663_v28  ;;  %2394 = vst.msk [vmem:[#allocation2 + $0x161] sm:$0x1] %vm2361_vm7, %v4029_v52 }
  0xdf   : > { %2395 = vst.msk [vmem:[#allocation2 + $0x179] sm:$0x1] %vm2361_vm7, %v4029_v52 }
  0xe0   : > { %1002 = vrot.lane.b32.xlu2 %v4416_v61, %s4026_s15  ;;  %2396 = vst.msk [vmem:[#allocation2 + $0x191] sm:$0x1] %vm2361_vm7, %v4029_v52 }
  0xe1   : > { %874 = vrot.lane.b32.xlu1 %v4401_v55, %s4023_s12  ;;  %746 = vrot.lane.b32.xlu0 %v4353_v24, %s4027_s16  ;;  %2362 = vst.msk [vmem:[#allocation2] sm:$0x1] %vm2361_vm7, %v4029_v52 }
  0xe2   : > { %v4470_v29 = vpop.permute.xlu2 %1248  ;;  %2356 = vst.msk [vmem:[#allocation2 + $0x10] sm:$0x3] %vm2355_vm9, %v4029_v52 }
  0xe3   : > { %v863_v30 = vpop.permute.xlu1 %862  ;;  %v735_v31 = vpop.permute.xlu0 %734  ;;  %2380 = vst.msk [vmem:[#allocation2 + $0x11] sm:$0x1] %vm2361_vm7, %v4029_v52  ;;  %v1806_v52 = vld [vmem:[#allocation3 + $0x98] sm:$0xff] }
  0xe4   : > { %v1499_v36 = vsel %vm1493_vm1, %v1466_v33, %v735_v31 }
  0xe5   : > { %v1532_v24 = vsel %vm1526_vm2, %v1499_v36, %v863_v30 }
  0xe6   : > { %v1565_v43 = vsel %vm1559_vm3, %v1532_v24, %v991_v4 }
  0xe8   : > { %1386 = vrot.lane.b32.xlu2 %v4476_v37, %s4028_s17 }
  0xe9   : > { %1258 = vrot.lane.b32.xlu1 %v4479_v38, %s4025_s14  ;;  %1130 = vrot.lane.b32.xlu0 %v4424_v0, %s4022_s11 }
  0xea   : > { %v4494_v13 = vpop.permute.xlu2 %738 }
  0xeb   : > { %v1247_v1 = vpop.permute.xlu1 %1246  ;;  %v1119_v42 = vpop.permute.xlu0 %1118 }
  0xec   : > { %v1598_v44 = vsel %vm1592_vm4, %v1565_v43, %v1119_v42  ;;  %v4667_v43 = vld [vmem:[%s4090_s10 + $0xca] sm:$0xff] }
  0xed   : > { %v1631_v45 = vsel %vm1625_vm5, %v1598_v44, %v1247_v1  ;;  %v2432_v1 = vld [vmem:[#allocation2 + $0x8] sm:$0xff]  ;;  %1768 = vst.msk [vmem:[#allocation3 + $0xd8] sm:$0xff] %vm1460_vm0, %v4667_v43 }
  0xee   : > { %v1664_v49 = vsel %vm1658_vm6, %v1631_v45, %v1375_v9  ;;  %v4676_v45 = vld [vmem:[%s4090_s10 + $0xd9] sm:$0xff]  ;;  %2456 = vst.msk [vmem:[#allocation5 + $0x8] sm:$0xff] %vm1493_vm1, %v2432_v1 }
  0xef   : > { %1996 = vmatmul.f32.gmra.mxu0 %v1664_v49  ;;  %v4679_v49 = vld [vmem:[%s4090_s10 + $0xd8] sm:$0xff] }
  0xf0   : > { %876 = vrot.lane.b32.xlu2 %v4447_v19, %s4023_s12 }
  0xf1   : > { %748 = vrot.lane.b32.xlu1 %v4378_v41, %s4027_s16  ;;  %620 = vrot.lane.b32.xlu0 %v4372_v39, %s4024_s13  ;;  %v1802_v41 = vld [vmem:[#allocation3 + $0x78] sm:$0xff] }
  0xf2   : > { %v4506_v50 = vpop.permute.xlu2 %1122  ;;  %3912 = vmatmul.msk.f32.gmra.mxu1 %vm1460_vm0, %v1802_v41 }
  0xf3   : > { %v737_v51 = vpop.permute.xlu1 %736  ;;  %v609_v54 = vpop.permute.xlu0 %608 }
  0xf4   : > { %v1467_v39 = vsel %vm1460_vm0, %v4144_v15, %v609_v54  ;;  %v4695_v54 = vld [vmem:[%s4090_s10 + $0xda] sm:$0xff] }
  0xf5   : > { %v1500_v57 = vsel %vm1493_vm1, %v1467_v39, %v737_v51  ;;  %v2098_v51 = vpop.f32.mrf.mxu1  ;;  %1769 = vst.msk [vmem:[#allocation3 + $0xe8] sm:$0xff] %vm1460_vm0, %v4695_v54 }
  0xf6   : > { %v1533_v58 = vsel %vm1526_vm2, %v1500_v57, %v865_v23 }
  0xf8   : > { %1260 = vrot.lane.b32.xlu2 %v4515_v56, %s4025_s14 }
  0xf9   : > { %1132 = vrot.lane.b32.xlu1 %v4455_v3, %s4022_s11  ;;  %1004 = vrot.lane.b32.xlu0 %v4444_v18, %s4026_s15 }
  0xfa   : > { %v4533_v15 = vpop.permute.xlu2 %612  ;;  %3913 = vmatmul.msk.f32.gmra.mxu1 %vm1460_vm0, %v1804_v6 }
  0xfb   : > { %v1121_v46 = vpop.permute.xlu1 %1120  ;;  %v993_v48 = vpop.permute.xlu0 %992 }
  0xfc   : > { %v1566_v59 = vsel %vm1559_vm3, %v1533_v58, %v993_v48  ;;  %v2192_v48 = vld [vmem:[%s6287_s2 + $0x8] sm:$0xff] }
  0xfd   : > { %v1599_v11 = vsel %vm1592_vm4, %v1566_v59, %v1121_v46 }
 0x100   : > { %750 = vrot.lane.b32.xlu2 %v4424_v0, %s4027_s16  ;;  %v1632_v0 = vsel %vm1625_vm5, %v1599_v11, %v4470_v29  ;;  %v4640_v29 = vld [vmem:[%s6288_s3] ss:$0 sm:$0xff] }
 0x101   : > { %622 = vrot.lane.b32.xlu1 %v4416_v61, %s4024_s13  ;;  %1388 = vrot.lane.b32.xlu0 %v4546_v60, %s4028_s17 }
 0x102   : > { %v4563_v62 = vpop.permute.xlu2 %996  ;;  %3914 = vmatmul.msk.f32.gmra.mxu1 %vm1460_vm0, %v1806_v52 }
 0x103   : > { %v611_v4 = vpop.permute.xlu1 %610  ;;  %v1377_v5 = vpop.permute.xlu0 %1376 }
 0x104   : > { %v1665_v61 = vsel %vm1658_vm6, %v1632_v0, %v1377_v5  ;;  %v1468_v7 = vsel %vm1460_vm0, %v4157_v17, %v611_v4  ;;  %v2433_v0 = vld [vmem:[#allocation2 + $0x10] sm:$0x3] }
 0x105   : > { %1999 = vmatmul.f32.gmra.mxu0 %v1665_v61  ;;  %v1501_v17 = vsel %vm1493_vm1, %v1468_v7, %v4494_v13  ;;  %2457 = vst.msk [vmem:[#allocation5 + $0x10] sm:$0x3] %vm2355_vm9, %v2433_v0 }
 0x108   : > { %1134 = vrot.lane.b32.xlu2 %v4482_v34, %s4022_s11 }
 0x109   : > { %1006 = vrot.lane.b32.xlu1 %v4476_v37, %s4026_s15  ;;  %878 = vrot.lane.b32.xlu0 %v4479_v38, %s4023_s12 }
 0x10a   : > { %v4591_v2 = vpop.permute.xlu2 %1380 }
 0x10b   : > { %v995_v8 = vpop.permute.xlu1 %994  ;;  %v867_v63 = vpop.permute.xlu0 %866 }
 0x10c   : > { %v1534_v9 = vsel %vm1526_vm2, %v1501_v17, %v867_v63 }
 0x10d   : > { %v1567_v14 = vsel %vm1559_vm3, %v1534_v9, %v995_v8  ;;  %v4723_v8 = vld [vmem:[%s4090_s10 + $0xe0] sm:$0xff] }
 0x10e   : > { %v1600_v25 = vsel %vm1592_vm4, %v1567_v14, %v4506_v50  ;;  %v2431_v50 = vld [vmem:[#allocation2] sm:$0xff] }
 0x10f   : > { %2455 = vst.msk [vmem:[#allocation5] sm:$0xff] %vm1493_vm1, %v2431_v50 }
 0x110   : > { %624 = vrot.lane.b32.xlu2 %v4444_v18, %s4024_s13 }
 0x111   : > { %1390 = vrot.lane.b32.xlu1 %v4603_v10, %s4028_s17  ;;  %1262 = vrot.lane.b32.xlu0 %v4608_v12, %s4025_s14 }
 0x112   : > { %v4625_v20 = vpop.permute.xlu2 %870  ;;  %v1982_v26 = vpop.f32.mrf.mxu0 }
 0x113   : > { %v1379_v23 = vpop.permute.xlu1 %1378  ;;  %v1251_v18 = vpop.permute.xlu0 %1250  ;;  %v2096_v28 = vadd.f32 %v2095_v16, %v1982_v26 }
 0x114   : > { %v1633_v21 = vsel %vm1625_vm5, %v1600_v25, %v1251_v18  ;;  %v2101_v16 = vpop.f32.mrf.mxu1 }
 0x115   : > { %v1666_v30 = vsel %vm1658_vm6, %v1633_v21, %v1379_v23  ;;  %v2223_v31 = vadd.f32 %v2191_v27, %v2096_v28  ;;  %v1808_v27 = vld [vmem:[#allocation3 + $0xa8] sm:$0xff] }
 0x116   : > { %2002 = vmatmul.f32.gmra.mxu0 %v1666_v30  ;;  %v4725_v63 = vld [vmem:[#allocation5 + $0x1] ss:$2 sm:$0xff]  ;;  %v4731_v14 = vld [vmem:[#allocation5 + $0x2] ss:$2 sm:$0xff]  ;;  %3915 = vmatmul.msk.f32.gmra.mxu1 %vm1460_vm0, %v1808_v27 }
 0x117   : > { %vm2255_vm8 = vcmp.gt.f32.partialorder %v2223_v31, 0.0  ;;  %v2289_v33 = vmul.f32 %v4640_v29, %v2223_v31  ;;  %v2193_v30 = vld [vmem:[%s6287_s2 + $0x10] sm:$0xff] }
 0x118   : > { %1008 = vrot.lane.b32.xlu2 %v4546_v60, %s4026_s15 }
 0x119   : > { %880 = vrot.lane.b32.xlu1 %v4515_v56, %s4023_s12  ;;  %752 = vrot.lane.b32.xlu0 %v4455_v3, %s4027_s16  ;;  %v2321_v36 = vsel %vm2255_vm8, %v2223_v31, %v2289_v33  ;;  %v1469_v3 = vsel %vm1460_vm0, %v4223_v32, %v4533_v15 }
 0x11a   : > { %v4661_v24 = vpop.permute.xlu2 %1254  ;;  %2399 = vst.msk [vmem:[#allocation2 + $0x19] sm:$0xff] %vm1493_vm1, %v2321_v36  ;;  %v4753_v36 = vld [vmem:[%s4090_s10 + $0xe1] sm:$0xff] }
 0x11b   : > { %v869_v13 = vpop.permute.xlu1 %868  ;;  %v741_v42 = vpop.permute.xlu0 %740 }
 0x11c   : > { %v1502_v44 = vsel %vm1493_vm1, %v1469_v3, %v741_v42 }
 0x11d   : > { %v1535_v32 = vsel %vm1526_vm2, %v1502_v44, %v869_v13  ;;  %v4766_v44 = vld [vmem:[%s4090_s10 + $0xe2] sm:$0xff] }
 0x11e   : > { %v1568_v15 = vsel %vm1559_vm3, %v1535_v32, %v4563_v62  ;;  %1770 = vst.msk [vmem:[#allocation3 + $0xf8] sm:$0xff] %vm1460_vm0, %v4766_v44 }
 0x120   : > { %1392 = vrot.lane.b32.xlu2 %v4676_v45, %s4028_s17 }
 0x121   : > { %1264 = vrot.lane.b32.xlu1 %v4679_v49, %s4025_s14  ;;  %1136 = vrot.lane.b32.xlu0 %v4659_v35, %s4022_s11  ;;  %v2526_v17 = vld [vmem:[#allocation2 + $0x18] sm:$0xff] }
 0x122   : > { %v4697_v39 = vpop.permute.xlu2 %744 }
 0x123   : > { %v1253_v41 = vpop.permute.xlu1 %1252  ;;  %v1125_v57 = vpop.permute.xlu0 %1124 }
 0x124   : > { %v1985_v46 = vpop.f32.mrf.mxu0  ;;  %v1601_v58 = vsel %vm1592_vm4, %v1568_v15, %v1125_v57 }
 0x125   : > { %v2099_v59 = vadd.f32 %v2098_v51, %v1985_v46  ;;  %v1634_v11 = vsel %vm1625_vm5, %v1601_v58, %v1253_v41 }
 0x126   : > { %v1667_v4 = vsel %vm1658_vm6, %v1634_v11, %v4591_v2 }
 0x127   : > { %v2224_v5 = vadd.f32 %v2192_v48, %v2099_v59  ;;  %2005 = vmatmul.f32.gmra.mxu0 %v1667_v4  ;;  %v1810_v59 = vld [vmem:[#allocation3 + $0xb8] sm:$0xff]  ;;  %v4795_v4 = vld [vmem:[%s4090_s10 + $0xf1] sm:$0xff] }
 0x128   : > { %882 = vrot.lane.b32.xlu2 %v4608_v12, %s4023_s12  ;;  %3916 = vmatmul.msk.f32.gmra.mxu1 %vm1460_vm0, %v1810_v59 }
 0x129   : > { %754 = vrot.lane.b32.xlu1 %v4482_v34, %s4027_s16  ;;  %vm2256_vm10 = vcmp.gt.f32.partialorder %v2224_v5, 0.0  ;;  %v2290_v62 = vmul.f32 %v4640_v29, %v2224_v5  ;;  %626 = vrot.lane.b32.xlu0 %v4476_v37, %s4024_s13  ;;  %v4727_v34 = vld [vmem:[#allocation5] ss:$2 sm:$0xff] }
 0x12a   : > { %v4719_v61 = vpop.permute.xlu2 %1128  ;;  %2550 = vst.msk [vmem:[#allocation5] sm:$0xff] %vm1493_vm1, %v2526_v17 }
 0x12b   : > { %v743_v6 = vpop.permute.xlu1 %742  ;;  %v2322_v7 = vsel %vm2256_vm10, %v2224_v5, %v2290_v62  ;;  %v615_v2 = vpop.permute.xlu0 %614  ;;  %v4800_v5 = vld [vmem:[%s4090_s10 + $0xf0] sm:$0xff] }
 0x12c   : > { %2400 = vst.msk [vmem:[#allocation2 + $0x21] sm:$0xff] %vm1493_vm1, %v2322_v7  ;;  %v1470_v9 = vsel %vm1460_vm0, %v4277_v47, %v615_v2  ;;  %v2104_v62 = vpop.f32.mrf.mxu1 }
 0x12d   : > { %v1503_v37 = vsel %vm1493_vm1, %v1470_v9, %v743_v6  ;;  %v2194_v9 = vld [vmem:[%s6287_s2 + $0x18] sm:$0xff] }
 0x12e   : > { %v1536_v21 = vsel %vm1526_vm2, %v1503_v37, %v4625_v20 }
 0x130   : > { %1266 = vrot.lane.b32.xlu2 %v4723_v8, %s4025_s14 }
 0x131   : > { %1138 = vrot.lane.b32.xlu1 %v4667_v43, %s4022_s11  ;;  %1010 = vrot.lane.b32.xlu0 %v4603_v10, %s4026_s15 }
 0x132   : > { %v4741_v23 = vpop.permute.xlu2 %618 }
 0x133   : > { %v1127_v47 = vpop.permute.xlu1 %1126  ;;  %v2527_v18 = vld [vmem:[#allocation2 + $0x20] sm:$0xff]  ;;  %v2528_v25 = vld [vmem:[#allocation2 + $0x28] sm:$0x3]  ;;  %v999_v26 = vpop.permute.xlu0 %998 }
 0x134   : > { %2551 = vst.msk [vmem:[#allocation5 + $0x8] sm:$0xff] %vm1493_vm1, %v2527_v18  ;;  %v1988_v28 = vpop.f32.mrf.mxu0  ;;  %v1569_v31 = vsel %vm1559_vm3, %v1536_v21, %v999_v26 }
 0x135   : > { %2552 = vst.msk [vmem:[#allocation5 + $0x10] sm:$0x3] %vm2355_vm9, %v2528_v25  ;;  %v2102_v33 = vadd.f32 %v2101_v16, %v1988_v28  ;;  %v1602_v1 = vsel %vm1592_vm4, %v1569_v31, %v1127_v47  ;;  %v1472_v28 = vsel %vm1460_vm0, %v4345_v22, %v4741_v23  ;;  %v4838_v31 = vld [vmem:[%s4090_s10 + $0xf9] sm:$0xff]  ;;  %v2107_v22 = vpop.f32.mrf.mxu1 }
 0x136   : > { %v1635_v32 = vsel %vm1625_vm5, %v1602_v1, %v4661_v24 }
 0x137   : > { %v2225_v13 = vadd.f32 %v2193_v30, %v2102_v33  ;;  %v4841_v33 = vld [vmem:[%s4090_s10 + $0xf8] sm:$0xff] }
 0x138   : > { %756 = vrot.lane.b32.xlu2 %v4659_v35, %s4027_s16 }
 0x139   : > { %628 = vrot.lane.b32.xlu1 %v4546_v60, %s4024_s13  ;;  %1394 = vrot.lane.b32.xlu0 %v4753_v36, %s4028_s17  ;;  %vm2257_vm11 = vcmp.gt.f32.partialorder %v2225_v13, 0.0  ;;  %v2291_v20 = vmul.f32 %v4640_v29, %v2225_v13 }
 0x13a   : > { %v4763_v42 = vpop.permute.xlu2 %1002 }
 0x13b   : > { %v617_v3 = vpop.permute.xlu1 %616  ;;  %v1383_v50 = vpop.permute.xlu0 %1382  ;;  %v2323_v51 = vsel %vm2257_vm11, %v2225_v13, %v2291_v20  ;;  %v4786_v57 = vld [vmem:[#allocation5] ss:$2 sm:$0xff]  ;;  %v4788_v48 = vld [vmem:[#allocation5 + $0x1] ss:$2 sm:$0xff]  ;;  %v4844_v13 = vld [vmem:[%s4090_s10 + $0x122] sm:$0xff] }
 0x13c   : > { %v1668_v60 = vsel %vm1658_vm6, %v1635_v32, %v1383_v50  ;;  %2401 = vst.msk [vmem:[#allocation2 + $0x31] sm:$0xff] %vm1493_vm1, %v2323_v51  ;;  %v1471_v35 = vsel %vm1460_vm0, %v4298_v53, %v617_v3  ;;  %v4784_v52 = vld [vmem:[#allocation5 + $0x2] ss:$2 sm:$0xff] }
 0x13d   : > { %2008 = vmatmul.f32.gmra.mxu0 %v1668_v60  ;;  %v1504_v53 = vsel %vm1493_vm1, %v1471_v35, %v4697_v39  ;;  %v4808_v39 = vld [vmem:[%s4090_s10 + $0xf2] sm:$0xff]  ;;  %1775 = vst.msk [vmem:[#allocation3 + $0x148] sm:$0xff] %vm1460_vm0, %v4844_v13  ;;  %v2195_v35 = vld [vmem:[%s6287_s2 + $0x20] sm:$0xff] }
 0x13e   : > { %1771 = vst.msk [vmem:[#allocation3 + $0x108] sm:$0xff] %vm1460_vm0, %v4808_v39  ;;  %v1812_v3 = vld [vmem:[#allocation3 + $0xc8] sm:$0xff] }
 0x13f   : > { %3917 = vmatmul.msk.f32.gmra.mxu1 %vm1460_vm0, %v1812_v3 }
 0x140   : > { %1140 = vrot.lane.b32.xlu2 %v4695_v54, %s4022_s11 }
 0x141   : > { %1012 = vrot.lane.b32.xlu1 %v4676_v45, %s4026_s15  ;;  %884 = vrot.lane.b32.xlu0 %v4679_v49, %s4023_s12 }
 0x142   : > { %v4782_v24 = vpop.permute.xlu2 %1386 }
 0x143   : > { %v1001_v41 = vpop.permute.xlu1 %1000  ;;  %v2599_v15 = vld [vmem:[#allocation2 + $0x30] sm:$0xff]  ;;  %v873_v46 = vpop.permute.xlu0 %872 }
 0x144   : > { %v2434_v58 = vld [vmem:[#allocation2 + $0x30] sm:$0xff]  ;;  %2623 = vst.msk [vmem:[#allocation5] sm:$0xff] %vm1493_vm1, %v2599_v15  ;;  %v1537_v11 = vsel %vm1526_vm2, %v1504_v53, %v873_v46  ;;  %v4868_v53 = vld [vmem:[%s4090_s10 + $0xfa] sm:$0xff] }
 0x145   : > { %2458 = vst.msk [vmem:[#allocation5 + $0x18] sm:$0xff] %vm1493_vm1, %v2434_v58  ;;  %v1570_v0 = vsel %vm1559_vm3, %v1537_v11, %v1001_v41 }
 0x146   : > { %v1603_v17 = vsel %vm1592_vm4, %v1570_v0, %v4719_v61  ;;  %1772 = vst.msk [vmem:[#allocation3 + $0x118] sm:$0xff] %vm1460_vm0, %v4868_v53 }
 0x148   : > { %630 = vrot.lane.b32.xlu2 %v4603_v10, %s4024_s13 }
 0x149   : > { %1396 = vrot.lane.b32.xlu1 %v4795_v4, %s4028_s17  ;;  %1268 = vrot.lane.b32.xlu0 %v4800_v5, %s4025_s14 }
 0x14a   : > { %v4814_v6 = vpop.permute.xlu2 %876  ;;  %v1991_v10 = vpop.f32.mrf.mxu0 }
 0x14b   : > { %v1385_v7 = vpop.permute.xlu1 %1384  ;;  %v1257_v2 = vpop.permute.xlu0 %1256  ;;  %v2105_v16 = vadd.f32 %v2104_v62, %v1991_v10  ;;  %v4887_v10 = vld [vmem:[%s4090_s10 + $0x108] sm:$0xff] }
 0x14c   : > { %v1636_v37 = vsel %vm1625_vm5, %v1603_v17, %v1257_v2 }
 0x14d   : > { %v1669_v47 = vsel %vm1658_vm6, %v1636_v37, %v1385_v7  ;;  %v2226_v18 = vadd.f32 %v2194_v9, %v2105_v16  ;;  %v4893_v9 = vld [vmem:[%s4090_s10 + $0x13a] sm:$0xff]  ;;  %v2110_v37 = vpop.f32.mrf.mxu1 }
 0x14e   : > { %2011 = vmatmul.f32.gmra.mxu0 %v1669_v47  ;;  %1777 = vst.msk [vmem:[#allocation3 + $0x168] sm:$0xff] %vm1460_vm0, %v4893_v9 }
 0x14f   : > { %vm2258_vm12 = vcmp.gt.f32.partialorder %v2226_v18, 0.0  ;;  %v2292_v61 = vmul.f32 %v4640_v29, %v2226_v18 }
 0x150   : > { %1014 = vrot.lane.b32.xlu2 %v4753_v36, %s4026_s15 }
 0x151   : > { %886 = vrot.lane.b32.xlu1 %v4723_v8, %s4023_s12  ;;  %758 = vrot.lane.b32.xlu0 %v4667_v43, %s4027_s16  ;;  %v2324_v25 = vsel %vm2258_vm12, %v2226_v18, %v2292_v61 }
 0x152   : > { %v4830_v26 = vpop.permute.xlu2 %1260  ;;  %2402 = vst.msk [vmem:[#allocation2 + $0x39] sm:$0xff] %vm1493_vm1, %v2324_v25 }
 0x153   : > { %v875_v27 = vpop.permute.xlu1 %874  ;;  %v747_v21 = vpop.permute.xlu0 %746 }
 0x154   : > { %v1505_v30 = vsel %vm1493_vm1, %v1472_v28, %v747_v21  ;;  %v1814_v21 = vld [vmem:[#allocation3 + $0xd8] sm:$0xff] }
 0x155   : > { %v1538_v43 = vsel %vm1526_vm2, %v1505_v30, %v875_v27  ;;  %3918 = vmatmul.msk.f32.gmra.mxu1 %vm1460_vm0, %v1814_v21 }
 0x156   : > { %v1571_v51 = vsel %vm1559_vm3, %v1538_v43, %v4763_v42  ;;  %v2196_v43 = vld [vmem:[%s6287_s2 + $0x28] sm:$0xff] }
 0x158   : > { %1398 = vrot.lane.b32.xlu2 %v4838_v31, %s4028_s17 }
 0x159   : > { %1270 = vrot.lane.b32.xlu1 %v4841_v33, %s4025_s14  ;;  %1142 = vrot.lane.b32.xlu0 %v4766_v44, %s4022_s11  ;;  %v2600_v23 = vld [vmem:[#allocation2 + $0x38] sm:$0xff]  ;;  %v2601_v50 = vld [vmem:[#allocation2 + $0x40] sm:$0x3] }
 0x15a   : > { %v4855_v1 = vpop.permute.xlu2 %750  ;;  %2625 = vst.msk [vmem:[#allocation5 + $0x10] sm:$0x3] %vm2355_vm9, %v2601_v50  ;;  %v2435_v41 = vld [vmem:[#allocation2 + $0x38] sm:$0xff]  ;;  %v2436_v42 = vld [vmem:[#allocation2 + $0x40] sm:$0x3] }
 0x15b   : > { %v1259_v20 = vpop.permute.xlu1 %1258  ;;  %v1131_v32 = vpop.permute.xlu0 %1130  ;;  %2624 = vst.msk [vmem:[#allocation5 + $0x8] sm:$0xff] %vm1493_vm1, %v2600_v23 }
 0x15c   : > { %v1994_v60 = vpop.f32.mrf.mxu0  ;;  %v1604_v15 = vsel %vm1592_vm4, %v1571_v51, %v1131_v32  ;;  %2459 = vst.msk [vmem:[#allocation5 + $0x20] sm:$0xff] %vm1493_vm1, %v2435_v41 }
 0x15d   : > { %v2108_v46 = vadd.f32 %v2107_v22, %v1994_v60  ;;  %v1637_v58 = vsel %vm1625_vm5, %v1604_v15, %v1259_v20  ;;  %2460 = vst.msk [vmem:[#allocation5 + $0x28] sm:$0x3] %vm2355_vm9, %v2436_v42  ;;  %v4921_v20 = vld [vmem:[%s4090_s10 + $0x109] sm:$0xff] }
 0x15e   : > { %v1670_v59 = vsel %vm1658_vm6, %v1637_v58, %v4782_v24 }
 0x15f   : > { %v2227_v11 = vadd.f32 %v2195_v35, %v2108_v46  ;;  %2014 = vmatmul.f32.gmra.mxu0 %v1670_v59 }
 0x160   : > { %888 = vrot.lane.b32.xlu2 %v4800_v5, %s4023_s12 }
 0x161   : > { %760 = vrot.lane.b32.xlu1 %v4695_v54, %s4027_s16  ;;  %vm2259_vm13 = vcmp.gt.f32.partialorder %v2227_v11, 0.0  ;;  %v2293_v0 = vmul.f32 %v4640_v29, %v2227_v11  ;;  %632 = vrot.lane.b32.xlu0 %v4676_v45, %s4024_s13 }
 0x162   : > { %v4883_v24 = vpop.permute.xlu2 %1134  ;;  %v2663_v17 = vld [vmem:[#allocation5 + $0x2] ss:$2 sm:$0xff] }
 0x163   : > { %v749_v62 = vpop.permute.xlu1 %748  ;;  %v2325_v7 = vsel %vm2259_vm13, %v2227_v11, %v2293_v0  ;;  %v621_v2 = vpop.permute.xlu0 %620  ;;  %2927 = vst.msk [vmem:[#allocation4 + $0x10] sm:$0xff] %vm1493_vm1, %v2663_v17  ;;  %v4904_v16 = vld [vmem:[#allocation5 + $0x19] ss:$2 sm:$0xff]  ;;  %v4910_v61 = vld [vmem:[#allocation5 + $0x18] ss:$2 sm:$0xff]  ;;  %v1816_v0 = vld [vmem:[#allocation3 + $0xe8] sm:$0xff] }
 0x164   : > { %2403 = vst.msk [vmem:[#allocation2 + $0x49] sm:$0xff] %vm1493_vm1, %v2325_v7  ;;  %v1473_v54 = vsel %vm1460_vm0, %v4375_v40, %v621_v2  ;;  %v4908_v18 = vld [vmem:[#allocation5 + $0x1a] ss:$2 sm:$0xff]  ;;  %3919 = vmatmul.msk.f32.gmra.mxu1 %vm1460_vm0, %v1816_v0 }
 0x165   : > { %v1506_v45 = vsel %vm1493_vm1, %v1473_v54, %v749_v62  ;;  %v4955_v62 = vld [vmem:[%s4090_s10 + $0x138] sm:$0xff]  ;;  %v4969_v17 = vld [vmem:[%s4090_s10 + $0x12a] sm:$0xff] }
 0x166   : > { %v1539_v28 = vsel %vm1526_vm2, %v1506_v45, %v4814_v6  ;;  %1776 = vst.msk [vmem:[#allocation3 + $0x158] sm:$0xff] %vm1460_vm0, %v4969_v17 }
 0x168   : > { %1272 = vrot.lane.b32.xlu2 %v4887_v10, %s4025_s14 }
 0x169   : > { %1144 = vrot.lane.b32.xlu1 %v4808_v39, %s4022_s11  ;;  %1016 = vrot.lane.b32.xlu0 %v4795_v4, %s4026_s15 }
 0x16a   : > { %v4906_v40 = vpop.permute.xlu2 %624 }
 0x16b   : > { %v1133_v47 = vpop.permute.xlu1 %1132  ;;  %v2529_v25 = vld [vmem:[#allocation2 + $0x48] sm:$0xff]  ;;  %v1005_v27 = vpop.permute.xlu0 %1004 }
 0x16c   : > { %2553 = vst.msk [vmem:[#allocation5 + $0x18] sm:$0xff] %vm1493_vm1, %v2529_v25  ;;  %v1997_v30 = vpop.f32.mrf.mxu0  ;;  %v1572_v22 = vsel %vm1559_vm3, %v1539_v28, %v1005_v27  ;;  %v4981_v28 = vld [vmem:[%s4090_s10 + $0x110] sm:$0xff] }
 0x16d   : > { %v2111_v23 = vadd.f32 %v2110_v37, %v1997_v30  ;;  %v1605_v50 = vsel %vm1592_vm4, %v1572_v22, %v1133_v47  ;;  %v2197_v47 = vld [vmem:[%s6287_s2 + $0x30] sm:$0xff]  ;;  %v4984_v30 = vld [vmem:[%s4090_s10 + $0x139] sm:$0xff] }
 0x16e   : > { %v1638_v35 = vsel %vm1625_vm5, %v1605_v50, %v4830_v26  ;;  %v4992_v22 = vld [vmem:[%s4090_s10 + $0x10a] sm:$0xff] }
 0x16f   : > { %v2228_v3 = vadd.f32 %v2196_v43, %v2111_v23  ;;  %1773 = vst.msk [vmem:[#allocation3 + $0x128] sm:$0xff] %vm1460_vm0, %v4992_v22 }
 0x170   : > { %762 = vrot.lane.b32.xlu2 %v4766_v44, %s4027_s16 }
 0x171   : > { %634 = vrot.lane.b32.xlu1 %v4753_v36, %s4024_s13  ;;  %1400 = vrot.lane.b32.xlu0 %v4921_v20, %s4028_s17  ;;  %vm2260_vm14 = vcmp.gt.f32.partialorder %v2228_v3, 0.0  ;;  %v2294_v6 = vmul.f32 %v4640_v29, %v2228_v3  ;;  %v4938_v36 = vld [vmem:[%s4090_s10 + $0x121] sm:$0xff] }
 0x172   : > { %v4931_v32 = vpop.permute.xlu2 %1008 }
 0x173   : > { %v623_v51 = vpop.permute.xlu1 %622  ;;  %v1389_v60 = vpop.permute.xlu0 %1388  ;;  %v2326_v41 = vsel %vm2260_vm14, %v2228_v3, %v2294_v6 }
 0x174   : > { %v1671_v15 = vsel %vm1658_vm6, %v1638_v35, %v1389_v60  ;;  %2404 = vst.msk [vmem:[#allocation2 + $0x51] sm:$0xff] %vm1493_vm1, %v2326_v41  ;;  %v1474_v44 = vsel %vm1460_vm0, %v4401_v55, %v623_v51  ;;  %v1475_v51 = vsel %vm1460_vm0, %v4447_v19, %v4906_v40  ;;  %v5006_v35 = vld [vmem:[%s4090_s10 + $0x150] sm:$0xff] }
 0x175   : > { %2017 = vmatmul.f32.gmra.mxu0 %v1671_v15  ;;  %v1507_v11 = vsel %vm1493_vm1, %v1474_v44, %v4855_v1  ;;  %v2113_v1 = vpop.f32.mrf.mxu1  ;;  %v5009_v41 = vld [vmem:[%s4090_s10 + $0x111] sm:$0xff]  ;;  %v5017_v44 = vld [vmem:[%s4090_s10 + $0x142] sm:$0xff] }
 0x176   : > { %1778 = vst.msk [vmem:[#allocation3 + $0x178] sm:$0xff] %vm1460_vm0, %v5017_v44 }
 0x178   : > { %772 = vrot.lane.b32.xlu2 %v4844_v13, %s4027_s16 }
 0x179   : > { %890 = vrot.lane.b32.xlu1 %v4841_v33, %s4023_s12  ;;  %644 = vrot.lane.b32.xlu0 %v4938_v36, %s4024_s13 }
 0x17a   : > { %v4948_v26 = vpop.permute.xlu2 %1392 }
 0x17b   : > { %v1007_v46 = vpop.permute.xlu1 %1006  ;;  %v879_v58 = vpop.permute.xlu0 %878  ;;  %v2530_v42 = vld [vmem:[#allocation2 + $0x50] sm:$0xff]  ;;  %v2531_v59 = vld [vmem:[#allocation2 + $0x58] sm:$0x3] }
 0x17c   : > { %2554 = vst.msk [vmem:[#allocation5 + $0x20] sm:$0xff] %vm1493_vm1, %v2530_v42  ;;  %v1540_v33 = vsel %vm1526_vm2, %v1507_v11, %v879_v58  ;;  %v1818_v11 = vld [vmem:[#allocation3 + $0xf8] sm:$0xff] }
 0x17d   : > { %2555 = vst.msk [vmem:[#allocation5 + $0x28] sm:$0x3] %vm2355_vm9, %v2531_v59  ;;  %v1573_v55 = vsel %vm1559_vm3, %v1540_v33, %v1007_v46  ;;  %v2116_v19 = vpop.f32.mrf.mxu1  ;;  %3920 = vmatmul.msk.f32.gmra.mxu1 %vm1460_vm0, %v1818_v11 }
 0x17e   : > { %v1606_v45 = vsel %vm1592_vm4, %v1573_v55, %v4883_v24 }
 0x180   : > { %1146 = vrot.lane.b32.xlu2 %v4868_v53, %s4022_s11 }
 0x181   : > { %900 = vrot.lane.b32.xlu1 %v4955_v62, %s4023_s12  ;;  %1018 = vrot.lane.b32.xlu0 %v4838_v31, %s4026_s15 }
 0x182   : > { %v4966_v7 = vpop.permute.xlu2 %882  ;;  %v2000_v37 = vpop.f32.mrf.mxu0 }
 0x183   : > { %v1391_v2 = vpop.permute.xlu1 %1390  ;;  %v1263_v54 = vpop.permute.xlu0 %1262  ;;  %v2114_v27 = vadd.f32 %v2113_v1, %v2000_v37  ;;  %v5019_v46 = vld [vmem:[#allocation5 + $0x18] ss:$2 sm:$0xff]  ;;  %v5027_v58 = vld [vmem:[#allocation5 + $0x19] ss:$2 sm:$0xff] }
 0x184   : > { %v1639_v25 = vsel %vm1625_vm5, %v1606_v45, %v1263_v54  ;;  %v5025_v40 = vld [vmem:[#allocation5 + $0x1a] ss:$2 sm:$0xff] }
 0x185   : > { %v1672_v21 = vsel %vm1658_vm6, %v1639_v25, %v1391_v2  ;;  %v2229_v43 = vadd.f32 %v2197_v47, %v2114_v27  ;;  %v2198_v2 = vld [vmem:[%s6287_s2 + $0x38] sm:$0xff]  ;;  %v5042_v47 = vld [vmem:[%s4090_s10 + $0x129] sm:$0xff] }
 0x186   : > { %2020 = vmatmul.f32.gmra.mxu0 %v1672_v21  ;;  %v5047_v25 = vld [vmem:[%s4090_s10 + $0x151] sm:$0xff] }
 0x187   : > { %vm2261_vm15 = vcmp.gt.f32.partialorder %v2229_v43, 0.0  ;;  %v2295_v24 = vmul.f32 %v4640_v29, %v2229_v43 }
 0x188   : > { %1156 = vrot.lane.b32.xlu2 %v4893_v9, %s4022_s11 }
 0x189   : > { %1274 = vrot.lane.b32.xlu1 %v4981_v28, %s4025_s14  ;;  %1028 = vrot.lane.b32.xlu0 %v4984_v30, %s4026_s15  ;;  %v2327_v23 = vsel %vm2261_vm15, %v2229_v43, %v2295_v24 }
 0x18a   : > { %v4998_v3 = vpop.permute.xlu2 %1266  ;;  %2405 = vst.msk [vmem:[#allocation2 + $0x61] sm:$0xff] %vm1493_vm1, %v2327_v23 }
 0x18b   : > { %v881_v50 = vpop.permute.xlu1 %880  ;;  %v753_v6 = vpop.permute.xlu0 %752 }
 0x18c   : > { %v1508_v60 = vsel %vm1493_vm1, %v1475_v51, %v753_v6  ;;  %v2119_v6 = vpop.f32.mrf.mxu1 }
 0x18d   : > { %v1541_v15 = vsel %vm1526_vm2, %v1508_v60, %v881_v50 }
 0x18e   : > { %v1574_v55 = vsel %vm1559_vm3, %v1541_v15, %v4931_v32 }
 0x190   : > { %636 = vrot.lane.b32.xlu2 %v4795_v4, %s4024_s13 }
 0x191   : > { %1284 = vrot.lane.b32.xlu1 %v5006_v35, %s4025_s14  ;;  %1402 = vrot.lane.b32.xlu0 %v5009_v41, %s4028_s17  ;;  %v2602_v4 = vld [vmem:[#allocation2 + $0x60] sm:$0xff] }
 0x192   : > { %v5029_v42 = vpop.permute.xlu2 %756  ;;  %v2437_v0 = vld [vmem:[#allocation2 + $0x60] sm:$0xff]  ;;  %2626 = vst.msk [vmem:[#allocation5 + $0x18] sm:$0xff] %vm1493_vm1, %v2602_v4 }
 0x193   : > { %v1265_v59 = vpop.permute.xlu1 %1264  ;;  %v1137_v33 = vpop.permute.xlu0 %1136  ;;  %2461 = vst.msk [vmem:[#allocation5 + $0x30] sm:$0xff] %vm1493_vm1, %v2437_v0 }
 0x194   : > { %v2003_v1 = vpop.f32.mrf.mxu0  ;;  %v1607_v54 = vsel %vm1592_vm4, %v1574_v55, %v1137_v33 }
 0x195   : > { %v2117_v45 = vadd.f32 %v2116_v19, %v2003_v1  ;;  %v1640_v37 = vsel %vm1625_vm5, %v1607_v54, %v1265_v59  ;;  %v1820_v59 = vld [vmem:[#allocation3 + $0x108] sm:$0xff]  ;;  %v5080_v1 = vld [vmem:[%s4090_s10 + $0x141] sm:$0xff] }
 0x196   : > { %v1673_v32 = vsel %vm1658_vm6, %v1640_v37, %v4948_v26  ;;  %3921 = vmatmul.msk.f32.gmra.mxu1 %vm1460_vm0, %v1820_v59  ;;  %v5084_v54 = vld [vmem:[%s4090_s10 + $0x140] sm:$0xff] }
 0x197   : > { %v2230_v27 = vadd.f32 %v2198_v2, %v2117_v45  ;;  %2023 = vmatmul.f32.gmra.mxu0 %v1673_v32 }
 0x198   : > { %646 = vrot.lane.b32.xlu2 %v5042_v47, %s4024_s13 }
 0x199   : > { %764 = vrot.lane.b32.xlu1 %v4808_v39, %s4027_s16  ;;  %vm2262_vm7 = vcmp.gt.f32.partialorder %v2230_v27, 0.0  ;;  %v2296_v21 = vmul.f32 %v4640_v29, %v2230_v27  ;;  %1412 = vrot.lane.b32.xlu0 %v5047_v25, %s4028_s17 }
 0x19a   : > { %v5056_v43 = vpop.permute.xlu2 %1140 }
 0x19b   : > { %v755_v24 = vpop.permute.xlu1 %754  ;;  %v2328_v26 = vsel %vm2262_vm7, %v2230_v27, %v2296_v21  ;;  %v627_v23 = vpop.permute.xlu0 %626 }
 0x19c   : > { %2406 = vst.msk [vmem:[#allocation2 + $0x69] sm:$0xff] %vm1493_vm1, %v2328_v26  ;;  %v1476_v50 = vsel %vm1460_vm0, %v4479_v38, %v627_v23 }
 0x19d   : > { %v1509_v39 = vsel %vm1493_vm1, %v1476_v50, %v755_v24 }
 0x19e   : > { %v1542_v0 = vsel %vm1526_vm2, %v1509_v39, %v4966_v7  ;;  %v5102_v39 = vld [vmem:[%s4090_s10 + $0x120] sm:$0xff] }
 0x1a0   : > { %1020 = vrot.lane.b32.xlu2 %v4921_v20, %s4026_s15 }
 0x1a1   : > { %774 = vrot.lane.b32.xlu1 %v4969_v17, %s4027_s16  ;;  %892 = vrot.lane.b32.xlu0 %v4887_v10, %s4023_s12  ;;  %v2199_v10 = vld [vmem:[%s6287_s2 + $0x40] sm:$0xff] }
 0x1a2   : > { %v5068_v60 = vpop.permute.xlu2 %630 }
 0x1a3   : > { %v2603_v51 = vld [vmem:[#allocation2 + $0x68] sm:$0xff]  ;;  %v1139_v15 = vpop.permute.xlu1 %1138  ;;  %v2604_v19 = vld [vmem:[#allocation2 + $0x70] sm:$0x3]  ;;  %v1011_v4 = vpop.permute.xlu0 %1010 }
 0x1a4   : > { %v2438_v38 = vld [vmem:[#allocation2 + $0x68] sm:$0xff]  ;;  %2628 = vst.msk [vmem:[#allocation5 + $0x28] sm:$0x3] %vm2355_vm9, %v2604_v19  ;;  %v2439_v11 = vld [vmem:[#allocation2 + $0x70] sm:$0x3]  ;;  %v2006_v33 = vpop.f32.mrf.mxu0  ;;  %v1575_v55 = vsel %vm1559_vm3, %v1542_v0, %v1011_v4 }
 0x1a5   : > { %2627 = vst.msk [vmem:[#allocation5 + $0x20] sm:$0xff] %vm1493_vm1, %v2603_v51  ;;  %v2120_v2 = vadd.f32 %v2119_v6, %v2006_v33  ;;  %v1608_v45 = vsel %vm1592_vm4, %v1575_v55, %v1139_v15  ;;  %v5110_v6 = vld [vmem:[%s4090_s10 + $0x112] sm:$0xff]  ;;  %v1822_v0 = vld [vmem:[#allocation3 + $0x118] sm:$0xff] }
 0x1a6   : > { %2462 = vst.msk [vmem:[#allocation5 + $0x38] sm:$0xff] %vm1493_vm1, %v2438_v38  ;;  %v1641_v24 = vsel %vm1625_vm5, %v1608_v45, %v4998_v3  ;;  %3922 = vmatmul.msk.f32.gmra.mxu1 %vm1460_vm0, %v1822_v0  ;;  %v5135_v55 = vld [vmem:[%s4090_s10 + $0x158] sm:$0xff] }
 0x1a7   : > { %2463 = vst.msk [vmem:[#allocation5 + $0x40] sm:$0x3] %vm2355_vm9, %v2439_v11  ;;  %v2231_v7 = vadd.f32 %v2199_v10, %v2120_v2  ;;  %v5131_v10 = vld [vmem:[%s4090_s10 + $0x159] sm:$0xff] }
 0x1a8   : > { %1030 = vrot.lane.b32.xlu2 %v5080_v1, %s4026_s15  ;;  %1774 = vst.msk [vmem:[#allocation3 + $0x138] sm:$0xff] %vm1460_vm0, %v5110_v6 }
 0x1a9   : > { %1148 = vrot.lane.b32.xlu1 %v4992_v22, %s4022_s11  ;;  %902 = vrot.lane.b32.xlu0 %v5084_v54, %s4023_s12  ;;  %vm2263_vm8 = vcmp.gt.f32.partialorder %v2231_v7, 0.0  ;;  %v2297_v37 = vmul.f32 %v4640_v29, %v2231_v7 }
 0x1aa   : > { %v5095_v32 = vpop.permute.xlu2 %1014 }
 0x1ab   : > { %v629_v27 = vpop.permute.xlu1 %628  ;;  %v1395_v21 = vpop.permute.xlu0 %1394  ;;  %v2329_v26 = vsel %vm2263_vm8, %v2231_v7, %v2297_v37  ;;  %v5147_v37 = vld [vmem:[%s4090_s10 + $0x152] sm:$0xff] }
 0x1ac   : > { %v2664_v23 = vld [vmem:[#allocation5 + $0x1a] ss:$2 sm:$0xff]  ;;  %v1674_v50 = vsel %vm1658_vm6, %v1641_v24, %v1395_v21  ;;  %2407 = vst.msk [vmem:[#allocation2 + $0x79] sm:$0xff] %vm1493_vm1, %v2329_v26  ;;  %v1477_v3 = vsel %vm1460_vm0, %v4515_v56, %v629_v27 }
 0x1ad   : > { %2026 = vmatmul.f32.gmra.mxu0 %v1674_v50  ;;  %2928 = vst.msk [vmem:[#allocation4 + $0x28] sm:$0xff] %vm1493_vm1, %v2664_v23  ;;  %v5120_v19 = vld [vmem:[#allocation5 + $0x31] ss:$2 sm:$0xff]  ;;  %v5124_v59 = vld [vmem:[#allocation5 + $0x30] ss:$2 sm:$0xff]  ;;  %v1510_v56 = vsel %vm1493_vm1, %v1477_v3, %v5029_v42  ;;  %v2122_v42 = vpop.f32.mrf.mxu1 }
 0x1ae   : > { %v5122_v4 = vld [vmem:[#allocation5 + $0x32] ss:$2 sm:$0xff]  ;;  %1779 = vst.msk [vmem:[#allocation3 + $0x188] sm:$0xff] %vm1460_vm0, %v5147_v37 }
 0x1af   : > { %v2200_v26 = vld [vmem:[%s6287_s2 + $0x48] sm:$0xff] }
 0x1b0   : > { %1404 = vrot.lane.b32.xlu2 %v4938_v36, %s4028_s17 }
 0x1b1   : > { %1158 = vrot.lane.b32.xlu1 %v5017_v44, %s4022_s11  ;;  %1276 = vrot.lane.b32.xlu0 %v5102_v39, %s4025_s14 }
 0x1b2   : > { %v5118_v51 = vpop.permute.xlu2 %1398 }
 0x1b3   : > { %v1013_v15 = vpop.permute.xlu1 %1012  ;;  %v885_v38 = vpop.permute.xlu0 %884  ;;  %v2532_v11 = vld [vmem:[#allocation2 + $0x78] sm:$0xff] }
 0x1b4   : > { %2556 = vst.msk [vmem:[#allocation5 + $0x30] sm:$0xff] %vm1493_vm1, %v2532_v11  ;;  %v1543_v33 = vsel %vm1526_vm2, %v1510_v56, %v885_v38 }
 0x1b5   : > { %v1576_v2 = vsel %vm1559_vm3, %v1543_v33, %v1013_v15 }
 0x1b6   : > { %v1609_v21 = vsel %vm1592_vm4, %v1576_v2, %v5056_v43  ;;  %v2125_v2 = vpop.f32.mrf.mxu1 }
 0x1b8   : > { %1414 = vrot.lane.b32.xlu2 %v5131_v10, %s4028_s17 }
 0x1b9   : > { %638 = vrot.lane.b32.xlu1 %v4838_v31, %s4024_s13  ;;  %1286 = vrot.lane.b32.xlu0 %v5135_v55, %s4025_s14 }
 0x1ba   : > { %v5144_v7 = vpop.permute.xlu2 %888  ;;  %v2009_v24 = vpop.f32.mrf.mxu0 }
 0x1bb   : > { %v1397_v45 = vpop.permute.xlu1 %1396  ;;  %v1269_v27 = vpop.permute.xlu0 %1268  ;;  %v2123_v23 = vadd.f32 %v2122_v42, %v2009_v24  ;;  %v2201_v24 = vld [vmem:[%s6287_s2 + $0x50] sm:$0xff] }
 0x1bc   : > { %v1642_v31 = vsel %vm1625_vm5, %v1609_v21, %v1269_v27 }
 0x1bd   : > { %v1675_v50 = vsel %vm1658_vm6, %v1642_v31, %v1397_v45  ;;  %v2232_v3 = vadd.f32 %v2200_v26, %v2123_v23  ;;  %v5192_v23 = vld [vmem:[%s4090_s10 + $0x128] sm:$0xff] }
 0x1be   : > { %2029 = vmatmul.f32.gmra.mxu0 %v1675_v50 }
 0x1bf   : > { %vm2264_vm10 = vcmp.gt.f32.partialorder %v2232_v3, 0.0  ;;  %v2298_v43 = vmul.f32 %v4640_v29, %v2232_v3 }
 0x1c0   : > { %894 = vrot.lane.b32.xlu2 %v4981_v28, %s4023_s12  ;;  %v1478_v28 = vsel %vm1460_vm0, %v4608_v12, %v5068_v60 }
 0x1c1   : > { %648 = vrot.lane.b32.xlu1 %v4984_v30, %s4024_s13  ;;  %766 = vrot.lane.b32.xlu0 %v4868_v53, %s4027_s16  ;;  %v2330_v15 = vsel %vm2264_vm10, %v2232_v3, %v2298_v43  ;;  %v1824_v53 = vld [vmem:[#allocation3 + $0x128] sm:$0xff]  ;;  %v1826_v43 = vld [vmem:[#allocation3 + $0x138] sm:$0xff] }
 0x1c2   : > { %v5165_v38 = vpop.permute.xlu2 %1272  ;;  %2408 = vst.msk [vmem:[#allocation2 + $0x81] sm:$0xff] %vm1493_vm1, %v2330_v15  ;;  %3923 = vmatmul.msk.f32.gmra.mxu1 %vm1460_vm0, %v1824_v53 }
 0x1c3   : > { %v887_v11 = vpop.permute.xlu1 %886  ;;  %v759_v56 = vpop.permute.xlu0 %758 }
 0x1c4   : > { %v1511_v0 = vsel %vm1493_vm1, %v1478_v28, %v759_v56  ;;  %v5208_v28 = vld [vmem:[%s4090_s10 + $0x15a] sm:$0xff] }
 0x1c5   : > { %v1544_v33 = vsel %vm1526_vm2, %v1511_v0, %v887_v11  ;;  %v5211_v0 = vld [vmem:[%s4090_s10 + $0x168] sm:$0xff]  ;;  %1780 = vst.msk [vmem:[#allocation3 + $0x198] sm:$0xff] %vm1460_vm0, %v5208_v28 }
 0x1c8   : > { %904 = vrot.lane.b32.xlu2 %v5006_v35, %s4023_s12  ;;  %v1577_v35 = vsel %vm1559_vm3, %v1544_v33, %v5095_v32  ;;  %v1828_v33 = vld [vmem:[#allocation3 + $0x148] sm:$0xff] }
 0x1c9   : > { %1022 = vrot.lane.b32.xlu1 %v5009_v41, %s4026_s15  ;;  %776 = vrot.lane.b32.xlu0 %v4893_v9, %s4027_s16  ;;  %v2533_v60 = vld [vmem:[#allocation2 + $0x80] sm:$0xff]  ;;  %v2534_v45 = vld [vmem:[#allocation2 + $0x88] sm:$0x3] }
 0x1ca   : > { %v5180_v42 = vpop.permute.xlu2 %762  ;;  %2557 = vst.msk [vmem:[#allocation5 + $0x38] sm:$0xff] %vm1493_vm1, %v2533_v60  ;;  %3924 = vmatmul.msk.f32.gmra.mxu1 %vm1460_vm0, %v1826_v43 }
 0x1cb   : > { %v1271_v12 = vpop.permute.xlu1 %1270  ;;  %v1143_v27 = vpop.permute.xlu0 %1142  ;;  %2558 = vst.msk [vmem:[#allocation5 + $0x40] sm:$0x3] %vm2355_vm9, %v2534_v45 }
 0x1cc   : > { %v2012_v21 = vpop.f32.mrf.mxu0  ;;  %v1610_v9 = vsel %vm1592_vm4, %v1577_v35, %v1143_v27 }
 0x1cd   : > { %v2126_v26 = vadd.f32 %v2125_v2, %v2012_v21  ;;  %v1643_v31 = vsel %vm1625_vm5, %v1610_v9, %v1271_v12  ;;  %v2128_v2 = vpop.f32.mrf.mxu1 }
 0x1ce   : > { %v1676_v32 = vsel %vm1658_vm6, %v1643_v31, %v5118_v51 }
 0x1cf   : > { %v2233_v50 = vadd.f32 %v2201_v24, %v2126_v26  ;;  %2032 = vmatmul.f32.gmra.mxu0 %v1676_v32  ;;  %v2202_v26 = vld [vmem:[%s6287_s2 + $0x58] sm:$0xff]  ;;  %v5242_v32 = vld [vmem:[%s4090_s10 + $0x169] sm:$0xff] }
 0x1d0   : > { %1278 = vrot.lane.b32.xlu2 %v5192_v23, %s4025_s14 }
 0x1d1   : > { %1032 = vrot.lane.b32.xlu1 %v5047_v25, %s4026_s15  ;;  %vm2265_vm11 = vcmp.gt.f32.partialorder %v2233_v50, 0.0  ;;  %v2299_v3 = vmul.f32 %v4640_v29, %v2233_v50  ;;  %1150 = vrot.lane.b32.xlu0 %v5110_v6, %s4022_s11  ;;  %v5225_v12 = vld [vmem:[#allocation5 + $0x30] ss:$2 sm:$0xff]  ;;  %v5231_v35 = vld [vmem:[#allocation5 + $0x31] ss:$2 sm:$0xff] }
 0x1d2   : > { %v5204_v15 = vpop.permute.xlu2 %772  ;;  %3925 = vmatmul.msk.f32.gmra.mxu1 %vm1460_vm0, %v1828_v33  ;;  %v5229_v27 = vld [vmem:[#allocation5 + $0x32] ss:$2 sm:$0xff] }
 0x1d3   : > { %v761_v51 = vpop.permute.xlu1 %760  ;;  %v2331_v11 = vsel %vm2265_vm11, %v2233_v50, %v2299_v3  ;;  %v633_v56 = vpop.permute.xlu0 %632 }
 0x1d4   : > { %2409 = vst.msk [vmem:[#allocation2 + $0x91] sm:$0xff] %vm1493_vm1, %v2331_v11  ;;  %v1479_v29 = vsel %vm1460_vm0, %v4679_v49, %v633_v56 }
 0x1d5   : > { %v1512_v53 = vsel %vm1493_vm1, %v1479_v29, %v761_v51  ;;  %v5254_v51 = vld [vmem:[%s6288_s3] ss:$0 sm:$0xff] }
 0x1d6   : > { %v1545_v24 = vsel %vm1526_vm2, %v1512_v53, %v5144_v7  ;;  %v1830_v7 = vld [vmem:[#allocation3 + $0x158] sm:$0xff] }
 0x1d8   : > { %1288 = vrot.lane.b32.xlu2 %v5211_v0, %s4025_s14 }
 0x1d9   : > { %1406 = vrot.lane.b32.xlu1 %v5042_v47, %s4028_s17  ;;  %1160 = vrot.lane.b32.xlu0 %v5147_v37, %s4022_s11 }
 0x1da   : > { %v5227_v49 = vpop.permute.xlu2 %1146  ;;  %3926 = vmatmul.msk.f32.gmra.mxu1 %vm1460_vm0, %v1830_v7  ;;  %v2203_v7 = vld [vmem:[%s6287_s2 + $0x60] sm:$0xff] }
 0x1db   : > { %v2605_v60 = vld [vmem:[#allocation2 + $0x90] sm:$0xff]  ;;  %v1145_v45 = vpop.permute.xlu1 %1144  ;;  %v1017_v21 = vpop.permute.xlu0 %1016 }
 0x1dc   : > { %2629 = vst.msk [vmem:[#allocation5 + $0x30] sm:$0xff] %vm1493_vm1, %v2605_v60  ;;  %v2015_v9 = vpop.f32.mrf.mxu0  ;;  %v1578_v31 = vsel %vm1559_vm3, %v1545_v24, %v1017_v21 }
 0x1dd   : > { %2464 = vst.msk [vmem:[#allocation5 + $0x48] sm:$0xff] %vm1493_vm1, %v2605_v60  ;;  %v2129_v50 = vadd.f32 %v2128_v2, %v2015_v9  ;;  %v1611_v43 = vsel %vm1592_vm4, %v1578_v31, %v1145_v45  ;;  %v1832_v2 = vld [vmem:[#allocation3 + $0x168] sm:$0xff] }
 0x1de   : > { %v1644_v33 = vsel %vm1625_vm5, %v1611_v43, %v5165_v38 }
 0x1df   : > { %v2234_v3 = vadd.f32 %v2202_v26, %v2129_v50  ;;  %v2131_v26 = vpop.f32.mrf.mxu1 }
 0x1e0   : > { %768 = vrot.lane.b32.xlu2 %v4992_v22, %s4027_s16 }
 0x1e1   : > { %1416 = vrot.lane.b32.xlu1 %v5242_v32, %s4028_s17  ;;  %640 = vrot.lane.b32.xlu0 %v4921_v20, %s4024_s13  ;;  %vm2266_vm12 = vcmp.gt.f32.partialorder %v2234_v3, 0.0  ;;  %v2300_v11 = vmul.f32 %v5254_v51, %v2234_v3 }
 0x1e2   : > { %v5258_v56 = vpop.permute.xlu2 %1156  ;;  %3927 = vmatmul.msk.f32.gmra.mxu1 %vm1460_vm0, %v1832_v2 }
 0x1e3   : > { %v635_v22 = vpop.permute.xlu1 %634  ;;  %v1401_v29 = vpop.permute.xlu0 %1400  ;;  %v2332_v53 = vsel %vm2266_vm12, %v2234_v3, %v2300_v11 }
 0x1e4   : > { %v1677_v20 = vsel %vm1658_vm6, %v1644_v33, %v1401_v29  ;;  %2410 = vst.msk [vmem:[#allocation2 + $0x99] sm:$0xff] %vm1493_vm1, %v2332_v53  ;;  %v1836_v29 = vld [vmem:[#allocation3 + $0x188] sm:$0xff]  ;;  %v1480_v33 = vsel %vm1460_vm0, %v4723_v8, %v635_v22 }
 0x1e5   : > { %2035 = vmatmul.f32.gmra.mxu0 %v1677_v20 }
 0x1e7   : > { %v2134_v8 = vpop.f32.mrf.mxu1 }
 0x1e8   : > { %778 = vrot.lane.b32.xlu2 %v5017_v44, %s4027_s16  ;;  %v1834_v44 = vld [vmem:[#allocation3 + $0x178] sm:$0xff] }
 0x1e9   : > { %896 = vrot.lane.b32.xlu1 %v5102_v39, %s4023_s12  ;;  %650 = vrot.lane.b32.xlu0 %v5080_v1, %s4024_s13 }
 0x1ea   : > { %v5271_v60 = vpop.permute.xlu2 %636  ;;  %3928 = vmatmul.msk.f32.gmra.mxu1 %vm1460_vm0, %v1834_v44 }
 0x1eb   : > { %v891_v38 = vpop.permute.xlu1 %890  ;;  %v2606_v45 = vld [vmem:[#allocation2 + $0x98] sm:$0xff]  ;;  %v645_v21 = vpop.permute.xlu0 %644  ;;  %v2607_v24 = vld [vmem:[#allocation2 + $0xa0] sm:$0x3] }
 0x1ec   : > { %2631 = vst.msk [vmem:[#allocation5 + $0x40] sm:$0x3] %vm2355_vm9, %v2607_v24  ;;  %v2442_v9 = vld [vmem:[#allocation2 + $0xa0] sm:$0x3]  ;;  %v1513_v24 = vsel %vm1493_vm1, %v1480_v33, %v5180_v42  ;;  %v1485_v42 = vsel %vm1460_vm0, %v5102_v39, %v645_v21  ;;  %v2204_v39 = vld [vmem:[%s6287_s2 + $0x68] sm:$0xff] }
 0x1ed   : > { %2630 = vst.msk [vmem:[#allocation5 + $0x38] sm:$0xff] %vm1493_vm1, %v2606_v45  ;;  %v1546_v44 = vsel %vm1526_vm2, %v1513_v24, %v891_v38  ;;  %v5333_v21 = vld [vmem:[%s4090_s10 + $0x16a] sm:$0xff] }
 0x1ee   : > { %2465 = vst.msk [vmem:[#allocation5 + $0x50] sm:$0xff] %vm1493_vm1, %v2606_v45 }
 0x1ef   : > { %2466 = vst.msk [vmem:[#allocation5 + $0x58] sm:$0x3] %vm2355_vm9, %v2442_v9  ;;  %v5306_v9 = vld [vmem:[%s4090_s10 + $0x170] sm:$0xff] }
 0x1f0   : > { %1152 = vrot.lane.b32.xlu2 %v4844_v13, %s4022_s11  ;;  %1781 = vst.msk [vmem:[#allocation3 + $0x1a8] sm:$0xff] %vm1460_vm0, %v5333_v21 }
 0x1f1   : > { %906 = vrot.lane.b32.xlu1 %v5135_v55, %s4023_s12  ;;  %1024 = vrot.lane.b32.xlu0 %v4938_v36, %s4026_s15 }
 0x1f2   : > { %v5284_v31 = vpop.permute.xlu2 %646  ;;  %v2018_v43 = vpop.f32.mrf.mxu0  ;;  %3929 = vmatmul.msk.f32.gmra.mxu1 %vm1460_vm0, %v1836_v29  ;;  %v1518_v29 = vsel %vm1493_vm1, %v1485_v42, %v5204_v15 }
 0x1f3   : > { %v901_v50 = vpop.permute.xlu1 %900  ;;  %v1019_v3 = vpop.permute.xlu0 %1018  ;;  %v2132_v13 = vadd.f32 %v2131_v26, %v2018_v43 }
 0x1f4   : > { %v2665_v11 = vld [vmem:[#allocation5 + $0x32] ss:$2 sm:$0xff]  ;;  %v1579_v26 = vsel %vm1559_vm3, %v1546_v44, %v1019_v3  ;;  %v1551_v33 = vsel %vm1526_vm2, %v1518_v29, %v901_v50 }
 0x1f5   : > { %2929 = vst.msk [vmem:[#allocation4 + $0x40] sm:$0xff] %vm1493_vm1, %v2665_v11  ;;  %v2235_v55 = vadd.f32 %v2203_v7, %v2132_v13  ;;  %v5316_v22 = vld [vmem:[#allocation5 + $0x49] ss:$2 sm:$0xff]  ;;  %v1612_v38 = vsel %vm1592_vm4, %v1579_v26, %v5227_v49  ;;  %v5326_v7 = vld [vmem:[#allocation5 + $0x48] ss:$2 sm:$0xff] }
 0x1f7   : > { %vm2267_vm13 = vcmp.gt.f32.partialorder %v2235_v55, 0.0  ;;  %v2301_v36 = vmul.f32 %v5254_v51, %v2235_v55 }
 0x1f8   : > { %1162 = vrot.lane.b32.xlu2 %v5208_v28, %s4022_s11 }
 0x1f9   : > { %1280 = vrot.lane.b32.xlu1 %v4955_v62, %s4025_s14  ;;  %1034 = vrot.lane.b32.xlu0 %v5131_v10, %s4026_s15  ;;  %v2333_v53 = vsel %vm2267_vm13, %v2235_v55, %v2301_v36 }
 0x1fa   : > { %v5300_v20 = vpop.permute.xlu2 %1020  ;;  %2411 = vst.msk [vmem:[#allocation2 + $0xa9] sm:$0xff] %vm1493_vm1, %v2333_v53  ;;  %v5343_v53 = vld [vmem:[%s4090_s10 + $0x171] sm:$0xff] }
 0x1fb   : > { %v1275_v2 = vpop.permute.xlu1 %1274  ;;  %v1029_v45 = vpop.permute.xlu0 %1028 }
 0x1fc   : > { %v1584_v24 = vsel %vm1559_vm3, %v1551_v33, %v1029_v45 }
 0x1fd   : > { %v1617_v15 = vsel %vm1592_vm4, %v1584_v24, %v5258_v56  ;;  %v5383_v24 = vld [vmem:[%s4090_s10 + $0x172] sm:$0xff] }
 0x1fe   : > { %1782 = vst.msk [vmem:[#allocation3 + $0x1b8] sm:$0xff] %vm1460_vm0, %v5383_v24 }
 0x200   : > { %642 = vrot.lane.b32.xlu2 %v5009_v41, %s4024_s13  ;;  %v5324_v41 = vld [vmem:[#allocation5 + $0x4a] ss:$2 sm:$0xff] }
 0x201   : > { %1290 = vrot.lane.b32.xlu1 %v5306_v9, %s4025_s14  ;;  %1408 = vrot.lane.b32.xlu0 %v4984_v30, %s4028_s17  ;;  %v2535_v13 = vld [vmem:[#allocation2 + $0xa8] sm:$0xff]  ;;  %v1645_v30 = vsel %vm1625_vm5, %v1612_v38, %v1275_v2 }
 0x202   : > { %v5322_v3 = vpop.permute.xlu2 %1030  ;;  %2559 = vst.msk [vmem:[#allocation5 + $0x48] sm:$0xff] %vm1493_vm1, %v2535_v13 }
 0x203   : > { %v1285_v43 = vpop.permute.xlu1 %1284  ;;  %v1403_v11 = vpop.permute.xlu0 %1402 }
 0x204   : > { %v2021_v55 = vpop.f32.mrf.mxu0  ;;  %v1678_v49 = vsel %vm1658_vm6, %v1645_v30, %v1403_v11  ;;  %v1650_v45 = vsel %vm1625_vm5, %v1617_v15, %v1285_v43 }
 0x205   : > { %v2135_v36 = vadd.f32 %v2134_v8, %v2021_v55  ;;  %2038 = vmatmul.f32.gmra.mxu0 %v1678_v49  ;;  %v1838_v49 = vld [vmem:[#allocation3 + $0x198] sm:$0xff] }
 0x206   : > { %3930 = vmatmul.msk.f32.gmra.mxu1 %vm1460_vm0, %v1838_v49  ;;  %v2206_v49 = vld [vmem:[%s6287_s2 + $0x78] sm:$0xff] }
 0x207   : > { %v2236_v2 = vadd.f32 %v2204_v39, %v2135_v36 }
 0x208   : > { %652 = vrot.lane.b32.xlu2 %v5047_v25, %s4024_s13 }
 0x209   : > { %770 = vrot.lane.b32.xlu1 %v5110_v6, %s4027_s16  ;;  %vm2268_vm14 = vcmp.gt.f32.partialorder %v2236_v2, 0.0  ;;  %v2302_v44 = vmul.f32 %v5254_v51, %v2236_v2  ;;  %1418 = vrot.lane.b32.xlu0 %v5343_v53, %s4028_s17  ;;  %v2137_v6 = vpop.f32.mrf.mxu1 }
 0x20a   : > { %v1405_v50 = vpop.permute.xlu2 %1404 }
 0x20b   : > { %v765_v26 = vpop.permute.xlu1 %764  ;;  %v2334_v8 = vsel %vm2268_vm14, %v2236_v2, %v2302_v44  ;;  %v1413_v42 = vpop.permute.xlu0 %1412 }
 0x20c   : > { %2412 = vst.msk [vmem:[#allocation2 + $0xb1] sm:$0xff] %vm1493_vm1, %v2334_v8  ;;  %v1683_v25 = vsel %vm1658_vm6, %v1650_v45, %v1413_v42 }
 0x20d   : > { %2053 = vmatmul.f32.vlgmr.msra.gmra.mxu2 %v1683_v25 }
 0x210   : > { %1026 = vrot.lane.b32.xlu2 %v5042_v47, %s4026_s15  ;;  %v2205_v47 = vld [vmem:[%s6287_s2 + $0x70] sm:$0xff] }
 0x211   : > { %780 = vrot.lane.b32.xlu1 %v5147_v37, %s4027_s16  ;;  %898 = vrot.lane.b32.xlu0 %v5192_v23, %s4023_s12 }
 0x212   : > { %v5364_v56 = vpop.permute.xlu2 %1414 }
 0x213   : > { %v775_v38 = vpop.permute.xlu1 %774  ;;  %v2536_v43 = vld [vmem:[#allocation2 + $0xb0] sm:$0xff]  ;;  %v2537_v13 = vld [vmem:[#allocation2 + $0xb8] sm:$0x3]  ;;  %v893_v30 = vpop.permute.xlu0 %892 }
 0x214   : > { %2560 = vst.msk [vmem:[#allocation5 + $0x50] sm:$0xff] %vm1493_vm1, %v2536_v43  ;;  %v2024_v11 = vpop.f32.mrf.mxu0 }
 0x215   : > { %2561 = vst.msk [vmem:[#allocation5 + $0x58] sm:$0x3] %vm2355_vm9, %v2537_v13  ;;  %v2138_v37 = vadd.f32 %v2137_v6, %v2024_v11  ;;  %v5416_v13 = vld [vmem:[%s4090_s10 + $0x181] sm:$0xff] }
 0x216   : > { %v3837_v11 = vld [vmem:[%s4090_s10 + $0x180] sm:$0xff] }
 0x217   : > { %v2237_v55 = vadd.f32 %v2205_v47, %v2138_v37  ;;  %v5427_v37 = vld [vmem:[%s4090_s10 + $0x182] sm:$0xff] }
 0x218   : > { %1036 = vrot.lane.b32.xlu2 %v5242_v32, %s4026_s15  ;;  %1783 = vst.msk [vmem:[#allocation3 + $0x1c8] sm:$0xff] %vm1460_vm0, %v5427_v37 }
 0x219   : > { %1154 = vrot.lane.b32.xlu1 %v4969_v17, %s4022_s11  ;;  %908 = vrot.lane.b32.xlu0 %v5211_v0, %s4023_s12  ;;  %vm2269_vm15 = vcmp.gt.f32.partialorder %v2237_v55, 0.0  ;;  %v2303_v39 = vmul.f32 %v5254_v51, %v2237_v55  ;;  %v1481_v17 = vsel %vm1460_vm0, %v4800_v5, %v5271_v60 }
 0x21a   : > { %v5378_v36 = vpop.permute.xlu2 %894  ;;  %v1514_v0 = vsel %vm1493_vm1, %v1481_v17, %v765_v26 }
 0x21b   : > { %v1149_v29 = vpop.permute.xlu1 %1148  ;;  %v903_v33 = vpop.permute.xlu0 %902  ;;  %v2335_v2 = vsel %vm2269_vm15, %v2237_v55, %v2303_v39  ;;  %v1547_v44 = vsel %vm1526_vm2, %v1514_v0, %v893_v30  ;;  %v5405_v42 = vld [vmem:[#allocation5 + $0x48] ss:$2 sm:$0xff]  ;;  %v5407_v25 = vld [vmem:[#allocation5 + $0x49] ss:$2 sm:$0xff] }
 0x21c   : > { %2413 = vst.msk [vmem:[#allocation2 + $0xc1] sm:$0xff] %vm1493_vm1, %v2335_v2  ;;  %v1580_v5 = vsel %vm1559_vm3, %v1547_v44, %v5300_v20  ;;  %v5402_v26 = vld [vmem:[#allocation5 + $0x4a] ss:$2 sm:$0xff]  ;;  %v1486_v20 = vsel %vm1460_vm0, %v5192_v23, %v5284_v31  ;;  %v2140_v23 = vpop.f32.mrf.mxu1 }
 0x21d   : > { %v1613_v8 = vsel %vm1592_vm4, %v1580_v5, %v1149_v29  ;;  %v1519_v30 = vsel %vm1493_vm1, %v1486_v20, %v775_v38 }
 0x21e   : > { %v1552_v47 = vsel %vm1526_vm2, %v1519_v30, %v903_v33 }
 0x21f   : > { %v1585_v31 = vsel %vm1559_vm3, %v1552_v47, %v5322_v3  ;;  %v2207_v47 = vld [vmem:[%s6287_s2 + $0x80] sm:$0xff] }
 0x220   : > { %1410 = vrot.lane.b32.xlu2 %v5080_v1, %s4028_s17 }
 0x221   : > { %1164 = vrot.lane.b32.xlu1 %v5333_v21, %s4022_s11  ;;  %1282 = vrot.lane.b32.xlu0 %v5084_v54, %s4025_s14 }
 0x222   : > { %v5400_v60 = vpop.permute.xlu2 %904 }
 0x223   : > { %v1159_v15 = vpop.permute.xlu1 %1158  ;;  %v2608_v45 = vld [vmem:[#allocation2 + $0xc0] sm:$0xff]  ;;  %v1277_v1 = vpop.permute.xlu0 %1276 }
 0x224   : > { %v1646_v6 = vsel %vm1625_vm5, %v1613_v8, %v1277_v1  ;;  %2632 = vst.msk [vmem:[#allocation5 + $0x48] sm:$0xff] %vm1493_vm1, %v2608_v45  ;;  %v1618_v55 = vsel %vm1592_vm4, %v1585_v31, %v1159_v15  ;;  %v5454_v15 = vld [vmem:[%s4090_s10 + $0x189] sm:$0xff] }
 0x225   : > { %v1679_v43 = vsel %vm1658_vm6, %v1646_v6, %v1405_v50  ;;  %2467 = vst.msk [vmem:[#allocation5 + $0x60] sm:$0xff] %vm1493_vm1, %v2608_v45  ;;  %v5457_v8 = vld [vmem:[%s4090_s10 + $0x188] sm:$0xff] }
 0x226   : > { %2041 = vmatmul.f32.gmra.mxu0 %v1679_v43  ;;  %v5460_v45 = vld [vmem:[%s4090_s10 + $0x18a] sm:$0xff] }
 0x227   : > { %1784 = vst.msk [vmem:[#allocation3 + $0x1d8] sm:$0xff] %vm1460_vm0, %v5460_v45 }
 0x228   : > { %654 = vrot.lane.b32.xlu2 %v5131_v10, %s4024_s13 }
 0x229   : > { %1420 = vrot.lane.b32.xlu1 %v5416_v13, %s4028_s17  ;;  %1292 = vrot.lane.b32.xlu0 %v3837_v11, %s4025_s14 }
 0x22a   : > { %v5434_v50 = vpop.permute.xlu2 %1278  ;;  %v2027_v39 = vpop.f32.mrf.mxu0 }
 0x22b   : > { %v639_v38 = vpop.permute.xlu1 %638  ;;  %v1287_v10 = vpop.permute.xlu0 %1286  ;;  %v2141_v33 = vadd.f32 %v2140_v23, %v2027_v39 }
 0x22c   : > { %v1651_v29 = vsel %vm1625_vm5, %v1618_v55, %v1287_v10  ;;  %v327_v55 = vld [vmem:[%s4090_s10 + $0xf8] sm:$0xff] }
 0x22d   : > { %v1684_v3 = vsel %vm1658_vm6, %v1651_v29, %v5364_v56  ;;  %v2238_v2 = vadd.f32 %v2206_v49, %v2141_v33  ;;  %v1840_v49 = vld [vmem:[#allocation3 + $0x1a8] sm:$0xff]  ;;  %v1482_v29 = vsel %vm1460_vm0, %v327_v55, %v639_v38 }
 0x22e   : > { %2056 = vmatmul.f32.gmra.mxu2 %v1684_v3  ;;  %3931 = vmatmul.msk.f32.gmra.mxu1 %vm1460_vm0, %v1840_v49 }
 0x22f   : > { %vm2270_vm7 = vcmp.gt.f32.partialorder %v2238_v2, 0.0  ;;  %v2304_v17 = vmul.f32 %v5254_v51, %v2238_v2 }
 0x230   : > { %1038 = vrot.lane.b32.xlu2 %v5343_v53, %s4026_s15 }
 0x231   : > { %910 = vrot.lane.b32.xlu1 %v5306_v9, %s4023_s12  ;;  %782 = vrot.lane.b32.xlu0 %v5208_v28, %s4027_s16  ;;  %v2336_v0 = vsel %vm2270_vm7, %v2238_v2, %v2304_v17  ;;  %v2143_v28 = vpop.f32.mrf.mxu1 }
 0x232   : > { %v5450_v44 = vpop.permute.xlu2 %1288  ;;  %2414 = vst.msk [vmem:[#allocation2 + $0xc9] sm:$0xff] %vm1493_vm1, %v2336_v0 }
 0x233   : > { %v649_v5 = vpop.permute.xlu1 %648  ;;  %v767_v56 = vpop.permute.xlu0 %766 }
 0x234   : > { %v1515_v33 = vsel %vm1493_vm1, %v1482_v29, %v767_v56  ;;  %v1487_v56 = vsel %vm1460_vm0, %v4955_v62, %v649_v5 }
 0x235   : > { %v1548_v0 = vsel %vm1526_vm2, %v1515_v33, %v5378_v36 }
 0x238   : > { %1422 = vrot.lane.b32.xlu2 %v5454_v15, %s4028_s17 }
 0x239   : > { %1294 = vrot.lane.b32.xlu1 %v5457_v8, %s4025_s14  ;;  %1166 = vrot.lane.b32.xlu0 %v5383_v24, %s4022_s11  ;;  %v2609_v9 = vld [vmem:[#allocation2 + $0xc8] sm:$0xff]  ;;  %v2610_v20 = vld [vmem:[#allocation2 + $0xd0] sm:$0x3] }
 0x23a   : > { %v5470_v1 = vpop.permute.xlu2 %768  ;;  %2634 = vst.msk [vmem:[#allocation5 + $0x58] sm:$0x3] %vm2355_vm9, %v2610_v20  ;;  %v2445_v23 = vld [vmem:[#allocation2 + $0xd0] sm:$0x3] }
 0x23b   : > { %v1023_v6 = vpop.permute.xlu1 %1022  ;;  %v777_v43 = vpop.permute.xlu0 %776  ;;  %2633 = vst.msk [vmem:[#allocation5 + $0x50] sm:$0xff] %vm1493_vm1, %v2609_v9 }
 0x23c   : > { %v2030_v30 = vpop.f32.mrf.mxu0  ;;  %2468 = vst.msk [vmem:[#allocation5 + $0x68] sm:$0xff] %vm1493_vm1, %v2609_v9  ;;  %v2146_v9 = vpop.f32.mrf.mxu1  ;;  %v1520_v20 = vsel %vm1493_vm1, %v1487_v56, %v777_v43  ;;  %v2208_v43 = vld [vmem:[%s6287_s2 + $0x88] sm:$0xff] }
 0x23d   : > { %v2144_v31 = vadd.f32 %v2143_v28, %v2030_v30  ;;  %2469 = vst.msk [vmem:[#allocation5 + $0x70] sm:$0x3] %vm2355_vm9, %v2445_v23  ;;  %v3839_v28 = vld [vmem:[%s4090_s10 + $0x198] sm:$0xff]  ;;  %v1553_v55 = vsel %vm1526_vm2, %v1520_v20, %v5400_v60  ;;  %v3840_v20 = vld [vmem:[%s4090_s10 + $0x1a0] sm:$0xff] }
 0x23f   : > { %v2239_v10 = vadd.f32 %v2207_v47, %v2144_v31 }
 0x240   : > { %912 = vrot.lane.b32.xlu2 %v3837_v11, %s4023_s12 }
 0x241   : > { %784 = vrot.lane.b32.xlu1 %v5333_v21, %s4027_s16  ;;  %vm2271_vm8 = vcmp.gt.f32.partialorder %v2239_v10, 0.0  ;;  %v2305_v39 = vmul.f32 %v5254_v51, %v2239_v10  ;;  %656 = vrot.lane.b32.xlu0 %v5242_v32, %s4024_s13  ;;  %v1581_v32 = vsel %vm1559_vm3, %v1548_v0, %v1023_v6 }
 0x242   : > { %v5489_v3 = vpop.permute.xlu2 %778  ;;  %v2666_v21 = vld [vmem:[#allocation5 + $0x4a] ss:$2 sm:$0xff] }
 0x243   : > { %v1033_v11 = vpop.permute.xlu1 %1032  ;;  %v2337_v2 = vsel %vm2271_vm8, %v2239_v10, %v2305_v39  ;;  %v1151_v17 = vpop.permute.xlu0 %1150  ;;  %2930 = vst.msk [vmem:[#allocation4 + $0x58] sm:$0xff] %vm1493_vm1, %v2666_v21  ;;  %v5505_v36 = vld [vmem:[#allocation5 + $0x61] ss:$2 sm:$0xff] }
 0x244   : > { %2415 = vst.msk [vmem:[#allocation2 + $0xd9] sm:$0xff] %vm1493_vm1, %v2337_v2  ;;  %v1614_v38 = vsel %vm1592_vm4, %v1581_v32, %v1151_v17  ;;  %v5512_v23 = vld [vmem:[#allocation5 + $0x62] ss:$2 sm:$0xff]  ;;  %v1586_v10 = vsel %vm1559_vm3, %v1553_v55, %v1033_v11  ;;  %v2149_v2 = vpop.f32.mrf.mxu1 }
 0x245   : > { %v1647_v47 = vsel %vm1625_vm5, %v1614_v38, %v5434_v50  ;;  %v3871_v39 = vld [vmem:[%s4090_s10 + $0x199] sm:$0xff] }
 0x248   : > { %1296 = vrot.lane.b32.xlu2 %v3839_v28, %s4025_s14 }
 0x249   : > { %1168 = vrot.lane.b32.xlu1 %v5427_v37, %s4022_s11  ;;  %1040 = vrot.lane.b32.xlu0 %v5416_v13, %s4026_s15  ;;  %v5514_v37 = vld [vmem:[#allocation5 + $0x60] ss:$2 sm:$0xff] }
 0x24a   : > { %v5508_v6 = vpop.permute.xlu2 %1152 }
 0x24b   : > { %v1407_v30 = vpop.permute.xlu1 %1406  ;;  %v2538_v62 = vld [vmem:[#allocation2 + $0xd8] sm:$0xff]  ;;  %v1161_v13 = vpop.permute.xlu0 %1160 }
 0x24c   : > { %v1680_v5 = vsel %vm1658_vm6, %v1647_v47, %v1407_v30  ;;  %2562 = vst.msk [vmem:[#allocation5 + $0x60] sm:$0xff] %vm1493_vm1, %v2538_v62  ;;  %v2033_v31 = vpop.f32.mrf.mxu0  ;;  %v1619_v49 = vsel %vm1592_vm4, %v1586_v10, %v1161_v13  ;;  %v5546_v32 = vpop.f32.mrf.mxu1  ;;  %v2209_v47 = vld [vmem:[%s6287_s2 + $0x90] sm:$0xff] }
 0x24d   : > { %2044 = vmatmul.f32.gmra.mxu0 %v1680_v5  ;;  %v2147_v50 = vadd.f32 %v2146_v9, %v2033_v31  ;;  %v1652_v11 = vsel %vm1625_vm5, %v1619_v49, %v5450_v44  ;;  %v3872_v9 = vld [vmem:[%s4090_s10 + $0x1a1] sm:$0xff] }
 0x24e   : > { %v1842_v5 = vld [vmem:[#allocation3 + $0x1b8] sm:$0xff] }
 0x24f   : > { %v2240_v29 = vadd.f32 %v2208_v43, %v2147_v50  ;;  %3932 = vmatmul.msk.f32.vlgmr.msra.gmra.mxu3 %vm1460_vm0, %v1842_v5 }
 0x250   : > { %786 = vrot.lane.b32.xlu2 %v5383_v24, %s4027_s16 }
 0x251   : > { %658 = vrot.lane.b32.xlu1 %v5343_v53, %s4024_s13  ;;  %1424 = vrot.lane.b32.xlu0 %v3871_v39, %s4028_s17  ;;  %vm2272_vm10 = vcmp.gt.f32.partialorder %v2240_v29, 0.0  ;;  %v2306_v33 = vmul.f32 %v5254_v51, %v2240_v29 }
 0x252   : > { %v5532_v60 = vpop.permute.xlu2 %1162 }
 0x253   : > { %v1417_v17 = vpop.permute.xlu1 %1416  ;;  %v641_v24 = vpop.permute.xlu0 %640  ;;  %v2338_v0 = vsel %vm2272_vm10, %v2240_v29, %v2306_v33 }
 0x254   : > { %v1685_v21 = vsel %vm1658_vm6, %v1652_v11, %v1417_v17  ;;  %2416 = vst.msk [vmem:[#allocation2 + $0xe1] sm:$0xff] %vm1493_vm1, %v2338_v0  ;;  %v5562_v31 = vpop.f32.mrf.mxu1 }
 0x255   : > { %2059 = vmatmul.f32.gmra.mxu2 %v1685_v21 }
 0x258   : > { %1170 = vrot.lane.b32.xlu2 %v5460_v45, %s4022_s11 }
 0x259   : > { %1042 = vrot.lane.b32.xlu1 %v5454_v15, %s4026_s15  ;;  %914 = vrot.lane.b32.xlu0 %v5457_v8, %s4023_s12 }
 0x25a   : > { %v5544_v53 = vpop.permute.xlu2 %642 }
 0x25b   : > { %v897_v44 = vpop.permute.xlu1 %896  ;;  %v651_v28 = vpop.permute.xlu0 %650  ;;  %v2539_v38 = vld [vmem:[#allocation2 + $0xe0] sm:$0xff]  ;;  %v2540_v56 = vld [vmem:[#allocation2 + $0xe8] sm:$0x3] }
 0x25c   : > { %2563 = vst.msk [vmem:[#allocation5 + $0x68] sm:$0xff] %vm1493_vm1, %v2539_v38  ;;  %v1488_v33 = vsel %vm1460_vm0, %v5084_v54, %v651_v28 }
 0x25d   : > { %2564 = vst.msk [vmem:[#allocation5 + $0x70] sm:$0x3] %vm2355_vm9, %v2540_v56  ;;  %v1521_v54 = vsel %vm1493_vm1, %v1488_v33, %v5489_v3 }
 0x260   : > { %2679 = vrot.lane.b32.xlu2 %v4725_v63, %s4027_s16  ;;  %v328_v63 = vld [vmem:[%s4090_s10 + $0x108] sm:$0xff] }
 0x261   : > { %1426 = vrot.lane.b32.xlu1 %v3872_v9, %s4028_s17  ;;  %1298 = vrot.lane.b32.xlu0 %v3840_v20, %s4025_s14  ;;  %v1483_v55 = vsel %vm1460_vm0, %v328_v63, %v641_v24 }
 0x262   : > { %v5556_v15 = vpop.permute.xlu2 %652  ;;  %v2036_v30 = vpop.f32.mrf.mxu0 }
 0x263   : > { %v907_v8 = vpop.permute.xlu1 %906  ;;  %v1025_v45 = vpop.permute.xlu0 %1024  ;;  %v2150_v62 = vadd.f32 %v2149_v2, %v2036_v30  ;;  %v2578_v11 = vld [vmem:[#allocation5 + $0x60] ss:$2 sm:$0xff] }
 0x264   : > { %v5596_v24 = vld [vmem:[#allocation5 + $0x62] ss:$2 sm:$0xff] }
 0x265   : > { %v2241_v13 = vadd.f32 %v2209_v47, %v2150_v62  ;;  %v1844_v47 = vld [vmem:[#allocation3 + $0x1c8] sm:$0xff] }
 0x266   : > { %3933 = vmatmul.msk.f32.gmra.mxu3 %vm1460_vm0, %v1844_v47 }
 0x267   : > { %vm2273_vm11 = vcmp.gt.f32.partialorder %v2241_v13, 0.0  ;;  %v2307_v43 = vmul.f32 %v5254_v51, %v2241_v13 }
 0x268   : > { %2681 = vrot.lane.b32.xlu2 %v4904_v16, %s4027_s16 }
 0x269   : > { %2743 = vrot.lane.b32.xlu1 %v4786_v57, %s4025_s14  ;;  %2711 = vrot.lane.b32.xlu0 %v4731_v14, %s4026_s15  ;;  %v2339_v50 = vsel %vm2273_vm11, %v2241_v13, %v2307_v43  ;;  %v1516_v57 = vsel %vm1493_vm1, %v1483_v55, %v5470_v1  ;;  %v5584_v14 = vpop.f32.mrf.mxu1 }
 0x26a   : > { %2417 = vst.msk [vmem:[#allocation2 + $0xf1] sm:$0xff] %vm1493_vm1, %v2339_v50  ;;  %v5574_v49 = vpop.permute.xlu2 %1026  ;;  %v1549_v16 = vsel %vm1526_vm2, %v1516_v57, %v897_v44 }
 0x26b   : > { %v1281_v10 = vpop.permute.xlu1 %1280  ;;  %v1035_v39 = vpop.permute.xlu0 %1034  ;;  %v1582_v29 = vsel %vm1559_vm3, %v1549_v16, %v1025_v45 }
 0x26c   : > { %v1615_v1 = vsel %vm1592_vm4, %v1582_v29, %v5508_v6  ;;  %v1554_v6 = vsel %vm1526_vm2, %v1521_v54, %v907_v8 }
 0x26d   : > { %v1587_v44 = vsel %vm1559_vm3, %v1554_v6, %v1035_v39  ;;  %v334_v39 = vld [vmem:[%s4090_s10 + $0x150] sm:$0xff]  ;;  %v1846_v6 = vld [vmem:[#allocation3 + $0x1d8] sm:$0xff] }
 0x26e   : > { %v1620_v28 = vsel %vm1592_vm4, %v1587_v44, %v5532_v60  ;;  %v2210_v60 = vld [vmem:[%s6287_s2 + $0x98] sm:$0xff]  ;;  %3934 = vmatmul.msk.f32.gmra.mxu3 %vm1460_vm0, %v1846_v6 }
 0x270   : > { %2683 = vrot.lane.b32.xlu2 %v5120_v19, %s4027_s16  ;;  %v5594_v19 = vld [vmem:[#allocation5 + $0x61] ss:$2 sm:$0xff] }
 0x271   : > { %2745 = vrot.lane.b32.xlu1 %v5019_v46, %s4025_s14  ;;  %2713 = vrot.lane.b32.xlu0 %v4908_v18, %s4026_s15  ;;  %v2446_v2 = vld [vmem:[#allocation2 + $0xf0] sm:$0xff]  ;;  %v1648_v46 = vsel %vm1625_vm5, %v1615_v1, %v1281_v10  ;;  %v5614_v38 = vpop.f32.mrf.mxu1 }
 0x272   : > { %2470 = vst.msk [vmem:[#allocation5 + $0x78] sm:$0xff] %vm1493_vm1, %v2446_v2  ;;  %v5603_v0 = vpop.permute.xlu2 %1036 }
 0x273   : > { %v1291_v17 = vpop.permute.xlu1 %1290  ;;  %v1409_v21 = vpop.permute.xlu0 %1408  ;;  %2635 = vst.msk [vmem:[#allocation5 + $0x60] sm:$0xff] %vm1493_vm1, %v2446_v2 }
 0x274   : > { %v1681_v18 = vsel %vm1658_vm6, %v1648_v46, %v1409_v21  ;;  %v1653_v56 = vsel %vm1625_vm5, %v1620_v28, %v1291_v17 }
 0x275   : > { %2047 = vmatmul.f32.gmra.mxu0 %v1681_v18  ;;  %v1489_v18 = vsel %vm1460_vm0, %v334_v39, %v5556_v15 }
 0x278   : > { %2685 = vrot.lane.b32.xlu2 %v5316_v22, %s4027_s16 }
 0x279   : > { %2747 = vrot.lane.b32.xlu1 %v5225_v12, %s4025_s14  ;;  %2715 = vrot.lane.b32.xlu0 %v5122_v4, %s4026_s15  ;;  %v5628_v30 = vpop.f32.mrf.mxu1 }
 0x27a   : > { %v1411_v8 = vpop.permute.xlu2 %1410 }
 0x27b   : > { %v771_v3 = vpop.permute.xlu1 %770  ;;  %v1419_v9 = vpop.permute.xlu0 %1418 }
 0x27c   : > { %v1686_v20 = vsel %vm1658_vm6, %v1653_v56, %v1419_v9 }
 0x27d   : > { %2062 = vmatmul.f32.gmra.mxu2 %v1686_v20 }
 0x280   : > { %2687 = vrot.lane.b32.xlu2 %v5505_v36, %s4027_s16  ;;  %v329_v36 = vld [vmem:[%s4090_s10 + $0x110] sm:$0xff] }
 0x281   : > { %2749 = vrot.lane.b32.xlu1 %v5405_v42, %s4025_s14  ;;  %2717 = vrot.lane.b32.xlu0 %v5324_v41, %s4026_s15  ;;  %v1484_v63 = vsel %vm1460_vm0, %v329_v36, %v5544_v53  ;;  %v2167_v55 = vpop.f32.mrf.mxu1  ;;  %v2211_v36 = vld [vmem:[%s6287_s2 + $0xa0] sm:$0xff] }
 0x282   : > { %v2039_v22 = vpop.f32.mrf.mxu0  ;;  %v655_v62 = vpop.permute.xlu2 %654  ;;  %v1517_v43 = vsel %vm1493_vm1, %v1484_v63, %v771_v3  ;;  %v2974_v63 = vld [vmem:[%s6289_s4 + $0x78] sm:$0xff] }
 0x283   : > { %v781_v4 = vpop.permute.xlu1 %780  ;;  %v899_v12 = vpop.permute.xlu0 %898  ;;  %v2153_v45 = vadd.f32 %v5546_v32, %v2039_v22  ;;  %3019 = vmatpush.msrb.mxu2 %v2974_v63  ;;  %v2963_v63 = vld [vmem:[%s6289_s4 + $0x20] sm:$0xff] }
 0x284   : > { %v1550_v50 = vsel %vm1526_vm2, %v1517_v43, %v899_v12  ;;  %v1522_v44 = vsel %vm1493_vm1, %v1489_v18, %v781_v4  ;;  %v2973_v43 = vld [vmem:[%s6289_s4 + $0x70] sm:$0xff]  ;;  %v2216_v18 = vld [vmem:[%s6287_s2 + $0xc8] sm:$0xff] }
 0x285   : > { %v2242_v42 = vadd.f32 %v2210_v60, %v2153_v45  ;;  %v1583_v2 = vsel %vm1559_vm3, %v1550_v50, %v5574_v49  ;;  %v2972_v50 = vld [vmem:[%s6289_s4 + $0x68] sm:$0xff]  ;;  %3020 = vmatpush.msrb.mxu2 %v2973_v43 }
 0x287   : > { %vm2274_vm12 = vcmp.gt.f32.partialorder %v2242_v42, 0.0  ;;  %v2308_v41 = vmul.f32 %v5254_v51, %v2242_v42  ;;  %3021 = vmatpush.msrb.mxu2 %v2972_v50  ;;  %v337_v50 = vld [vmem:[%s4090_s10 + $0x170] sm:$0xff] }
 0x289   : > { %2751 = vrot.lane.b32.xlu1 %v2578_v11, %s4025_s14  ;;  %2719 = vrot.lane.b32.xlu0 %v5512_v23, %s4026_s15  ;;  %v2340_v5 = vsel %vm2274_vm12, %v2242_v42, %v2308_v41  ;;  %v2215_v23 = vld [vmem:[%s6287_s2 + $0xc0] sm:$0xff] }
 0x28a   : > { %2418 = vst.msk [vmem:[#allocation2 + $0xf9] sm:$0xff] %vm1493_vm1, %v2340_v5  ;;  %v1039_v46 = vpop.permute.xlu2 %1038 }
 0x28b   : > { %v1155_v13 = vpop.permute.xlu1 %1154  ;;  %v909_v32 = vpop.permute.xlu0 %908 }
 0x28c   : > { %v1616_v53 = vsel %vm1592_vm4, %v1583_v2, %v1155_v13  ;;  %v1555_v28 = vsel %vm1526_vm2, %v1522_v44, %v909_v32  ;;  %v2971_v2 = vld [vmem:[%s6289_s4 + $0x60] sm:$0xff] }
 0x28d   : > { %v1588_v15 = vsel %vm1559_vm3, %v1555_v28, %v5603_v0  ;;  %v335_v0 = vld [vmem:[%s4090_s10 + $0x158] sm:$0xff]  ;;  %3022 = vmatpush.msrb.mxu2 %v2971_v2 }
 0x28e   : > { %v1490_v5 = vsel %vm1460_vm0, %v335_v0, %v655_v62  ;;  %v2966_v0 = vld [vmem:[%s6289_s4 + $0x38] sm:$0xff] }
 0x290   : > { %v2054_v10 = vpop.f32.mrf.mxu2 }
 0x291   : > { %v2168_v57 = vadd.f32 %v2167_v55, %v2054_v10  ;;  %v2447_v16 = vld [vmem:[#allocation2 + $0xf8] sm:$0xff]  ;;  %v2448_v29 = vld [vmem:[#allocation2 + $0x100] sm:$0x3] }
 0x292   : > { %v2613_v33 = vld [vmem:[#allocation2 + $0x100] sm:$0x3]  ;;  %2471 = vst.msk [vmem:[#allocation5 + $0x80] sm:$0xff] %vm1493_vm1, %v2447_v16  ;;  %v1423_v45 = vpop.permute.xlu2 %1422 }
 0x293   : > { %v1165_v1 = vpop.permute.xlu1 %1164  ;;  %v1283_v17 = vpop.permute.xlu0 %1282  ;;  %v2247_v11 = vadd.f32 %v2215_v23, %v2168_v57  ;;  %2472 = vst.msk [vmem:[#allocation5 + $0x88] sm:$0x3] %vm2355_vm9, %v2448_v29 }
 0x294   : > { %v1649_v21 = vsel %vm1625_vm5, %v1616_v53, %v1283_v17  ;;  %2637 = vst.msk [vmem:[#allocation5 + $0x70] sm:$0x3] %vm2355_vm9, %v2613_v33  ;;  %v1621_v20 = vsel %vm1592_vm4, %v1588_v15, %v1165_v1  ;;  %v2970_v1 = vld [vmem:[%s6289_s4 + $0x58] sm:$0xff]  ;;  %v2170_v17 = vpop.f32.mrf.mxu1 }
 0x295   : > { %v1682_v54 = vsel %vm1658_vm6, %v1649_v21, %v1411_v8  ;;  %vm2279_vm13 = vcmp.gt.f32.partialorder %v2247_v11, 0.0  ;;  %v2313_v49 = vmul.f32 %v5254_v51, %v2247_v11  ;;  %2636 = vst.msk [vmem:[#allocation5 + $0x68] sm:$0xff] %vm1493_vm1, %v2447_v16  ;;  %3023 = vmatpush.msrb.mxu2 %v2970_v1  ;;  %v3903_v15 = vld [vmem:[%s4090_s10 + $0x19a] sm:$0xff]  ;;  %v2212_v1 = vld [vmem:[%s6287_s2 + $0xa8] sm:$0xff] }
 0x296   : > { %2050 = vmatmul.f32.gmra.mxu0 %v1682_v54  ;;  %1785 = vst.msk [vmem:[#allocation3 + $0x1e8] sm:$0xff] %vm1460_vm0, %v3903_v15 }
 0x297   : > { %v2345_v3 = vsel %vm2279_vm13, %v2247_v11, %v2313_v49  ;;  %v2969_v11 = vld [vmem:[%s6289_s4 + $0x50] sm:$0xff] }
 0x298   : > { %2423 = vst.msk [vmem:[#allocation2 + $0x139] sm:$0xff] %vm1493_vm1, %v2345_v3  ;;  %3024 = vmatpush.msrb.mxu2 %v2969_v11 }
 0x299   : > { %v2505_v9 = vld [vmem:[#allocation5 + $0x79] ss:$2 sm:$0xff]  ;;  %v5705_v28 = vld [vmem:[#allocation5 + $0x78] ss:$2 sm:$0xff] }
 0x29a   : > { %v2521_v4 = vld [vmem:[#allocation5 + $0x7a] ss:$2 sm:$0xff]  ;;  %2689 = vrot.lane.b32.xlu2 %v2505_v9, %s4027_s16  ;;  %v913_v10 = vpop.permute.xlu2 %912 }
 0x29b   : > { %v1421_v56 = vpop.permute.xlu1 %1420  ;;  %v1293_v8 = vpop.permute.xlu0 %1292  ;;  %2721 = vrot.lane.b32.xlu0 %v2521_v4, %s4026_s15 }
 0x29c   : > { %v1654_v12 = vsel %vm1625_vm5, %v1621_v20, %v1293_v8  ;;  %v2667_v60 = vld [vmem:[#allocation5 + $0x62] ss:$2 sm:$0xff] }
 0x29d   : > { %v1687_v22 = vsel %vm1658_vm6, %v1654_v12, %v1421_v56  ;;  %2931 = vst.msk [vmem:[#allocation4 + $0x70] sm:$0xff] %vm1493_vm1, %v2667_v60  ;;  %v2968_v12 = vld [vmem:[%s6289_s4 + $0x48] sm:$0xff]  ;;  %v2967_v60 = vld [vmem:[%s6289_s4 + $0x40] sm:$0xff] }
 0x29e   : > { %2065 = vmatmul.f32.gmra.mxu2 %v1687_v22 }
 0x29f   : > { %3025 = vmatpush.msrb.mxu2 %v2968_v12  ;;  %v2217_v12 = vld [vmem:[%s6287_s2 + $0xd0] sm:$0xff] }
 0x2a1   : > { %3026 = vmatpush.msrb.mxu2 %v2967_v60 }
 0x2a2   : > { %v1297_v54 = vpop.permute.xlu2 %1296 }
 0x2a3   : > { %v911_v47 = vpop.permute.xlu1 %910  ;;  %v783_v42 = vpop.permute.xlu0 %782  ;;  %3027 = vmatpush.msrb.mxu2 %v2966_v0 }
 0x2a4   : > { %v2042_v41 = vpop.f32.mrf.mxu0  ;;  %v1523_v32 = vsel %vm1493_vm1, %v1490_v5, %v783_v42  ;;  %v3904_v42 = vld [vmem:[%s4090_s10 + $0x1a2] sm:$0xff]  ;;  %v2965_v5 = vld [vmem:[%s6289_s4 + $0x30] sm:$0xff] }
 0x2a5   : > { %v2156_v13 = vadd.f32 %v5562_v31, %v2042_v41  ;;  %v1556_v62 = vsel %vm1526_vm2, %v1523_v32, %v911_v47  ;;  %v1848_v47 = vld [vmem:[#allocation3 + $0x1e8] sm:$0xff]  ;;  %1786 = vst.msk [vmem:[#allocation3 + $0x1f8] sm:$0xff] %vm1460_vm0, %v3904_v42  ;;  %v2964_v32 = vld [vmem:[%s6289_s4 + $0x28] sm:$0xff]  ;;  %3028 = vmatpush.msrb.mxu2 %v2965_v5 }
 0x2a6   : > { %v1589_v16 = vsel %vm1559_vm3, %v1556_v62, %v1039_v46  ;;  %v336_v46 = vld [vmem:[%s4090_s10 + $0x168] sm:$0xff]  ;;  %3935 = vmatmul.msk.f32.gmra.mxu3 %vm1460_vm0, %v1848_v47 }
 0x2a7   : > { %v2243_v55 = vadd.f32 %v2211_v36, %v2156_v13  ;;  %3029 = vmatpush.msrb.mxu2 %v2964_v32 }
 0x2a9   : > { %vm2275_vm14 = vcmp.gt.f32.partialorder %v2243_v55, 0.0  ;;  %v2309_v31 = vmul.f32 %v5254_v51, %v2243_v55  ;;  %3030 = vmatpush.msrb.mxu2 %v2963_v63 }
 0x2aa   : > { %v787_v41 = vpop.permute.xlu2 %786 }
 0x2ab   : > { %v1295_v23 = vpop.permute.xlu1 %1294  ;;  %v2341_v39 = vsel %vm2275_vm14, %v2243_v55, %v2309_v31  ;;  %v1167_v57 = vpop.permute.xlu0 %1166  ;;  %v2962_v31 = vld [vmem:[%s6289_s4 + $0x18] sm:$0xff] }
 0x2ac   : > { %2419 = vst.msk [vmem:[#allocation2 + $0x109] sm:$0xff] %vm1493_vm1, %v2341_v39  ;;  %v1622_v29 = vsel %vm1592_vm4, %v1589_v16, %v1167_v57  ;;  %v1850_v62 = vld [vmem:[#allocation3 + $0x1f8] sm:$0xff]  ;;  %3031 = vmatpush.msrb.mxu2 %v2962_v31  ;;  %v2961_v16 = vld [vmem:[%s6289_s4 + $0x10] sm:$0xff] }
 0x2ad   : > { %v1655_v33 = vsel %vm1625_vm5, %v1622_v29, %v1295_v23  ;;  %v2960_v29 = vld [vmem:[%s6289_s4 + $0x8] sm:$0xff] }
 0x2ae   : > { %v1688_v53 = vsel %vm1658_vm6, %v1655_v33, %v1423_v45  ;;  %3936 = vmatmul.msk.f32.gmra.mxu3 %vm1460_vm0, %v1850_v62  ;;  %3032 = vmatpush.msrb.mxu2 %v2961_v16 }
 0x2af   : > { %2068 = vmatmul.f32.gmra.mxu2 %v1688_v53  ;;  %v2959_v53 = vld [vmem:[%s6289_s4] sm:$0xff] }
 0x2b0   : > { %3033 = vmatpush.msrb.mxu2 %v2960_v29 }
 0x2b1   : > { %v2057_v21 = vpop.f32.mrf.mxu2 }
 0x2b2   : > { %v2171_v44 = vadd.f32 %v2170_v17, %v2057_v21  ;;  %v1171_v39 = vpop.permute.xlu2 %1170  ;;  %3034 = vmatpush.msrb.mxu2 %v2959_v53 }
 0x2b3   : > { %v2541_v49 = vld [vmem:[#allocation2 + $0x108] sm:$0xff]  ;;  %v785_v6 = vpop.permute.xlu1 %784  ;;  %v657_v3 = vpop.permute.xlu0 %656 }
 0x2b4   : > { %2565 = vst.msk [vmem:[#allocation5 + $0x78] sm:$0xff] %vm1493_vm1, %v2541_v49  ;;  %v1491_v56 = vsel %vm1460_vm0, %v336_v46, %v657_v3  ;;  %v2248_v9 = vadd.f32 %v2216_v18, %v2171_v44  ;;  %v5765_v49 = vld [vmem:[%s6288_s3] ss:$0 sm:$0xff] }
 0x2b5   : > { %v1524_v20 = vsel %vm1493_vm1, %v1491_v56, %v785_v6 }
 0x2b6   : > { %vm2280_vm15 = vcmp.gt.f32.partialorder %v2248_v9, 0.0  ;;  %v2314_v8 = vmul.f32 %v5254_v51, %v2248_v9  ;;  %v1557_v22 = vsel %vm1526_vm2, %v1524_v20, %v913_v10 }
 0x2b8   : > { %v2346_v4 = vsel %vm2280_vm15, %v2248_v9, %v2314_v8  ;;  %v2173_v8 = vpop.f32.mrf.mxu1  ;;  %vm3210_vm15 = vcmask 15360  }
 0x2b9   : > { %2424 = vst.msk [vmem:[#allocation2 + $0x141] sm:$0xff] %vm1493_vm1, %v2346_v4 }
 0x2ba   : > { %v2680_v44 = vpop.permute.xlu2 %2679 }
 0x2bb   : > { %v1169_v45 = vpop.permute.xlu1 %1168  ;;  %v1041_v51 = vpop.permute.xlu0 %1040  ;;  %v2767_v0 = vsel %vm1493_vm1, %v4727_v34, %v2680_v44 }
 0x2bc   : > { %v1590_v36 = vsel %vm1559_vm3, %v1557_v22, %v1041_v51 }
 0x2bd   : > { %v1623_v13 = vsel %vm1592_vm4, %v1590_v36, %v1169_v45 }
 0x2be   : > { %v1656_v43 = vsel %vm1625_vm5, %v1623_v13, %v1297_v54 }
 0x2c2   : > { %v2682_v51 = vpop.permute.xlu2 %2681 }
 0x2c3   : > { %v659_v55 = vpop.permute.xlu1 %658  ;;  %v1425_v10 = vpop.permute.xlu0 %1424 }
 0x2c4   : > { %v1689_v23 = vsel %vm1658_vm6, %v1656_v43, %v1425_v10  ;;  %v1492_v57 = vsel %vm1460_vm0, %v337_v50, %v659_v55  ;;  %v2768_v43 = vsel %vm1493_vm1, %v4910_v61, %v2682_v51 }
 0x2c5   : > { %2071 = vmatmul.f32.gmra.mxu2 %v1689_v23  ;;  %v1525_v33 = vsel %vm1493_vm1, %v1492_v57, %v787_v41 }
 0x2ca   : > { %v2045_v2 = vpop.f32.mrf.mxu0  ;;  %v2684_v50 = vpop.permute.xlu2 %2683 }
 0x2cb   : > { %v1043_v17 = vpop.permute.xlu1 %1042  ;;  %v2159_v11 = vadd.f32 %v5584_v14, %v2045_v2  ;;  %v915_v46 = vpop.permute.xlu0 %914 }
 0x2cc   : > { %v1558_v21 = vsel %vm1526_vm2, %v1525_v33, %v915_v46 }
 0x2cd   : > { %v2244_v18 = vadd.f32 %v2212_v1, %v2159_v11  ;;  %v1591_v54 = vsel %vm1559_vm3, %v1558_v21, %v1043_v17  ;;  %v2213_v1 = vld [vmem:[%s6287_s2 + $0xb0] sm:$0xff] }
 0x2ce   : > { %v1624_v14 = vsel %vm1592_vm4, %v1591_v54, %v1171_v39  ;;  %v2769_v39 = vsel %vm1493_vm1, %v5124_v59, %v2684_v50 }
 0x2cf   : > { %vm2276_vm7 = vcmp.gt.f32.partialorder %v2244_v18, 0.0  ;;  %v2310_v6 = vmul.f32 %v5765_v49, %v2244_v18 }
 0x2d1   : > { %v2342_v3 = vsel %vm2276_vm7, %v2244_v18, %v2310_v6 }
 0x2d2   : > { %2420 = vst.msk [vmem:[#allocation2 + $0x111] sm:$0xff] %vm1493_vm1, %v2342_v3  ;;  %v2686_v29 = vpop.permute.xlu2 %2685 }
 0x2d3   : > { %v1427_v15 = vpop.permute.xlu1 %1426  ;;  %v1299_v56 = vpop.permute.xlu0 %1298  ;;  %v2770_v53 = vsel %vm1493_vm1, %v5326_v7, %v2686_v29  ;;  %v2546_v29 = vld [vmem:[#allocation2 + $0x148] sm:$0x3] }
 0x2d4   : > { %v1657_v9 = vsel %vm1625_vm5, %v1624_v14, %v1299_v56 }
 0x2d5   : > { %v1690_v20 = vsel %vm1658_vm6, %v1657_v9, %v1427_v15  ;;  %v2176_v15 = vpop.f32.mrf.mxu3  ;;  %v2218_v9 = vld [vmem:[%s6287_s2 + $0xd8] sm:$0xff] }
 0x2d6   : > { %2074 = vmatmul.f32.gmra.mxu2 %v1690_v20 }
 0x2d8   : > { %v2060_v4 = vpop.f32.mrf.mxu2 }
 0x2d9   : > { %v2542_v22 = vld [vmem:[#allocation2 + $0x110] sm:$0xff]  ;;  %v2543_v60 = vld [vmem:[#allocation2 + $0x118] sm:$0x3]  ;;  %v2174_v45 = vadd.f32 %v2173_v8, %v2060_v4 }
 0x2da   : > { %2567 = vst.msk [vmem:[#allocation5 + $0x88] sm:$0x3] %vm2355_vm9, %v2543_v60  ;;  %v2688_v54 = vpop.permute.xlu2 %2687 }
 0x2db   : > { %v2744_v47 = vpop.permute.xlu1 %2743  ;;  %v2249_v42 = vadd.f32 %v2217_v12, %v2174_v45  ;;  %2566 = vst.msk [vmem:[#allocation5 + $0x80] sm:$0xff] %vm1493_vm1, %v2542_v22  ;;  %v2712_v41 = vpop.permute.xlu0 %2711  ;;  %v2771_v7 = vsel %vm1493_vm1, %v5514_v37, %v2688_v54 }
 0x2dc   : > { %v2775_v36 = vsel %vm1559_vm3, %v2767_v0, %v2712_v41 }
 0x2dd   : > { %vm2281_vm2 = vcmp.gt.f32.partialorder %v2249_v42, 0.0  ;;  %v2315_v5 = vmul.f32 %v5765_v49, %v2249_v42  ;;  %v2783_v13 = vsel %vm1625_vm5, %v2775_v36, %v2744_v47  ;;  %v2214_v47 = vld [vmem:[%s6287_s2 + $0xb8] sm:$0xff] }
 0x2de   : > { %3035 = vmatmul.f32.vlgmr.msrb.gmra.mxu2 %v2783_v13 }
 0x2df   : > { %v2347_v32 = vsel %vm2281_vm2, %v2249_v42, %v2315_v5 }
 0x2e0   : > { %2425 = vst.msk [vmem:[#allocation2 + $0x151] sm:$0xff] %vm1493_vm1, %v2347_v32 }
 0x2e2   : > { %v2579_v34 = vld [vmem:[#allocation5 + $0x78] ss:$2 sm:$0xff]  ;;  %v5816_v12 = vld [vmem:[#allocation5 + $0x79] ss:$2 sm:$0xff] }
 0x2e3   : > { %v2746_v63 = vpop.permute.xlu1 %2745  ;;  %2753 = vrot.lane.b32.xlu1 %v2579_v34, %s4025_s14  ;;  %v2714_v55 = vpop.permute.xlu0 %2713  ;;  %v5814_v4 = vld [vmem:[#allocation5 + $0x7a] ss:$2 sm:$0xff]  ;;  %v2219_v34 = vld [vmem:[%s6287_s2 + $0xe0] sm:$0xff] }
 0x2e4   : > { %v2776_v10 = vsel %vm1559_vm3, %v2768_v43, %v2714_v55 }
 0x2e5   : > { %v2784_v62 = vsel %vm1625_vm5, %v2776_v10, %v2746_v63 }
 0x2e6   : > { %3038 = vmatmul.f32.gmra.mxu2 %v2784_v62 }
 0x2e7   : > { %v5788_v31 = vld [vmem:[#allocation2 + $0x150] sm:$0xff] }
 0x2e8   : > { %2476 = vst.msk [vmem:[#allocation5 + $0xa8] sm:$0xff] %vm1493_vm1, %v5788_v31 }
 0x2e9   : > { %v2179_v13 = vpop.f32.mrf.mxu3 }
 0x2eb   : > { %v2748_v23 = vpop.permute.xlu1 %2747  ;;  %v2716_v57 = vpop.permute.xlu0 %2715 }
 0x2ec   : > { %v2777_v16 = vsel %vm1559_vm3, %v2769_v39, %v2716_v57 }
 0x2ed   : > { %v2785_v61 = vsel %vm1625_vm5, %v2777_v16, %v2748_v23  ;;  %v2544_v16 = vld [vmem:[#allocation2 + $0x138] sm:$0xff] }
 0x2ee   : > { %3041 = vmatmul.f32.gmra.mxu2 %v2785_v61  ;;  %v2545_v61 = vld [vmem:[#allocation2 + $0x140] sm:$0xff] }
 0x2f2   : > { %v2048_v2 = vpop.f32.mrf.mxu0 }
 0x2f3   : > { %v2750_v33 = vpop.permute.xlu1 %2749  ;;  %v2718_v17 = vpop.permute.xlu0 %2717  ;;  %v2162_v11 = vadd.f32 %v5614_v38, %v2048_v2 }
 0x2f4   : > { %v2778_v59 = vsel %vm1559_vm3, %v2770_v53, %v2718_v17 }
 0x2f5   : > { %v2786_v46 = vsel %vm1625_vm5, %v2778_v59, %v2750_v33  ;;  %v2245_v21 = vadd.f32 %v2213_v1, %v2162_v11  ;;  %v2182_v1 = vpop.f32.mrf.mxu3 }
 0x2f6   : > { %3044 = vmatmul.f32.gmra.mxu2 %v2786_v46  ;;  %v2220_v46 = vld [vmem:[%s6287_s2 + $0xe8] sm:$0xff] }
 0x2f7   : > { %vm2277_vm4 = vcmp.gt.f32.partialorder %v2245_v21, 0.0  ;;  %v2311_v18 = vmul.f32 %v5765_v49, %v2245_v21 }
 0x2f9   : > { %v2343_v6 = vsel %vm2277_vm4, %v2245_v21, %v2311_v18 }
 0x2fa   : > { %2421 = vst.msk [vmem:[#allocation2 + $0x121] sm:$0xff] %vm1493_vm1, %v2343_v6 }
 0x2fb   : > { %v2752_v44 = vpop.permute.xlu1 %2751  ;;  %v2720_v3 = vpop.permute.xlu0 %2719 }
 0x2fc   : > { %v2779_v38 = vsel %vm1559_vm3, %v2771_v7, %v2720_v3 }
 0x2fd   : > { %v2787_v14 = vsel %vm1625_vm5, %v2779_v38, %v2752_v44 }
 0x2fe   : > { %3047 = vmatmul.f32.gmra.mxu2 %v2787_v14  ;;  %v2647_v14 = vld [vmem:[#allocation5] ss:$2 sm:$0xff] }
 0x300   : > { %v2063_v56 = vpop.f32.mrf.mxu2 }
 0x301   : > { %v2449_v20 = vld [vmem:[#allocation2 + $0x120] sm:$0xff]  ;;  %v2177_v8 = vadd.f32 %v2176_v15, %v2063_v56 }
 0x302   : > { %2473 = vst.msk [vmem:[#allocation5 + $0x90] sm:$0xff] %vm1493_vm1, %v2449_v20 }
 0x303   : > { %v2250_v37 = vadd.f32 %v2218_v9, %v2177_v8  ;;  %2638 = vst.msk [vmem:[#allocation5 + $0x78] sm:$0xff] %vm1493_vm1, %v2449_v20  ;;  %v2648_v9 = vld [vmem:[#allocation5 + $0x18] ss:$2 sm:$0xff] }
 0x305   : > { %vm2282_vm6 = vcmp.gt.f32.partialorder %v2250_v37, 0.0  ;;  %v2316_v22 = vmul.f32 %v5765_v49, %v2250_v37 }
 0x307   : > { %v2348_v60 = vsel %vm2282_vm6, %v2250_v37, %v2316_v22  ;;  %vm3408_vm6 = vcmask 1041409  }
 0x308   : > { %2426 = vst.msk [vmem:[#allocation2 + $0x159] sm:$0xff] %vm1493_vm1, %v2348_v60  ;;  %v2649_v60 = vld [vmem:[#allocation5 + $0x30] ss:$2 sm:$0xff] }
 0x30f   : > { %v2453_v45 = vld [vmem:[#allocation2 + $0x158] sm:$0xff]  ;;  %v2454_v0 = vld [vmem:[#allocation2 + $0x160] sm:$0x3] }
 0x310   : > { %2477 = vst.msk [vmem:[#allocation5 + $0xb0] sm:$0xff] %vm1493_vm1, %v2453_v45  ;;  %v2619_v3 = vld [vmem:[#allocation2 + $0x160] sm:$0x3] }
 0x311   : > { %2478 = vst.msk [vmem:[#allocation5 + $0xb8] sm:$0x3] %vm2355_vm9, %v2454_v0 }
 0x313   : > { %v2051_v51 = vpop.f32.mrf.mxu0 }
 0x314   : > { %v2165_v42 = vadd.f32 %v5628_v30, %v2051_v51  ;;  %v2690_v51 = vpop.permute.xlu2 %2689 }
 0x316   : > { %v2246_v41 = vadd.f32 %v2214_v47, %v2165_v42  ;;  %v2722_v47 = vpop.permute.xlu0 %2721  ;;  %v2655_v42 = vld [vmem:[#allocation5 + $0x1] ss:$2 sm:$0xff] }
 0x317   : > { %v5845_v2 = vld [vmem:[#allocation5 + $0xa8] ss:$2 sm:$0xff]  ;;  %v2509_v17 = vld [vmem:[#allocation5 + $0xa9] ss:$2 sm:$0xff] }
 0x318   : > { %vm2278_vm8 = vcmp.gt.f32.partialorder %v2246_v41, 0.0  ;;  %v2312_v36 = vmul.f32 %v5765_v49, %v2246_v41  ;;  %v2525_v53 = vld [vmem:[#allocation5 + $0xaa] ss:$2 sm:$0xff] }
 0x31a   : > { %v2344_v5 = vsel %vm2278_vm8, %v2246_v41, %v2312_v36  ;;  %v2772_v41 = vsel %vm1493_vm1, %v5705_v28, %v2690_v51  ;;  %v2650_v36 = vld [vmem:[#allocation5 + $0x48] ss:$2 sm:$0xff]  ;;  %v2976_v51 = vld [vmem:[%s6289_s4 + $0x88] sm:$0xff]  ;;  %vm3411_vm8 = vcmask 1042434  }
 0x31b   : > { %2422 = vst.msk [vmem:[#allocation2 + $0x129] sm:$0xff] %vm1493_vm1, %v2344_v5 }
 0x321   : > { %v2066_v32 = vpop.f32.mrf.mxu2 }
 0x322   : > { %v2450_v63 = vld [vmem:[#allocation2 + $0x128] sm:$0xff]  ;;  %v2451_v43 = vld [vmem:[#allocation2 + $0x130] sm:$0x3]  ;;  %v2180_v50 = vadd.f32 %v2179_v13, %v2066_v32 }
 0x323   : > { %v2616_v55 = vld [vmem:[#allocation2 + $0x130] sm:$0x3]  ;;  %2474 = vst.msk [vmem:[#allocation5 + $0x98] sm:$0xff] %vm1493_vm1, %v2450_v63 }
 0x324   : > { %2475 = vst.msk [vmem:[#allocation5 + $0xa0] sm:$0x3] %vm2355_vm9, %v2451_v43  ;;  %v2251_v30 = vadd.f32 %v2219_v34, %v2180_v50 }
 0x325   : > { %2640 = vst.msk [vmem:[#allocation5 + $0x88] sm:$0x3] %vm2355_vm9, %v2616_v55  ;;  %v2656_v55 = vld [vmem:[#allocation5 + $0x19] ss:$2 sm:$0xff] }
 0x326   : > { %vm2283_vm10 = vcmp.gt.f32.partialorder %v2251_v30, 0.0  ;;  %v2317_v10 = vmul.f32 %v5765_v49, %v2251_v30  ;;  %2639 = vst.msk [vmem:[#allocation5 + $0x80] sm:$0xff] %vm1493_vm1, %v2450_v63 }
 0x328   : > { %v2349_v62 = vsel %vm2283_vm10, %v2251_v30, %v2317_v10  ;;  %v2651_v30 = vld [vmem:[#allocation5 + $0x60] ss:$2 sm:$0xff]  ;;  %vm3414_vm10 = vcmask 1043459  }
 0x329   : > { %2427 = vst.msk [vmem:[#allocation2 + $0x169] sm:$0xff] %vm1493_vm1, %v2349_v62  ;;  %v2185_v8 = vpop.f32.mrf.mxu3 }
 0x32a   : > { %v2507_v23 = vld [vmem:[#allocation5 + $0x91] ss:$2 sm:$0xff]  ;;  %v5838_v39 = vld [vmem:[#allocation5 + $0x90] ss:$2 sm:$0xff] }
 0x32b   : > { %v2523_v57 = vld [vmem:[#allocation5 + $0x92] ss:$2 sm:$0xff]  ;;  %2691 = vrot.lane.b32.xlu2 %v2507_v23, %s4027_s16 }
 0x32c   : > { %2723 = vrot.lane.b32.xlu0 %v2523_v57, %s4026_s15  ;;  %2568 = vst.msk [vmem:[#allocation5 + $0x90] sm:$0xff] %vm1493_vm1, %v2544_v16  ;;  %v2657_v57 = vld [vmem:[#allocation5 + $0x31] ss:$2 sm:$0xff] }
 0x32d   : > { %2569 = vst.msk [vmem:[#allocation5 + $0x98] sm:$0xff] %vm1493_vm1, %v2545_v61  ;;  %v2668_v33 = vld [vmem:[#allocation5 + $0x7a] ss:$2 sm:$0xff] }
 0x32e   : > { %2570 = vst.msk [vmem:[#allocation5 + $0xa0] sm:$0x3] %vm2355_vm9, %v2546_v29  ;;  %v2652_v16 = vld [vmem:[#allocation5 + $0x78] ss:$2 sm:$0xff]  ;;  %v2658_v29 = vld [vmem:[#allocation5 + $0x49] ss:$2 sm:$0xff] }
 0x32f   : > { %2932 = vst.msk [vmem:[#allocation4 + $0x88] sm:$0xff] %vm1493_vm1, %v2668_v33  ;;  %v2659_v33 = vld [vmem:[#allocation5 + $0x61] ss:$2 sm:$0xff] }
 0x330   : > { %v2547_v11 = vld [vmem:[#allocation2 + $0x168] sm:$0xff] }
 0x331   : > { %2571 = vst.msk [vmem:[#allocation5 + $0xa8] sm:$0xff] %vm1493_vm1, %v2547_v11  ;;  %v2188_v34 = vpop.f32.mrf.mxu3  ;;  %v2993_v11 = vld [vmem:[%s6289_s4 + $0x110] sm:$0xff] }
 0x332   : > { %v2069_v59 = vpop.f32.mrf.mxu2 }
 0x333   : > { %v2183_v21 = vadd.f32 %v2182_v1, %v2069_v59  ;;  %2693 = vrot.lane.b32.xlu2 %v2509_v17, %s4027_s16  ;;  %v2660_v17 = vld [vmem:[#allocation5 + $0x79] ss:$2 sm:$0xff] }
 0x334   : > { %2725 = vrot.lane.b32.xlu0 %v2525_v53, %s4026_s15  ;;  %v2580_v18 = vld [vmem:[#allocation5 + $0x90] ss:$2 sm:$0xff]  ;;  %v5854_v54 = vld [vmem:[#allocation5 + $0x91] ss:$2 sm:$0xff] }
 0x335   : > { %v2252_v6 = vadd.f32 %v2220_v46, %v2183_v21  ;;  %2755 = vrot.lane.b32.xlu1 %v2580_v18, %s4025_s14  ;;  %v5857_v44 = vld [vmem:[#allocation5 + $0x92] ss:$2 sm:$0xff]  ;;  %v2990_v21 = vld [vmem:[%s6289_s4 + $0xf8] sm:$0xff] }
 0x336   : > { %2641 = vst.msk [vmem:[#allocation5 + $0x90] sm:$0xff] %vm1493_vm1, %v5788_v31  ;;  %v2989_v18 = vld [vmem:[%s6289_s4 + $0xf0] sm:$0xff]  ;;  %3060 = vmatpush.msrb.mxu3 %v2990_v21 }
 0x337   : > { %vm2284_vm11 = vcmp.gt.f32.partialorder %v2252_v6, 0.0  ;;  %v2318_v7 = vmul.f32 %v5765_v49, %v2252_v6  ;;  %2642 = vst.msk [vmem:[#allocation5 + $0x98] sm:$0xff] %vm1493_vm1, %v2453_v45 }
 0x338   : > { %2643 = vst.msk [vmem:[#allocation5 + $0xa0] sm:$0x3] %vm2355_vm9, %v2619_v3  ;;  %3061 = vmatpush.msrb.mxu3 %v2989_v18  ;;  %v2992_v3 = vld [vmem:[%s6289_s4 + $0x108] sm:$0xff] }
 0x339   : > { %v2350_v38 = vsel %vm2284_vm11, %v2252_v6, %v2318_v7  ;;  %v2988_v6 = vld [vmem:[%s6289_s4 + $0xe8] sm:$0xff]  ;;  %v2986_v7 = vld [vmem:[%s6289_s4 + $0xd8] sm:$0xff]  ;;  %vm3417_vm11 = vcmask 1044484  }
 0x33a   : > { %2428 = vst.msk [vmem:[#allocation2 + $0x171] sm:$0xff] %vm1493_vm1, %v2350_v38  ;;  %3062 = vmatpush.msrb.mxu3 %v2988_v6  ;;  %v2985_v38 = vld [vmem:[%s6289_s4 + $0xd0] sm:$0xff] }
 0x33b   : > { %2807 = vrot.lane.b32.xlu2 %v4784_v52, %s4027_s16  ;;  %v2221_v52 = vld [vmem:[%s6287_s2 + $0xf0] sm:$0xff] }
 0x33c   : > { %2839 = vrot.lane.b32.xlu0 %v2647_v14, %s4026_s15  ;;  %v2984_v14 = vld [vmem:[%s6289_s4 + $0xc8] sm:$0xff] }
 0x33e   : > { %v2661_v59 = vld [vmem:[#allocation5 + $0x91] ss:$2 sm:$0xff] }
 0x33f   : > { %v2669_v15 = vld [vmem:[#allocation5 + $0x92] ss:$2 sm:$0xff] }
 0x340   : > { %2933 = vst.msk [vmem:[#allocation4 + $0xa0] sm:$0xff] %vm1493_vm1, %v2669_v15  ;;  %v2983_v15 = vld [vmem:[%s6289_s4 + $0xc0] sm:$0xff] }
 0x341   : > { %v2548_v31 = vld [vmem:[#allocation2 + $0x170] sm:$0xff]  ;;  %v2549_v56 = vld [vmem:[#allocation2 + $0x178] sm:$0x3] }
 0x342   : > { %2572 = vst.msk [vmem:[#allocation5 + $0xb0] sm:$0xff] %vm1493_vm1, %v2548_v31  ;;  %v2982_v31 = vld [vmem:[%s6289_s4 + $0xb8] sm:$0xff] }
 0x343   : > { %2809 = vrot.lane.b32.xlu2 %v5025_v40, %s4027_s16  ;;  %2573 = vst.msk [vmem:[#allocation5 + $0xb8] sm:$0x3] %vm2355_vm9, %v2549_v56 }
 0x344   : > { %2841 = vrot.lane.b32.xlu0 %v2648_v9, %s4026_s15  ;;  %v2981_v9 = vld [vmem:[%s6289_s4 + $0xb0] sm:$0xff] }
 0x348   : > { %v2072_v20 = vpop.f32.mrf.mxu2 }
 0x349   : > { %v2581_v37 = vld [vmem:[#allocation5 + $0xa8] ss:$2 sm:$0xff]  ;;  %v2186_v22 = vadd.f32 %v2185_v8, %v2072_v20  ;;  %v5891_v63 = vld [vmem:[#allocation5 + $0xa9] ss:$2 sm:$0xff]  ;;  %v2980_v8 = vld [vmem:[%s6289_s4 + $0xa8] sm:$0xff] }
 0x34a   : > { %2757 = vrot.lane.b32.xlu1 %v2581_v37, %s4025_s14  ;;  %v2597_v43 = vld [vmem:[#allocation5 + $0xaa] ss:$2 sm:$0xff] }
 0x34b   : > { %2811 = vrot.lane.b32.xlu2 %v5229_v27, %s4027_s16  ;;  %v2253_v45 = vadd.f32 %v2221_v52, %v2186_v22  ;;  %v2780_v27 = vsel %vm1559_vm3, %v2772_v41, %v2722_v47  ;;  %v2991_v52 = vld [vmem:[%s6289_s4 + $0x100] sm:$0xff]  ;;  %v2978_v22 = vld [vmem:[%s6289_s4 + $0x98] sm:$0xff] }
 0x34c   : > { %2843 = vrot.lane.b32.xlu0 %v2649_v60, %s4026_s15  ;;  %v2979_v37 = vld [vmem:[%s6289_s4 + $0xa0] sm:$0xff] }
 0x34d   : > { %vm2285_vm12 = vcmp.gt.f32.partialorder %v2253_v45, 0.0  ;;  %v2319_v40 = vmul.f32 %v5765_v49, %v2253_v45 }
 0x34f   : > { %v2351_v0 = vsel %vm2285_vm12, %v2253_v45, %v2319_v40  ;;  %vm3420_vm12 = vcmask 1045509  }
 0x350   : > { %2429 = vst.msk [vmem:[#allocation2 + $0x181] sm:$0xff] %vm1493_vm1, %v2351_v0  ;;  %v2977_v0 = vld [vmem:[%s6289_s4 + $0x90] sm:$0xff] }
 0x352   : > { %2871 = vrot.lane.b32.xlu1 %v2655_v42, %s4025_s14 }
 0x353   : > { %2813 = vrot.lane.b32.xlu2 %v5402_v26, %s4027_s16  ;;  %v2222_v26 = vld [vmem:[%s6287_s2 + $0xf8] sm:$0xff] }
 0x354   : > { %2845 = vrot.lane.b32.xlu0 %v2650_v36, %s4026_s15 }
 0x355   : > { %v2754_v5 = vpop.permute.xlu1 %2753 }
 0x356   : > { %v2788_v13 = vsel %vm1625_vm5, %v2780_v27, %v2754_v5 }
 0x357   : > { %3050 = vmatmul.f32.gmra.mxu2 %v2788_v13  ;;  %v2620_v32 = vld [vmem:[#allocation2 + $0x180] sm:$0xff] }
 0x358   : > { %2644 = vst.msk [vmem:[#allocation5 + $0xa8] sm:$0xff] %vm1493_vm1, %v2620_v32 }
 0x359   : > { %v2075_v28 = vpop.f32.mrf.mxu2 }
 0x35a   : > { %v2189_v50 = vadd.f32 %v2188_v34, %v2075_v28  ;;  %2873 = vrot.lane.b32.xlu1 %v2656_v55, %s4025_s14 }
 0x35b   : > { %2815 = vrot.lane.b32.xlu2 %v5596_v24, %s4027_s16 }
 0x35c   : > { %v2254_v10 = vadd.f32 %v2222_v26, %v2189_v50  ;;  %2847 = vrot.lane.b32.xlu0 %v2651_v30, %s4026_s15 }
 0x35e   : > { %vm2286_vm13 = vcmp.gt.f32.partialorder %v2254_v10, 0.0  ;;  %v2320_v62 = vmul.f32 %v5765_v49, %v2254_v10  ;;  %v2653_v49 = vld [vmem:[#allocation5 + $0x90] ss:$2 sm:$0xff] }
 0x360   : > { %v2352_v23 = vsel %vm2286_vm13, %v2254_v10, %v2320_v62  ;;  %v2937_v10 = vld [vmem:[#allocation4 + $0x10] sm:$0xff]  ;;  %vm3423_vm13 = vcmask 1046534  }
 0x361   : > { %2430 = vst.msk [vmem:[#allocation2 + $0x189] sm:$0xff] %vm1493_vm1, %v2352_v23 }
 0x362   : > { %2875 = vrot.lane.b32.xlu1 %v2657_v57, %s4025_s14 }
 0x363   : > { %2817 = vrot.lane.b32.xlu2 %v5814_v4, %s4027_s16  ;;  %v2994_v4 = vld [vmem:[%s6289_s4 + $0x118] sm:$0xff] }
 0x364   : > { %2849 = vrot.lane.b32.xlu0 %v2652_v16, %s4026_s15  ;;  %3113 = vmatpush.msra.mxu2 %v2994_v4 }
 0x366   : > { %3114 = vmatpush.msra.mxu2 %v2993_v11 }
 0x368   : > { %v2621_v61 = vld [vmem:[#allocation2 + $0x188] sm:$0xff]  ;;  %v2622_v24 = vld [vmem:[#allocation2 + $0x190] sm:$0x3]  ;;  %3115 = vmatpush.msra.mxu2 %v2992_v3 }
 0x369   : > { %2645 = vst.msk [vmem:[#allocation5 + $0xb0] sm:$0xff] %vm1493_vm1, %v2621_v61 }
 0x36a   : > { %2877 = vrot.lane.b32.xlu1 %v2658_v29, %s4025_s14  ;;  %2646 = vst.msk [vmem:[#allocation5 + $0xb8] sm:$0x3] %vm2355_vm9, %v2622_v24  ;;  %3116 = vmatpush.msra.mxu2 %v2991_v52  ;;  %vm3214_vm9 = vcmask 1041408  }
 0x36b   : > { %2819 = vrot.lane.b32.xlu2 %v5857_v44, %s4027_s16  ;;  %v2987_v44 = vld [vmem:[%s6289_s4 + $0xe0] sm:$0xff] }
 0x36c   : > { %2851 = vrot.lane.b32.xlu0 %v2653_v49, %s4026_s15  ;;  %3063 = vmatpush.msrb.mxu3 %v2987_v44 }
 0x36e   : > { %3064 = vmatpush.msrb.mxu3 %v2986_v7 }
 0x370   : > { %v2654_v53 = vld [vmem:[#allocation5 + $0xa8] ss:$2 sm:$0xff]  ;;  %v2662_v46 = vld [vmem:[#allocation5 + $0xa9] ss:$2 sm:$0xff]  ;;  %3065 = vmatpush.msrb.mxu3 %v2985_v38 }
 0x371   : > { %v2670_v1 = vld [vmem:[#allocation5 + $0xaa] ss:$2 sm:$0xff] }
 0x372   : > { %2879 = vrot.lane.b32.xlu1 %v2659_v33, %s4025_s14  ;;  %2934 = vst.msk [vmem:[#allocation4 + $0xb8] sm:$0xff] %vm1493_vm1, %v2670_v1  ;;  %3066 = vmatpush.msrb.mxu3 %v2984_v14  ;;  %v2949_v38 = vld [vmem:[#allocation4 + $0x70] sm:$0xff] }
 0x373   : > { %2821 = vrot.lane.b32.xlu2 %v2597_v43, %s4027_s16 }
 0x374   : > { %2853 = vrot.lane.b32.xlu0 %v2654_v53, %s4026_s15  ;;  %3067 = vmatpush.msrb.mxu3 %v2983_v15 }
 0x376   : > { %3068 = vmatpush.msrb.mxu3 %v2982_v31 }
 0x378   : > { %3069 = vmatpush.msrb.mxu3 %v2981_v9 }
 0x37a   : > { %2881 = vrot.lane.b32.xlu1 %v2660_v17, %s4025_s14  ;;  %3070 = vmatpush.msrb.mxu3 %v2980_v8 }
 0x37c   : > { %3071 = vmatpush.msrb.mxu3 %v2979_v37 }
 0x37e   : > { %3072 = vmatpush.msrb.mxu3 %v2978_v22 }
 0x380   : > { %3073 = vmatpush.msrb.mxu3 %v2977_v0 }
 0x382   : > { %2883 = vrot.lane.b32.xlu1 %v2661_v59, %s4025_s14  ;;  %3074 = vmatpush.msrb.mxu3 %v2976_v51 }
 0x385   : > { %v2692_v56 = vpop.permute.xlu2 %2691 }
 0x386   : > { %v2773_v60 = vsel %vm1493_vm1, %v5838_v39, %v2692_v56  ;;  %v2975_v39 = vld [vmem:[%s6289_s4 + $0x80] sm:$0xff] }
 0x387   : > { %3075 = vmatpush.msrb.mxu3 %v2975_v39 }
 0x38a   : > { %2885 = vrot.lane.b32.xlu1 %v2662_v46, %s4025_s14 }
 0x38d   : > { %v2694_v47 = vpop.permute.xlu2 %2693 }
 0x38e   : > { %v2774_v5 = vsel %vm1493_vm1, %v5845_v2, %v2694_v47 }
 0x395   : > { %v2808_v36 = vpop.permute.xlu2 %2807 }
 0x396   : > { %v2895_v26 = vsel %vm1493_vm1, %v4788_v48, %v2808_v36  ;;  %v2940_v48 = vld [vmem:[#allocation4 + $0x28] sm:$0xff] }
 0x39d   : > { %v2810_v13 = vpop.permute.xlu2 %2809 }
 0x39e   : > { %v2724_v20 = vpop.permute.xlu0 %2723  ;;  %v2896_v23 = vsel %vm1493_vm1, %v5027_v58, %v2810_v13  ;;  %v2943_v58 = vld [vmem:[#allocation4 + $0x40] sm:$0xff] }
 0x39f   : > { %v2781_v45 = vsel %vm1559_vm3, %v2773_v60, %v2724_v20 }
 0x3a5   : > { %v2812_v62 = vpop.permute.xlu2 %2811 }
 0x3a6   : > { %v2726_v41 = vpop.permute.xlu0 %2725  ;;  %v2897_v49 = vsel %vm1493_vm1, %v5231_v35, %v2812_v62  ;;  %v2946_v35 = vld [vmem:[#allocation4 + $0x58] sm:$0xff] }
 0x3a7   : > { %v2756_v40 = vpop.permute.xlu1 %2755  ;;  %v2782_v32 = vsel %vm1559_vm3, %v2774_v5, %v2726_v41 }
 0x3a8   : > { %v2789_v42 = vsel %vm1625_vm5, %v2781_v45, %v2756_v40 }
 0x3a9   : > { %3053 = vmatmul.f32.gmra.mxu2 %v2789_v42  ;;  %v3036_v42 = vpop.f32.mrf.mxu2 }
 0x3ad   : > { %v2814_v24 = vpop.permute.xlu2 %2813 }
 0x3ae   : > { %v2840_v27 = vpop.permute.xlu0 %2839  ;;  %v2898_v17 = vsel %vm1493_vm1, %v5407_v25, %v2814_v24 }
 0x3af   : > { %v2903_v55 = vsel %vm1559_vm3, %v2895_v26, %v2840_v27 }
 0x3b1   : > { %v3039_v41 = vpop.f32.mrf.mxu2 }
 0x3b5   : > { %v2816_v53 = vpop.permute.xlu2 %2815 }
 0x3b6   : > { %v2842_v43 = vpop.permute.xlu0 %2841  ;;  %v2899_v18 = vsel %vm1493_vm1, %v5594_v19, %v2816_v53  ;;  %v2952_v19 = vld [vmem:[#allocation4 + $0x88] sm:$0xff] }
 0x3b7   : > { %v2904_v57 = vsel %vm1559_vm3, %v2896_v23, %v2842_v43 }
 0x3b9   : > { %v3042_v39 = vpop.f32.mrf.mxu2 }
 0x3bc   : > { %v2758_v34 = vpop.permute.xlu1 %2757 }
 0x3bd   : > { %v2790_v28 = vsel %vm1625_vm5, %v2782_v32, %v2758_v34  ;;  %v2818_v6 = vpop.permute.xlu2 %2817 }
 0x3be   : > { %3056 = vmatmul.f32.gmra.mxu2 %v2790_v28  ;;  %v2844_v2 = vpop.permute.xlu0 %2843  ;;  %v2900_v14 = vsel %vm1493_vm1, %v5816_v12, %v2818_v6  ;;  %v2955_v12 = vld [vmem:[#allocation4 + $0xa0] sm:$0xff] }
 0x3bf   : > { %v2905_v4 = vsel %vm1559_vm3, %v2897_v49, %v2844_v2  ;;  %v3182_v2 = vld [vmem:[%s6290_s5 + $0x8] sm:$0xff] }
 0x3c1   : > { %v3045_v36 = vpop.f32.mrf.mxu2 }
 0x3c4   : > { %v2872_v50 = vpop.permute.xlu1 %2871 }
 0x3c5   : > { %v2911_v30 = vsel %vm1625_vm5, %v2903_v55, %v2872_v50  ;;  %v2820_v9 = vpop.permute.xlu2 %2819  ;;  %v3183_v55 = vld [vmem:[%s6290_s5 + $0x10] sm:$0xff] }
 0x3c6   : > { %3076 = vmatmul.f32.vlgmr.msrb.gmra.mxu3 %v2911_v30  ;;  %3937 = vmatmul.msk.f32.vlgmr.msra.gmra.mxu2 %vm1493_vm1, %v2937_v10  ;;  %v2846_v29 = vpop.permute.xlu0 %2845  ;;  %v2901_v8 = vsel %vm1493_vm1, %v5854_v54, %v2820_v9  ;;  %v2958_v54 = vld [vmem:[#allocation4 + $0xb8] sm:$0xff] }
 0x3c7   : > { %v2906_v59 = vsel %vm1559_vm3, %v2898_v17, %v2846_v29  ;;  %v3181_v17 = vld [vmem:[%s6290_s5] sm:$0xff] }
 0x3c9   : > { %v3048_v27 = vpop.f32.mrf.mxu2 }
 0x3cc   : > { %v2874_v16 = vpop.permute.xlu1 %2873 }
 0x3cd   : > { %v2912_v61 = vsel %vm1625_vm5, %v2904_v57, %v2874_v16  ;;  %v2822_v60 = vpop.permute.xlu2 %2821 }
 0x3ce   : > { %3079 = vmatmul.f32.gmra.mxu3 %v2912_v61  ;;  %3938 = vmatmul.msk.f32.gmra.mxu2 %vm1493_vm1, %v2940_v48  ;;  %v2848_v11 = vpop.permute.xlu0 %2847  ;;  %v2902_v40 = vsel %vm1493_vm1, %v5891_v63, %v2822_v60  ;;  %v3184_v63 = vld [vmem:[%s6290_s5 + $0x18] sm:$0xff] }
 0x3cf   : > { %v2907_v44 = vsel %vm1559_vm3, %v2899_v18, %v2848_v11  ;;  %3200 = vmatpush.msra.mxu3 %v3184_v63 }
 0x3d1   : > { %3201 = vmatpush.msra.mxu3 %v3183_v55 }
 0x3d3   : > { %3202 = vmatpush.msra.mxu3 %v3182_v2 }
 0x3d4   : > { %v2876_v33 = vpop.permute.xlu1 %2875 }
 0x3d5   : > { %v2913_v1 = vsel %vm1625_vm5, %v2905_v4, %v2876_v33  ;;  %3203 = vmatpush.msra.mxu3 %v3181_v17 }
 0x3d6   : > { %3082 = vmatmul.f32.gmra.mxu3 %v2913_v1  ;;  %3939 = vmatmul.msk.f32.gmra.mxu2 %vm1493_vm1, %v2943_v58  ;;  %v2850_v3 = vpop.permute.xlu0 %2849  ;;  %v4004_v1 = vld [vmem:[%s6288_s3 + $0x1] ss:$0 sm:$0xff] }
 0x3d7   : > { %v2908_v15 = vsel %vm1559_vm3, %v2900_v14, %v2850_v3 }
 0x3da   : > { %v3051_v5 = vpop.f32.mrf.mxu2 }
 0x3dc   : > { %v2878_v46 = vpop.permute.xlu1 %2877 }
 0x3dd   : > { %v2914_v21 = vsel %vm1625_vm5, %v2906_v59, %v2878_v46 }
 0x3de   : > { %3085 = vmatmul.f32.gmra.mxu3 %v2914_v21  ;;  %3940 = vmatmul.msk.f32.gmra.mxu2 %vm1493_vm1, %v2946_v35  ;;  %v2852_v20 = vpop.permute.xlu0 %2851 }
 0x3df   : > { %v2909_v52 = vsel %vm1559_vm3, %v2901_v8, %v2852_v20 }
 0x3e4   : > { %v2880_v7 = vpop.permute.xlu1 %2879 }
 0x3e5   : > { %v2915_v25 = vsel %vm1625_vm5, %v2907_v44, %v2880_v7  ;;  %v3209_v7 = vld [vmem:[%s6291_s6] sm:$0x3] }
 0x3e6   : > { %3088 = vmatmul.f32.gmra.mxu3 %v2915_v25  ;;  %3941 = vmatmul.msk.f32.gmra.mxu2 %vm1493_vm1, %v2949_v38  ;;  %v2854_v45 = vpop.permute.xlu0 %2853 }
 0x3e7   : > { %v2910_v0 = vsel %vm1559_vm3, %v2902_v40, %v2854_v45  ;;  %3946 = vmatpush.msk.msrb.mxu3 %vm3214_vm9, %v3209_v7  ;;  %vm3426_vm9 = vcmask 1047559  }
 0x3ec   : > { %v2882_v31 = vpop.permute.xlu1 %2881 }
 0x3ed   : > { %v2916_v56 = vsel %vm1625_vm5, %v2908_v15, %v2882_v31  ;;  %v4030_v15 = vmov 64.0  }
 0x3ee   : > { %3091 = vmatmul.f32.gmra.mxu3 %v2916_v56  ;;  %3942 = vmatmul.msk.f32.gmra.mxu2 %vm1493_vm1, %v2952_v19  ;;  %4006 = vrcp.f32 %v4030_v15 }
 0x3f4   : > { %v2884_v37 = vpop.permute.xlu1 %2883  ;;  %v4007_v60 = vpop.eup %4006 }
 0x3f5   : > { %v2917_v22 = vsel %vm1625_vm5, %v2909_v52, %v2884_v37  ;;  %vm3178_vm14 = vweird.f32 %v4007_v60 }
 0x3f6   : > { %3094 = vmatmul.f32.gmra.mxu3 %v2917_v22  ;;  %3943 = vmatmul.msk.f32.gmra.mxu2 %vm1493_vm1, %v2955_v12 }
 0x3fc   : > { %v2886_v51 = vpop.permute.xlu1 %2885 }
 0x3fd   : > { %v2918_v47 = vsel %vm1625_vm5, %v2910_v0, %v2886_v51 }
 0x3fe   : > { %3097 = vmatmul.f32.gmra.mxu3 %v2918_v47  ;;  %3944 = vmatmul.msk.f32.gmra.mxu2 %vm1493_vm1, %v2958_v54 }
 0x42c   : > { %v3054_v13 = vpop.f32.mrf.mxu2 }
 0x441   : > { %v3057_v32 = vpop.f32.mrf.mxu2 }
 0x449   : > { %v3077_v34 = vpop.f32.mrf.mxu3  ;;  %v3118_v43 = vpop.f32.mrf.mxu2 }
 0x44a   : > { %v3078_v61 = vadd.f32 %v3077_v34, %v3036_v42 }
 0x44c   : > { %v3119_v33 = vadd.f32 %v3118_v43, %v3078_v61 }
 0x44e   : > { %v6045_v21 = vadd.f32 %v4004_v1, %v3119_v33  ;;  %v3953_v33 = vld [vmem:[%s4090_s10 + $0x109] ss:$2 sm:$0xff] }
 0x450   : > { %v3152_v31 = vsel %vm1493_vm1, %v6045_v21, 0.0 }
 0x451   : > { %v3080_v28 = vpop.f32.mrf.mxu3  ;;  %v3121_v26 = vpop.f32.mrf.mxu2 }
 0x452   : > { %v3081_v16 = vadd.f32 %v3080_v28, %v3039_v41 }
 0x454   : > { %v3122_v49 = vadd.f32 %v3121_v26, %v3081_v16 }
 0x456   : > { %v6043_v11 = vadd.f32 %v4004_v1, %v3122_v49  ;;  %v3951_v49 = vld [vmem:[%s4090_s10 + $0xa9] ss:$2 sm:$0xff] }
 0x458   : > { %v3153_v3 = vsel %vm1493_vm1, %v6043_v11, 0.0 }
 0x459   : > { %v3083_v50 = vpop.f32.mrf.mxu3  ;;  %v3124_v30 = vpop.f32.mrf.mxu2  ;;  %v3154_v20 = vadd.f32 %v3153_v3, %v3152_v31 }
 0x45a   : > { %v3084_v48 = vadd.f32 %v3083_v50, %v3042_v39  ;;  %v3174_v39 = vmul.f32 64.0, %v4007_v60 }
 0x45c   : > { %v3125_v58 = vadd.f32 %v3124_v30, %v3084_v48  ;;  %v3175_v63 = vsub.f32 1.0, %v3174_v39  ;;  %v3948_v48 = vld [vmem:[%s4090_s10 + $0x19] ss:$2 sm:$0xff] }
 0x45e   : > { %v6047_v35 = vadd.f32 %v4004_v1, %v3125_v58  ;;  %v3176_v28 = vmul.f32 %v4007_v60, %v3175_v63  ;;  %v3955_v58 = vld [vmem:[%s4090_s10 + $0x169] ss:$2 sm:$0xff] }
 0x460   : > { %v3155_v56 = vsel %vm1493_vm1, %v6047_v35, 0.0  ;;  %v3177_v55 = vadd.f32 %v4007_v60, %v3176_v28 }
 0x461   : > { %v3086_v10 = vpop.f32.mrf.mxu3  ;;  %v3127_v62 = vpop.f32.mrf.mxu2  ;;  %v3156_v37 = vadd.f32 %v3155_v56, %v3154_v20 }
 0x462   : > { %v3087_v4 = vadd.f32 %v3086_v10, %v3045_v36  ;;  %v3179_v10 = vsel %vm3178_vm14, %v4007_v60, %v3177_v55 }
 0x464   : > { %v3128_v59 = vadd.f32 %v3127_v62, %v3087_v4  ;;  %v3952_v4 = vld [vmem:[%s4090_s10 + $0xd9] ss:$2 sm:$0xff] }
 0x466   : > { %v6054_v25 = vadd.f32 %v4004_v1, %v3128_v59 }
 0x468   : > { %v3157_v8 = vsel %vm1493_vm1, %v6054_v25, 0.0 }
 0x469   : > { %v3089_v23 = vpop.f32.mrf.mxu3  ;;  %v3130_v57 = vpop.f32.mrf.mxu2  ;;  %v3158_v45 = vadd.f32 %v3157_v8, %v3156_v37  ;;  %v6104_v8 = vld [vmem:[%s6288_s3 + $0x2] ss:$0 sm:$0xff] }
 0x46a   : > { %v3090_v53 = vadd.f32 %v3089_v23, %v3048_v27  ;;  %v3283_v23 = vld [vmem:[%s6292_s7 + $0x8] sm:$0xff] }
 0x46c   : > { %v3131_v18 = vadd.f32 %v3130_v57, %v3090_v53  ;;  %v3282_v57 = vld [vmem:[%s6292_s7] sm:$0xff] }
 0x46e   : > { %v6060_v19 = vadd.f32 %v4004_v1, %v3131_v18 }
 0x470   : > { %v3159_v22 = vsel %vm1493_vm1, %v6060_v19, 0.0 }
 0x471   : > { %v3092_v24 = vpop.f32.mrf.mxu3  ;;  %v3133_v29 = vpop.f32.mrf.mxu2  ;;  %v3160_v47 = vadd.f32 %v3159_v22, %v3158_v45 }
 0x472   : > { %v3093_v46 = vadd.f32 %v3092_v24, %v3051_v5  ;;  %v3949_v24 = vld [vmem:[%s4090_s10 + $0x49] ss:$2 sm:$0xff] }
 0x474   : > { %v3134_v38 = vadd.f32 %v3133_v29, %v3093_v46  ;;  %v3950_v29 = vld [vmem:[%s4090_s10 + $0x79] ss:$2 sm:$0xff] }
 0x476   : > { %v6064_v52 = vadd.f32 %v4004_v1, %v3134_v38 }
 0x478   : > { %v3161_v0 = vsel %vm1493_vm1, %v6064_v52, 0.0 }
 0x479   : > { %v3095_v6 = vpop.f32.mrf.mxu3  ;;  %v3136_v44 = vpop.f32.mrf.mxu2  ;;  %v3162_v36 = vadd.f32 %v3161_v0, %v3160_v47 }
 0x47a   : > { %v3096_v14 = vadd.f32 %v3095_v6, %v3054_v13 }
 0x47c   : > { %v3137_v9 = vadd.f32 %v3136_v44, %v3096_v14 }
 0x47e   : > { %v6068_v12 = vadd.f32 %v4004_v1, %v3137_v9 }
 0x480   : > { %v3163_v42 = vsel %vm1493_vm1, %v6068_v12, 0.0 }
 0x481   : > { %v3098_v40 = vpop.f32.mrf.mxu3  ;;  %v3139_v54 = vpop.f32.mrf.mxu2  ;;  %v3164_v5 = vadd.f32 %v3163_v42, %v3162_v36 }
 0x482   : > { %v3099_v51 = vadd.f32 %v3098_v40, %v3057_v32 }
 0x484   : > { %v3140_v41 = vadd.f32 %v3139_v54, %v3099_v51 }
 0x486   : > { %v6074_v27 = vadd.f32 %v4004_v1, %v3140_v41  ;;  %v3954_v1 = vld [vmem:[%s4090_s10 + $0x139] ss:$2 sm:$0xff] }
 0x488   : > { %v3165_v13 = vsel %vm1493_vm1, %v6074_v27, 0.0 }
 0x489   : > { %v3166_v34 = vadd.f32 %v3165_v13, %v3164_v5 }
 0x48b   : > { %v3167_v43 = vrot.slane %v3166_v34, 4 }
 0x48d   : > { %v3168_v26 = vadd.f32 %v3167_v43, %v3166_v34 }
 0x48f   : > { %v3169_v32 = vrot.slane %v3168_v26, 2 }
 0x491   : > { %v3170_v50 = vadd.f32 %v3169_v32, %v3168_v26 }
 0x493   : > { %v3171_v30 = vrot.slane %v3170_v50, 1 }
 0x495   : > { %v3172_v62 = vadd.f32 %v3171_v30, %v3170_v50 }
 0x497   : > { %v3180_v2 = vmul.f32 %v3179_v10, %v3172_v62 }
 0x499   : > { %3945 = vmatmul.msk.f32.vlgmr.msra.gmra.mxu3 %vm1493_vm1, %v3180_v2 }
 0x49a   : > { %3324 = vmatpush.msra.mxu3 %v3283_v23 }
 0x49c   : > { %3325 = vmatpush.msra.mxu3 %v3282_v57 }
 0x51c   : > { %v3205_v16 = vpop.f32.mrf.mxu3 }
 0x51d   : > { %v3208_v61 = vmax.f32 %v3205_v16, 0.0 }
 0x51f   : > { %3947 = vmatmul.msk.f32.vlgmr.msrb.gmra.mxu3 %vm3210_vm15, %v3208_v61 }
 0x527   : > { %3956 = vmatmul.msk.f32.vlgmr.msra.gmra.mxu3 %vm1460_vm0, %v3948_v48 }
 0x52f   : > { %3957 = vmatmul.msk.f32.gmra.mxu3 %vm1460_vm0, %v3949_v24 }
 0x537   : > { %3958 = vmatmul.msk.f32.gmra.mxu3 %vm1460_vm0, %v3950_v29 }
 0x53f   : > { %3959 = vmatmul.msk.f32.gmra.mxu3 %vm1460_vm0, %v3951_v49 }
 0x547   : > { %3960 = vmatmul.msk.f32.gmra.mxu3 %vm1460_vm0, %v3952_v4 }
 0x54f   : > { %3961 = vmatmul.msk.f32.gmra.mxu3 %vm1460_vm0, %v3953_v33 }
 0x557   : > { %3962 = vmatmul.msk.f32.gmra.mxu3 %vm1460_vm0, %v3954_v1 }
 0x55f   : > { %3963 = vmatmul.msk.f32.gmra.mxu3 %vm1460_vm0, %v3955_v58 }
 0x5a2   : > { %v3235_v53 = vpop.f32.mrf.mxu3 }
 0x5a3   : > { %v3238_v17 = vsub.f32 0.0, %v3235_v53 }
 0x5a5   : > { %v3239_v59 = vmul.f32 1.442695, %v3238_v17 }
 0x5a7   : > { %4008 = vpow2.f32 %v3239_v59 }
 0x5aa   : > { %v3327_v46 = vpop.f32.mrf.mxu3 }
 0x5ab   : > { %v3328_v45 = vadd.f32 %v6104_v8, %v3327_v46 }
 0x5ad   : > { %v4009_v18 = vpop.eup %4008 }
 0x5ae   : > { %v3241_v6 = vadd.f32 1.0, %v4009_v18 }
 0x5b0   : > { %4010 = vrcp.f32 %v3241_v6  ;;  %v3253_v14 = vand.u32 2147483648, %v3241_v6  ;;  %v3251_v56 = vand.u32 2147483647, %v3241_v6  ;;  %vm3247_vm2 = vweird.f32 %v3241_v6 }
 0x5b2   : > { %v3330_v44 = vpop.f32.mrf.mxu3  ;;  %v3254_v20 = vor.u32 1.1754944e-38, %v3253_v14  ;;  %vm3252_vm4 = vcmp.eq.f32.partialorder %v3251_v56, 8.507059e+37 }
 0x5b3   : > { %v3331_v40 = vadd.f32 %v6104_v8, %v3330_v44 }
 0x5b6   : > { %v4011_v7 = vpop.eup %4010 }
 0x5b7   : > { %v3243_v3 = vmul.f32 %v4011_v7, %v3241_v6  ;;  %vm3248_vm7 = vweird.f32 %v4011_v7 }
 0x5b8   : > { %vm3249_vm0 = vmor %vm3247_vm2, %vm3248_vm7 }
 0x5b9   : > { %v3244_v38 = vsub.f32 1.0, %v3243_v3 }
 0x5ba   : > { %v3333_v15 = vpop.f32.mrf.mxu3 }
 0x5bb   : > { %v3245_v31 = vmul.f32 %v4011_v7, %v3244_v38  ;;  %v3334_v0 = vadd.f32 %v6104_v8, %v3333_v15 }
 0x5bd   : > { %v3246_v9 = vadd.f32 %v4011_v7, %v3245_v31 }
 0x5bf   : > { %v3250_v37 = vsel %vm3249_vm0, %v4011_v7, %v3246_v9 }
 0x5c0   : > { %v3255_v22 = vsel %vm3252_vm4, %v3254_v20, %v3250_v37 }
 0x5c1   : > { %v6106_v60 = vperm.slane %v3255_v22, 0 }
 0x5c2   : > { %v3336_v51 = vpop.f32.mrf.mxu3 }
 0x5c3   : > { %v3258_v47 = vmul.f32 %v6106_v60, %v6045_v21  ;;  %v3259_v54 = vmul.f32 %v6106_v60, %v6043_v11  ;;  %v3260_v42 = vmul.f32 %v6106_v60, %v6047_v35  ;;  %v3261_v41 = vmul.f32 %v6106_v60, %v6054_v25 }
 0x5c4   : > { %v3337_v39 = vadd.f32 %v6104_v8, %v3336_v51  ;;  %v3262_v21 = vmul.f32 %v6106_v60, %v6060_v19  ;;  %v3263_v43 = vmul.f32 %v6106_v60, %v6064_v52  ;;  %v3264_v4 = vmul.f32 %v6106_v60, %v6068_v12 }
 0x5c5   : > { %v3351_v36 = vadd.f32 %v3328_v45, %v3258_v47  ;;  %v3352_v5 = vadd.f32 %v3331_v40, %v3259_v54  ;;  %v3353_v13 = vadd.f32 %v3334_v0, %v3260_v42 }
 0x5c6   : > { %v3354_v63 = vadd.f32 %v3337_v39, %v3261_v41  ;;  %v3265_v39 = vmul.f32 %v6106_v60, %v6074_v27 }
 0x5c7   : > { %3359 = vst.msk [vmem:[#allocation2 + $0x19] sm:$0xff] %vm1493_vm1, %v3351_v36 }
 0x5c8   : > { %3360 = vst.msk [vmem:[#allocation2 + $0x31] sm:$0xff] %vm1493_vm1, %v3352_v5 }
 0x5c9   : > { %3361 = vst.msk [vmem:[#allocation2 + $0x49] sm:$0xff] %vm1493_vm1, %v3353_v13 }
 0x5ca   : > { %3362 = vst.msk [vmem:[#allocation2 + $0x61] sm:$0xff] %vm1493_vm1, %v3354_v63  ;;  %v3339_v11 = vpop.f32.mrf.mxu3 }
 0x5cb   : > { %v3340_v35 = vadd.f32 %v6104_v8, %v3339_v11 }
 0x5cd   : > { %v3355_v25 = vadd.f32 %v3340_v35, %v3262_v21 }
 0x5ce   : > { %v3516_v2 = vld [vmem:[#allocation2 + $0x1e] sm:$0x1]  ;;  %v3383_v48 = vld [vmem:[#allocation2 + $0x1b] sm:$0x1]  ;;  %v3375_v56 = vld [vmem:[#allocation2 + $0x1a] sm:$0x1] }
 0x5cf   : > { %3363 = vst.msk [vmem:[#allocation2 + $0x79] sm:$0xff] %vm1493_vm1, %v3355_v25  ;;  %v3517_v32 = vld [vmem:[#allocation2 + $0x36] sm:$0x1]  ;;  %v3384_v55 = vld [vmem:[#allocation2 + $0x33] sm:$0x1] }
 0x5d0   : > { %v3518_v50 = vld [vmem:[#allocation2 + $0x4e] sm:$0x1]  ;;  %v3376_v30 = vld [vmem:[#allocation2 + $0x32] sm:$0x1]  ;;  %v3571_v19 = vrot.slane %v3517_v32, 7  ;;  %v3462_v62 = vrot.slane %v3384_v55, 7 }
 0x5d1   : > { %v3385_v10 = vld [vmem:[#allocation2 + $0x4b] sm:$0x1]  ;;  %v3519_v23 = vld [vmem:[#allocation2 + $0x66] sm:$0x1]  ;;  %v6132_v57 = vld [vmem:[#allocation2 + $0x63] sm:$0x1] }
 0x5d2   : > { %v3342_v34 = vpop.f32.mrf.mxu3  ;;  %v3377_v52 = vld [vmem:[#allocation2 + $0x4a] sm:$0x1]  ;;  %v3573_v61 = vrot.slane %v3518_v50, 6  ;;  %v6134_v24 = vld [vmem:[#allocation2 + $0x62] sm:$0x1]  ;;  %v3437_v29 = vrot.slane %v3376_v30, 7  ;;  %v3572_v17 = vsel %vm3408_vm6, %v3571_v19, %v3516_v2  ;;  %v3463_v12 = vsel %vm3408_vm6, %v3462_v62, %v3383_v48 }
 0x5d3   : > { %v3343_v28 = vadd.f32 %v6104_v8, %v3342_v34  ;;  %v3392_v49 = vld [vmem:[#allocation2 + $0x34] sm:$0x1]  ;;  %v6143_v53 = vld [vmem:[#allocation2 + $0x4c] sm:$0x1]  ;;  %v3575_v59 = vrot.slane %v3519_v23, 5  ;;  %v3464_v46 = vrot.slane %v3385_v10, 6 }
 0x5d4   : > { %v3466_v18 = vrot.slane %v6132_v57, 5  ;;  %v3439_v7 = vrot.slane %v3377_v52, 6  ;;  %v3441_v3 = vrot.slane %v6134_v24, 5  ;;  %v6151_v38 = vld [vmem:[#allocation2 + $0x64] sm:$0x1]  ;;  %v3487_v9 = vrot.slane %v3392_v49, 7 }
 0x5d5   : > { %v3356_v26 = vadd.f32 %v3343_v28, %v3263_v43  ;;  %v3368_v14 = vld [vmem:[#allocation2 + $0x31] sm:$0x1]  ;;  %v3489_v20 = vrot.slane %v6143_v53, 6  ;;  %v3574_v37 = vsel %vm3411_vm8, %v3573_v61, %v3572_v17  ;;  %v3438_v22 = vsel %vm3408_vm6, %v3437_v29, %v3375_v56  ;;  %v3369_v0 = vld [vmem:[#allocation2 + $0x49] sm:$0x1] }
 0x5d6   : > { %v6139_v1 = vld [vmem:[#allocation2 + $0x7e] sm:$0x1]  ;;  %v6141_v58 = vld [vmem:[#allocation2 + $0x7b] sm:$0x1]  ;;  %v6147_v6 = vld [vmem:[#allocation2 + $0x7a] sm:$0x1]  ;;  %v3465_v36 = vsel %vm3411_vm8, %v3464_v46, %v3463_v12  ;;  %v3576_v25 = vsel %vm3414_vm10, %v3575_v59, %v3574_v37  ;;  %v3440_v34 = vsel %vm3411_vm8, %v3439_v7, %v3438_v22 }
 0x5d7   : > { %3364 = vst.msk [vmem:[#allocation2 + $0x91] sm:$0xff] %vm1493_vm1, %v3356_v26  ;;  %v3577_v15 = vrot.slane %v6139_v1, 4  ;;  %v3468_v31 = vrot.slane %v6141_v58, 4  ;;  %v3443_v45 = vrot.slane %v6147_v6, 4  ;;  %v6160_v40 = vld [vmem:[#allocation2 + $0x7c] sm:$0x1]  ;;  %v3442_v7 = vsel %vm3414_vm10, %v3441_v3, %v3440_v34 }
 0x5d8   : > { %v3391_v51 = vld [vmem:[#allocation2 + $0x1c] sm:$0x1]  ;;  %v3491_v47 = vrot.slane %v6151_v38, 5  ;;  %v6163_v54 = vld [vmem:[#allocation2 + $0x38] sm:$0x1]  ;;  %v3407_v41 = vrot.slane %v3368_v14, 7 }
 0x5d9   : > { %v6165_v42 = vld [vmem:[#allocation2 + $0x50] sm:$0x1]  ;;  %v6170_v5 = vld [vmem:[#allocation2 + $0x68] sm:$0x1]  ;;  %v6172_v13 = vld [vmem:[#allocation2 + $0x80] sm:$0x1]  ;;  %v3488_v32 = vsel %vm3408_vm6, %v3487_v9, %v3391_v51  ;;  %v3578_v3 = vsel %vm3417_vm11, %v3577_v15, %v3576_v25 }
 0x5da   : > { %v3345_v16 = vpop.f32.mrf.mxu3  ;;  %v3370_v63 = vld [vmem:[#allocation2 + $0x61] sm:$0x1]  ;;  %v3371_v11 = vld [vmem:[#allocation2 + $0x79] sm:$0x1]  ;;  %v3493_v43 = vrot.slane %v6160_v40, 4  ;;  %v3410_v27 = vrot.slane %v3369_v0, 6 }
 0x5db   : > { %v3346_v33 = vadd.f32 %v6104_v8, %v3345_v16  ;;  %v6177_v28 = vld [vmem:[#allocation2 + $0x37] sm:$0x1]  ;;  %v3509_v60 = vld [vmem:[#allocation2 + $0x35] sm:$0x1]  ;;  %v3621_v55 = vrot.slane %v6163_v54, 7  ;;  %v3416_v50 = vrot.slane %v3371_v11, 4  ;;  %v3444_v11 = vsel %vm3417_vm11, %v3443_v45, %v3442_v7 }
 0x5dc   : > { %v3367_v30 = vld [vmem:[#allocation2 + $0x19] sm:$0x1]  ;;  %v3510_v19 = vld [vmem:[#allocation2 + $0x4d] sm:$0x1]  ;;  %v3413_v10 = vrot.slane %v3370_v63, 5  ;;  %v3548_v52 = vrot.slane %v3509_v60, 7 }
 0x5dd   : > { %v3357_v44 = vadd.f32 %v3346_v33, %v3264_v4  ;;  %v3409_v2 = vsel %vm3408_vm6, %v3407_v41, %v3367_v30  ;;  %v3511_v23 = vld [vmem:[#allocation2 + $0x65] sm:$0x1]  ;;  %v3623_v61 = vrot.slane %v6165_v42, 6  ;;  %v3512_v24 = vld [vmem:[#allocation2 + $0x7d] sm:$0x1]  ;;  %v3625_v33 = vrot.slane %v6170_v5, 5 }
 0x5de   : > { %v3372_v21 = vld [vmem:[#allocation2 + $0x91] sm:$0x1]  ;;  %v3412_v48 = vsel %vm3411_vm8, %v3410_v27, %v3409_v2  ;;  %v3508_v29 = vld [vmem:[#allocation2 + $0x1d] sm:$0x1]  ;;  %v3521_v49 = vld [vmem:[#allocation2 + $0x96] sm:$0x1] }
 0x5df   : > { %3365 = vst.msk [vmem:[#allocation2 + $0xa9] sm:$0xff] %vm1493_vm1, %v3357_v44  ;;  %v3419_v62 = vrot.slane %v3372_v21, 3  ;;  %v3388_v4 = vld [vmem:[#allocation2 + $0x93] sm:$0x1]  ;;  %v3627_v17 = vrot.slane %v6172_v13, 4  ;;  %v3415_v59 = vsel %vm3414_vm10, %v3413_v10, %v3412_v48  ;;  %v3549_v46 = vsel %vm3408_vm6, %v3548_v52, %v3508_v29 }
 0x5e0   : > { %v3467_v44 = vsel %vm3414_vm10, %v3466_v18, %v3465_v36  ;;  %v3380_v12 = vld [vmem:[#allocation2 + $0x92] sm:$0x1]  ;;  %v3596_v14 = vrot.slane %v6177_v28, 7  ;;  %v3418_v56 = vsel %vm3417_vm11, %v3416_v50, %v3415_v59  ;;  %v3513_v9 = vld [vmem:[#allocation2 + $0x95] sm:$0x1]  ;;  %v3554_v57 = vrot.slane %v3512_v24, 4 }
 0x5e1   : > { %v6196_v0 = vld [vmem:[#allocation2 + $0x4f] sm:$0x1]  ;;  %v6198_v51 = vld [vmem:[#allocation2 + $0x67] sm:$0x1]  ;;  %v3421_v41 = vsel %vm3420_vm12, %v3419_v62, %v3418_v56  ;;  %v3469_v36 = vsel %vm3417_vm11, %v3468_v31, %v3467_v44  ;;  %v3490_v21 = vsel %vm3411_vm8, %v3489_v20, %v3488_v32  ;;  %v3579_v28 = vrot.slane %v3521_v49, 3 }
 0x5e2   : > { %v3348_v35 = vpop.f32.mrf.mxu3  ;;  %v3470_v27 = vrot.slane %v3388_v4, 3  ;;  %v6214_v1 = vld [vmem:[#allocation2 + $0x7f] sm:$0x1]  ;;  %v3556_v25 = vrot.slane %v3513_v9, 3  ;;  %v3445_v60 = vrot.slane %v3380_v12, 3  ;;  %v3598_v30 = vrot.slane %v6196_v0, 6 }
 0x5e3   : > { %v3349_v26 = vadd.f32 %v6104_v8, %v3348_v35  ;;  %v3550_v8 = vrot.slane %v3510_v19, 6  ;;  %v3532_v45 = vld [vmem:[#allocation2 + $0x20] sm:$0x1]  ;;  %v3524_v32 = vld [vmem:[#allocation2 + $0x1f] sm:$0x1]  ;;  %v3600_v19 = vrot.slane %v6198_v51, 5 }
 0x5e4   : > { %v3602_v10 = vrot.slane %v6214_v1, 4  ;;  %v3396_v24 = vld [vmem:[#allocation2 + $0x94] sm:$0x1]  ;;  %v3446_v59 = vsel %vm3420_vm12, %v3445_v60, %v3444_v11  ;;  %v3537_v44 = vld [vmem:[#allocation2 + $0x98] sm:$0x1]  ;;  %v3597_v54 = vsel %vm3408_vm6, %v3596_v14, %v3524_v32 }
 0x5e5   : > { %v3358_v16 = vadd.f32 %v3349_v26, %v3265_v39  ;;  %v3552_v39 = vrot.slane %v3511_v23, 5  ;;  %v3551_v18 = vsel %vm3411_vm8, %v3550_v8, %v3549_v46  ;;  %v3580_v23 = vsel %vm3420_vm12, %v3579_v28, %v3578_v3 }
 0x5e6   : > { %v3522_v37 = vld [vmem:[#allocation2 + $0xae] sm:$0x1]  ;;  %v3389_v22 = vld [vmem:[#allocation2 + $0xab] sm:$0x1]  ;;  %v3381_v63 = vld [vmem:[#allocation2 + $0xaa] sm:$0x1]  ;;  %v3622_v8 = vsel %vm3408_vm6, %v3621_v55, %v3532_v45  ;;  %v3492_v3 = vsel %vm3414_vm10, %v3491_v47, %v3490_v21 }
 0x5e7   : > { %3366 = vst.msk [vmem:[#allocation2 + $0xc1] sm:$0xff] %vm1493_vm1, %v3358_v16  ;;  %v3373_v35 = vld [vmem:[#allocation2 + $0xa9] sm:$0x1]  ;;  %v3514_v34 = vld [vmem:[#allocation2 + $0xad] sm:$0x1]  ;;  %v3581_v58 = vrot.slane %v3522_v37, 2  ;;  %v3553_v26 = vsel %vm3414_vm10, %v3552_v39, %v3551_v18  ;;  %v3471_v16 = vsel %vm3420_vm12, %v3470_v27, %v3469_v36  ;;  %v3624_v14 = vsel %vm3411_vm8, %v3623_v61, %v3622_v8 }
 0x5e8   : > { %v3422_v15 = vrot.slane %v3373_v35, 2  ;;  %v3558_v31 = vrot.slane %v3514_v34, 2  ;;  %v3472_v6 = vrot.slane %v3389_v22, 2  ;;  %v3447_v50 = vrot.slane %v3381_v63, 2  ;;  %v3397_v9 = vld [vmem:[#allocation2 + $0xac] sm:$0x1] }
 0x5e9   : > { %v3555_v20 = vsel %vm3417_vm11, %v3554_v57, %v3553_v26  ;;  %v3582_v12 = vsel %vm3423_vm13, %v3581_v58, %v3580_v23  ;;  %v3538_v37 = vld [vmem:[#allocation2 + $0xb0] sm:$0x1]  ;;  %v3529_v22 = vld [vmem:[#allocation2 + $0x97] sm:$0x1]  ;;  %v3495_v35 = vrot.slane %v3396_v24, 3  ;;  %v3629_v34 = vrot.slane %v3537_v44, 3 }
 0x5ea   : > { %v3424_v53 = vsel %vm3423_vm13, %v3422_v15, %v3421_v41  ;;  %v3557_v62 = vsel %vm3420_vm12, %v3556_v25, %v3555_v20  ;;  %v3473_v7 = vsel %vm3423_vm13, %v3472_v6, %v3471_v16  ;;  %v3448_v56 = vsel %vm3423_vm13, %v3447_v50, %v3446_v59  ;;  %v3530_v41 = vld [vmem:[#allocation2 + $0xaf] sm:$0x1] }
 0x5eb   : > { %v3559_v29 = vsel %vm3423_vm13, %v3558_v31, %v3557_v62  ;;  %v3599_v27 = vsel %vm3411_vm8, %v3598_v30, %v3597_v54  ;;  %v3604_v1 = vrot.slane %v3529_v22, 3  ;;  %v3497_v15 = vrot.slane %v3397_v9, 2 }
 0x5ec   : > { %v3631_v25 = vrot.slane %v3538_v37, 2  ;;  %v3626_v42 = vsel %vm3414_vm10, %v3625_v33, %v3624_v14  ;;  %v3606_v58 = vrot.slane %v3530_v41, 2  ;;  %v3494_v60 = vsel %vm3417_vm11, %v3493_v43, %v3492_v3 }
 0x5ed   : > { %v3628_v31 = vsel %vm3417_vm11, %v3627_v17, %v3626_v42  ;;  %v3601_v26 = vsel %vm3414_vm10, %v3600_v19, %v3599_v27  ;;  %v3496_v50 = vsel %vm3420_vm12, %v3495_v35, %v3494_v60 }
 0x5ee   : > { %v3523_v2 = vld [vmem:[#allocation2 + $0xc6] sm:$0x1]  ;;  %v3390_v52 = vld [vmem:[#allocation2 + $0xc3] sm:$0x1]  ;;  %v3382_v48 = vld [vmem:[#allocation2 + $0xc2] sm:$0x1]  ;;  %v3630_v5 = vsel %vm3420_vm12, %v3629_v34, %v3628_v31  ;;  %v3603_v33 = vsel %vm3417_vm11, %v3602_v10, %v3601_v26  ;;  %v3498_v45 = vsel %vm3423_vm13, %v3497_v15, %v3496_v50 }
 0x5ef   : > { %v3583_v49 = vrot.slane %v3523_v2, 1  ;;  %v3474_v4 = vrot.slane %v3390_v52, 1  ;;  %v3449_v46 = vrot.slane %v3382_v48, 1  ;;  %v3374_v39 = vld [vmem:[#allocation2 + $0xc1] sm:$0x1]  ;;  %v3632_v40 = vsel %vm3423_vm13, %v3631_v25, %v3630_v5 }
 0x5f0   : > { %v3515_v57 = vld [vmem:[#allocation2 + $0xc5] sm:$0x1]  ;;  %v3398_v18 = vld [vmem:[#allocation2 + $0xc4] sm:$0x1]  ;;  %v3539_v36 = vld [vmem:[#allocation2 + $0xc8] sm:$0x1]  ;;  %v3605_v43 = vsel %vm3420_vm12, %v3604_v1, %v3603_v33 }
 0x5f1   : > { %v3584_v55 = vsel %vm3426_vm9, %v3583_v49, %v3582_v12  ;;  %v3475_v0 = vsel %vm3426_vm9, %v3474_v4, %v3473_v7  ;;  %v3450_v51 = vsel %vm3426_vm9, %v3449_v46, %v3448_v56  ;;  %v3425_v63 = vrot.slane %v3374_v39, 1  ;;  %v3531_v28 = vld [vmem:[#allocation2 + $0xc7] sm:$0x1] }
 0x5f2   : > { %3585 = vrot.lane.b32.xlu0 %v3584_v55, %s4027_s16  ;;  %3476 = vrot.lane.b32.xlu1 %v3475_v0, %s4026_s15  ;;  %v3560_v11 = vrot.slane %v3515_v57, 1  ;;  %v3499_v21 = vrot.slane %v3398_v18, 1  ;;  %v3633_v61 = vrot.slane %v3539_v36, 1  ;;  %v3608_v6 = vrot.slane %v3531_v28, 1 }
 0x5f3   : > { %3451 = vrot.lane.b32.xlu2 %v3450_v51, %s4027_s16  ;;  %v3427_v38 = vsel %vm3426_vm9, %v3425_v63, %v3424_v53  ;;  %v3607_v53 = vsel %vm3423_vm13, %v3606_v58, %v3605_v43  ;;  %s3966_s16 = sshll.u32 %s6295_s28, 4 }
 0x5f4   : > { %v3561_v47 = vsel %vm3426_vm9, %v3560_v11, %v3559_v29  ;;  %v3500_v13 = vsel %vm3426_vm9, %v3499_v21, %v3498_v45  ;;  %v3634_v17 = vsel %vm3426_vm9, %v3633_v61, %v3632_v40  ;;  %v3609_v20 = vsel %vm3426_vm9, %v3608_v6, %v3607_v53  ;;  %s305_s29 = scalar_lea.vmem %s6293_s8, %s3966_s16 }
 0x5fa   : > { %3501 = vrot.lane.b32.xlu0 %v3500_v13, %s4025_s14  ;;  %3635 = vrot.lane.b32.xlu1 %v3634_v17, %s4025_s14 }
 0x5fb   : > { %3610 = vrot.lane.b32.xlu2 %v3609_v20, %s4026_s15 }
 0x64d   : > { %v3452_v32 = vpop.permute.xlu2 %3451 }
 0x64e   : > { %v3504_v62 = vsel %vm1493_vm1, %v3427_v38, %v3452_v32 }
 0x655   : > { %v3611_v2 = vpop.permute.xlu2 %3610 }
 0x664   : > { %v3586_v30 = vpop.permute.xlu0 %3585  ;;  %v3477_v19 = vpop.permute.xlu1 %3476 }
 0x665   : > { %v3638_v10 = vsel %vm1493_vm1, %v3561_v47, %v3586_v30  ;;  %v3505_v23 = vsel %vm1559_vm3, %v3504_v62, %v3477_v19 }
 0x666   : > { %v3639_v48 = vsel %vm1559_vm3, %v3638_v10, %v3611_v2 }
 0x66c   : > { %v3502_v52 = vpop.permute.xlu0 %3501  ;;  %v3636_v16 = vpop.permute.xlu1 %3635 }
 0x66d   : > { %v3506_v24 = vsel %vm1625_vm5, %v3505_v23, %v3502_v52  ;;  %v3640_v8 = vsel %vm1625_vm5, %v3639_v48, %v3636_v16 }
 0x66e   : > { %3507 = vst [vmem:[%s305_s29] sm:$0xff] %v3506_v24 }
 0x66f   : > { %3641 = vst [vmem:[%s305_s29 + $0x8] sm:$0xff] %v3640_v8 }
 0x670 PF: > { %s18_s27 = sadd.s32 1, %s4020_s27  }
 0x671   : > { %p15_p4 = scmp.ge.s32.totalorder %s18_s27, 4  }
 0x673   :  { %17 = sbr.rel (!%p15_p4) target bundleno = 1 (0x1), region = 118 }

</bundles_post_ra>
